<compile_context>
chip_gen: v5e
topology: v5e:2x2
jax: 0.10.0
libtpu: 0.0.40
codegen_flags: <defaults>
</compile_context>

<pallas_src>
import functools

import jax
import jax.numpy as jnp
from jax.experimental import pallas as pl
from jax.experimental.pallas import tpu as pltpu

EPS = 1e-5


# --------------------------------------------------------------------------------------
# Pallas kernels
# --------------------------------------------------------------------------------------
def _make_conv_kernel(relu: bool, has_residual: bool):
    """out(Cout, TM) = W_folded(Cout, K) @ patches(K, TM) + bias [+ residual] [-> relu]."""
    if has_residual:
        def kernel(w_ref, a_ref, b_ref, r_ref, o_ref):
            y = jnp.dot(w_ref[...], a_ref[...], preferred_element_type=jnp.float32)
            y = y + b_ref[...] + r_ref[...].astype(jnp.float32)
            if relu:
                y = jnp.maximum(y, 0.0)
            o_ref[...] = y.astype(o_ref.dtype)
        return kernel

    def kernel(w_ref, a_ref, b_ref, o_ref):
        y = jnp.dot(w_ref[...], a_ref[...], preferred_element_type=jnp.float32)
        y = y + b_ref[...]
        if relu:
            y = jnp.maximum(y, 0.0)
        o_ref[...] = y.astype(o_ref.dtype)
    return kernel


def _choose_tm(m):
    """Largest lane-dense tile that divides M while keeping >=2 grid steps when possible."""
    for tm in (1024, 512, 256, 128):
        if m > tm and m % tm == 0:
            return tm
    return m


def conv3x3_bn(x, w_folded, bias, *, stride=1, residual=None, relu=True):
    """Fused 3x3 conv (as matmul) + folded BN [+ residual] [+ relu].

    x:        (Cin, N, H, W) bf16 activations (channel-first, batch folded into M).
    w_folded: (Cout, 9*Cin)  bf16, BN scale already folded in; k = (ki*3+kj)*Cin + c.
    bias:     (Cout, 1)      f32 folded BN bias.
    residual: (Cout, N*Ho*Wo) or None.
    returns:  (Cout, N, Ho, Wo) bf16.
    """
    Cin, N, H, W = x.shape
    Cout, K = w_folded.shape

    a_t, Ho, Wo = im2col_t(x, stride)            # (K, M) bf16
    M = N * Ho * Wo
    TM = _choose_tm(M)
    grid = (M // TM,)

    in_specs = [
        pl.BlockSpec((Cout, K), lambda i: (0, 0)),
        pl.BlockSpec((K, TM), lambda i: (0, i)),
        pl.BlockSpec((Cout, 1), lambda i: (0, 0)),
    ]
    args = [w_folded, a_t, bias]
    if residual is not None:
        in_specs.append(pl.BlockSpec((Cout, TM), lambda i: (0, i)))
        args.append(residual.astype(jnp.bfloat16))

    out = pl.pallas_call(
        _make_conv_kernel(relu, residual is not None),
        out_shape=jax.ShapeDtypeStruct((Cout, M), jnp.bfloat16),
        grid=grid,
        in_specs=in_specs,
        out_specs=pl.BlockSpec((Cout, TM), lambda i: (0, i)),
        compiler_params=pltpu.CompilerParams(dimension_semantics=("parallel",)),
    )(*args)
    return out.reshape(Cout, N, Ho, Wo)


def _head_kernel(x_ref, w_ref, b_ref, o_ref):
    # x: (C, N, H*W) -> global average pool over spatial, then Linear (output (ncls, N)).
    hw = x_ref.shape[-1]
    pooled = jnp.sum(x_ref[...].astype(jnp.float32), axis=-1) * (1.0 / hw)   # (C, N)
    y = jnp.dot(w_ref[...], pooled, preferred_element_type=jnp.float32) + b_ref[...]
    o_ref[...] = y


def head(x, fc_w_t, fc_b):
    """x: (C, N, H, W) bf16; fc_w_t: (ncls, C) f32; fc_b: (ncls, 1) f32 -> (N, ncls) f32."""
    C, N, H, W = x.shape
    ncls = fc_w_t.shape[0]
    x3 = x.reshape(C, N, H * W)
    out = pl.pallas_call(
        _head_kernel,
        out_shape=jax.ShapeDtypeStruct((ncls, N), jnp.float32),
        grid=(1,),
        in_specs=[
            pl.BlockSpec((C, N, H * W), lambda i: (0, 0, 0)),
            pl.BlockSpec((ncls, C), lambda i: (0, 0)),
            pl.BlockSpec((ncls, 1), lambda i: (0, 0)),
        ],
        out_specs=pl.BlockSpec((ncls, N), lambda i: (0, 0)),
    )(x3, fc_w_t, fc_b)
    return out.T                                   # (N, ncls)


# --------------------------------------------------------------------------------------
# Plain-JAX glue: patch extraction, option-A shortcut, parameter init, network wiring
# --------------------------------------------------------------------------------------
def im2col_t(x, stride):
    """x: (Cin, N, H, W) -> (9*Cin, N*Ho*Wo) with k = (ki*3+kj)*Cin + c (static stride)."""
    Cin, N, H, W = x.shape
    xp = jnp.pad(x, ((0, 0), (0, 0), (1, 1), (1, 1)))
    Ho = (H + 2 - 3) // stride + 1
    Wo = (W + 2 - 3) // stride + 1
    cols = []
    for i in range(3):
        for j in range(3):
            cols.append(xp[:, :, i:i + stride * Ho:stride, j:j + stride * Wo:stride])
    patches = jnp.stack(cols, axis=0)              # (9, Cin, N, Ho, Wo)
    return patches.reshape(9 * Cin, N * Ho * Wo), Ho, Wo


def shortcut_option_a(x, planes, stride):
    """Mirrors F.pad(x[:, :, ::2, ::2], channel pad) in channel-first layout."""
    y = x[:, :, ::stride, ::stride]
    cin = y.shape[0]
    pad_total = planes - cin
    return jnp.pad(y, ((pad_total // 2, pad_total - pad_total // 2),
                       (0, 0), (0, 0), (0, 0)))


def kaiming(key, shape, fan_in):
    return jax.random.normal(key, shape, jnp.float32) * jnp.sqrt(2.0 / fan_in)


def make_bn_scale_bias(c):
    gamma = jnp.ones((c,), jnp.float32)
    beta = jnp.zeros((c,), jnp.float32)
    mean = jnp.zeros((c,), jnp.float32)
    var = jnp.ones((c,), jnp.float32)
    scale = gamma / jnp.sqrt(var + EPS)
    bias = beta - mean * scale
    return scale, bias


def conv_bn_params(key, cin, cout):
    """Conv weight with BN scale folded in (bf16) + folded BN bias (f32, (Cout,1))."""
    w = kaiming(key, (cout, 9 * cin), fan_in=9 * cin)          # (Cout, 9*Cin)
    scale, bias = make_bn_scale_bias(cout)
    w_folded = (w * scale[:, None]).astype(jnp.bfloat16)
    return w_folded, bias.reshape(cout, 1)


def init_resnet(key, num_blocks=(1, 1, 1), num_classes=10):
    """Returns (params, cfg): params is an arrays-only pytree, cfg is static Python config."""
    params = {}
    cfg = []

    key, k = jax.random.split(key)
    params["conv1_w"], params["conv1_b"] = conv_bn_params(k, 3, 16)

    in_planes = 16
    blocks = []
    for planes, nb, stride0 in zip((16, 32, 64), num_blocks, (1, 2, 2)):
        stage_p, stage_c = [], []
        strides = [stride0] + [1] * (nb - 1)
        for s in strides:
            key, k1, k2 = jax.random.split(key, 3)
            w1, b1 = conv_bn_params(k1, in_planes, planes)
            w2, b2 = conv_bn_params(k2, planes, planes)
            stage_p.append({"w1": w1, "b1": b1, "w2": w2, "b2": b2})
            stage_c.append({"stride": s, "planes": planes})
            in_planes = planes
        blocks.append(stage_p)
        cfg.append(stage_c)
    params["blocks"] = blocks

    key, kw, kb = jax.random.split(key, 3)
    params["fc_w"] = kaiming(kw, (num_classes, 64), fan_in=64)     # stored (ncls, C)
    bound = 1.0 / jnp.sqrt(64.0)
    params["fc_b"] = jax.random.uniform(kb, (num_classes, 1), jnp.float32, -bound, bound)
    return params, cfg


def basic_block(x, blk_p, blk_c):
    """BasicBlock: relu(bn1(conv1(x))); bn2(conv2(.)) + shortcut(x); relu."""
    stride, planes = blk_c["stride"], blk_c["planes"]
    cin = x.shape[0]

    y = conv3x3_bn(x, blk_p["w1"], blk_p["b1"], stride=stride, relu=True)

    if stride != 1 or cin != planes:
        sc = shortcut_option_a(x, planes, stride)
    else:
        sc = x
    sc_flat = sc.reshape(planes, -1)

    out = conv3x3_bn(y, blk_p["w2"], blk_p["b2"], stride=1,
                     residual=sc_flat, relu=True)
    return out


def resnet_forward(params, x_nchw, cfg):
    # NCHW -> channel-first (C, N, H, W), bf16 activations.
    x = jnp.transpose(x_nchw, (1, 0, 2, 3)).astype(jnp.bfloat16)

    y = conv3x3_bn(x, params["conv1_w"], params["conv1_b"], stride=1, relu=True)

    for stage_p, stage_c in zip(params["blocks"], cfg):
        for blk_p, blk_c in zip(stage_p, stage_c):
            y = basic_block(y, blk_p, blk_c)

    return head(y, params["fc_w"], params["fc_b"])                 # (N, num_classes) f32


# --------------------------------------------------------------------------------------
if __name__ == "__main__":
    key = jax.random.PRNGKey(0)
    kp, kx = jax.random.split(key)

    params, cfg = init_resnet(kp, num_blocks=(1, 1, 1), num_classes=10)
    x = jax.random.normal(kx, (2, 3, 16, 16), jnp.float32)         # NCHW, CIFAR-like (small)

    fwd = jax.jit(functools.partial(resnet_forward, cfg=cfg))      # cfg is static (closure)
    logits = fwd(params, x)
    jax.block_until_ready(logits)

    assert logits.shape == (2, 10) and logits.dtype == jnp.float32
    print("KERNEL_OK")
</pallas_src>

<mosaic_0001>
module attributes {stable_mosaic.version = 11 : i64} {
  func.func @kernel(%arg0: i32, %arg1: memref<16x27xbf16, #tpu.memory_space<vmem>>, %arg2: memref<27x256xbf16, #tpu.memory_space<vmem>>, %arg3: memref<16x1xf32, #tpu.memory_space<vmem>>, %arg4: memref<16x256xbf16, #tpu.memory_space<vmem>>) attributes {dimension_semantics = [#tpu.dimension_semantics<parallel>], iteration_bounds = array<i64: 2>, scalar_prefetch = 0 : i64, scratch_operands = 0 : i64, tpu.core_type = #tpu.core_type<tc>, window_params = [{pipeline_mode = #tpu.pipeline_mode<synchronous>, transform_indices = @transform_0, window_bounds = array<i64: 16, 27>}, {transform_indices = @transform_1, window_bounds = array<i64: 27, 256>}, {pipeline_mode = #tpu.pipeline_mode<synchronous>, transform_indices = @transform_2, window_bounds = array<i64: 16, 1>}, {transform_indices = @transform_3, window_bounds = array<i64: 16, 256>}]} {
    %c0 = arith.constant 0 : index
    %c0_0 = arith.constant 0 : index
    %0 = vector.load %arg1[%c0, %c0_0] : memref<16x27xbf16, #tpu.memory_space<vmem>>, vector<16x27xbf16>
    %c0_1 = arith.constant 0 : index
    %c0_2 = arith.constant 0 : index
    %1 = vector.load %arg2[%c0_1, %c0_2] : memref<27x256xbf16, #tpu.memory_space<vmem>>, vector<27x256xbf16>
    %cst = arith.constant dense<0.000000e+00> : vector<16x256xf32>
    %2 = tpu.matmul %0, %1, %cst {dimension_numbers = #tpu.dot_dimension_numbers<[1], [0], [0], [1], [0, 0, 1, 1], [], []>} : vector<16x27xbf16>, vector<27x256xbf16>, vector<16x256xf32> -> vector<16x256xf32>
    %c0_3 = arith.constant 0 : index
    %c0_4 = arith.constant 0 : index
    %3 = vector.load %arg3[%c0_3, %c0_4] : memref<16x1xf32, #tpu.memory_space<vmem>>, vector<16x1xf32>
    %4 = vector.broadcast %3 : vector<16x1xf32> to vector<16x256xf32>
    %5 = arith.addf %2, %4 : vector<16x256xf32>
    %cst_5 = arith.constant 0.000000e+00 : f32
    %6 = vector.broadcast %cst_5 : f32 to vector<16x256xf32>
    %7 = arith.maximumf %5, %6 : vector<16x256xf32>
    %8 = arith.truncf %7 : vector<16x256xf32> to vector<16x256xbf16>
    %c0_6 = arith.constant 0 : index
    %c0_7 = arith.constant 0 : index
    %9 = vector.load %arg4[%c0_6, %c0_7] : memref<16x256xbf16, #tpu.memory_space<vmem>>, vector<16x256xbf16>
    tpu.vector_store %arg4[%c0_6, %c0_7], %8 {strides = array<i32>} : memref<16x256xbf16, #tpu.memory_space<vmem>>, vector<16x256xbf16>,
    return
  }
  func.func @transform_0(%arg0: i32) -> (i32, i32) {
    %c0_i32 = arith.constant 0 : i32
    %c0_i32_0 = arith.constant 0 : i32
    %c0_i32_1 = arith.constant 0 : i32
    return %c0_i32, %c0_i32_0 : i32, i32
  }
  func.func @transform_1(%arg0: i32) -> (i32, i32) {
    %c0_i32 = arith.constant 0 : i32
    %c0_i32_0 = arith.constant 0 : i32
    return %c0_i32, %arg0 : i32, i32
  }
  func.func @transform_2(%arg0: i32) -> (i32, i32) {
    %c0_i32 = arith.constant 0 : i32
    %c0_i32_0 = arith.constant 0 : i32
    %c0_i32_1 = arith.constant 0 : i32
    return %c0_i32, %c0_i32_0 : i32, i32
  }
  func.func @transform_3(%arg0: i32) -> (i32, i32) {
    %c0_i32 = arith.constant 0 : i32
    %c0_i32_0 = arith.constant 0 : i32
    return %c0_i32, %arg0 : i32, i32
  }
}

module attributes {stable_mosaic.version = 11 : i64} {
  func.func @kernel(%arg0: i32, %arg1: memref<16x144xbf16, #tpu.memory_space<vmem>>, %arg2: memref<144x256xbf16, #tpu.memory_space<vmem>>, %arg3: memref<16x1xf32, #tpu.memory_space<vmem>>, %arg4: memref<16x256xbf16, #tpu.memory_space<vmem>>) attributes {dimension_semantics = [#tpu.dimension_semantics<parallel>], iteration_bounds = array<i64: 2>, scalar_prefetch = 0 : i64, scratch_operands = 0 : i64, tpu.core_type = #tpu.core_type<tc>, window_params = [{pipeline_mode = #tpu.pipeline_mode<synchronous>, transform_indices = @transform_0, window_bounds = array<i64: 16, 144>}, {transform_indices = @transform_1, window_bounds = array<i64: 144, 256>}, {pipeline_mode = #tpu.pipeline_mode<synchronous>, transform_indices = @transform_2, window_bounds = array<i64: 16, 1>}, {transform_indices = @transform_3, window_bounds = array<i64: 16, 256>}]} {
    %c0 = arith.constant 0 : index
    %c0_0 = arith.constant 0 : index
    %0 = vector.load %arg1[%c0, %c0_0] : memref<16x144xbf16, #tpu.memory_space<vmem>>, vector<16x144xbf16>
    %c0_1 = arith.constant 0 : index
    %c0_2 = arith.constant 0 : index
    %1 = vector.load %arg2[%c0_1, %c0_2] : memref<144x256xbf16, #tpu.memory_space<vmem>>, vector<144x256xbf16>
    %cst = arith.constant dense<0.000000e+00> : vector<16x256xf32>
    %2 = tpu.matmul %0, %1, %cst {dimension_numbers = #tpu.dot_dimension_numbers<[1], [0], [0], [1], [0, 0, 1, 1], [], []>} : vector<16x144xbf16>, vector<144x256xbf16>, vector<16x256xf32> -> vector<16x256xf32>
    %c0_3 = arith.constant 0 : index
    %c0_4 = arith.constant 0 : index
    %3 = vector.load %arg3[%c0_3, %c0_4] : memref<16x1xf32, #tpu.memory_space<vmem>>, vector<16x1xf32>
    %4 = vector.broadcast %3 : vector<16x1xf32> to vector<16x256xf32>
    %5 = arith.addf %2, %4 : vector<16x256xf32>
    %cst_5 = arith.constant 0.000000e+00 : f32
    %6 = vector.broadcast %cst_5 : f32 to vector<16x256xf32>
    %7 = arith.maximumf %5, %6 : vector<16x256xf32>
    %8 = arith.truncf %7 : vector<16x256xf32> to vector<16x256xbf16>
    %c0_6 = arith.constant 0 : index
    %c0_7 = arith.constant 0 : index
    %9 = vector.load %arg4[%c0_6, %c0_7] : memref<16x256xbf16, #tpu.memory_space<vmem>>, vector<16x256xbf16>
    tpu.vector_store %arg4[%c0_6, %c0_7], %8 {strides = array<i32>} : memref<16x256xbf16, #tpu.memory_space<vmem>>, vector<16x256xbf16>,
    return
  }
  func.func @transform_0(%arg0: i32) -> (i32, i32) {
    %c0_i32 = arith.constant 0 : i32
    %c0_i32_0 = arith.constant 0 : i32
    %c0_i32_1 = arith.constant 0 : i32
    return %c0_i32, %c0_i32_0 : i32, i32
  }
  func.func @transform_1(%arg0: i32) -> (i32, i32) {
    %c0_i32 = arith.constant 0 : i32
    %c0_i32_0 = arith.constant 0 : i32
    return %c0_i32, %arg0 : i32, i32
  }
  func.func @transform_2(%arg0: i32) -> (i32, i32) {
    %c0_i32 = arith.constant 0 : i32
    %c0_i32_0 = arith.constant 0 : i32
    %c0_i32_1 = arith.constant 0 : i32
    return %c0_i32, %c0_i32_0 : i32, i32
  }
  func.func @transform_3(%arg0: i32) -> (i32, i32) {
    %c0_i32 = arith.constant 0 : i32
    %c0_i32_0 = arith.constant 0 : i32
    return %c0_i32, %arg0 : i32, i32
  }
}

module attributes {stable_mosaic.version = 11 : i64} {
  func.func @kernel(%arg0: i32, %arg1: memref<16x144xbf16, #tpu.memory_space<vmem>>, %arg2: memref<144x256xbf16, #tpu.memory_space<vmem>>, %arg3: memref<16x1xf32, #tpu.memory_space<vmem>>, %arg4: memref<16x256xbf16, #tpu.memory_space<vmem>>, %arg5: memref<16x256xbf16, #tpu.memory_space<vmem>>) attributes {dimension_semantics = [#tpu.dimension_semantics<parallel>], iteration_bounds = array<i64: 2>, scalar_prefetch = 0 : i64, scratch_operands = 0 : i64, tpu.core_type = #tpu.core_type<tc>, window_params = [{pipeline_mode = #tpu.pipeline_mode<synchronous>, transform_indices = @transform_0, window_bounds = array<i64: 16, 144>}, {transform_indices = @transform_1, window_bounds = array<i64: 144, 256>}, {pipeline_mode = #tpu.pipeline_mode<synchronous>, transform_indices = @transform_2, window_bounds = array<i64: 16, 1>}, {transform_indices = @transform_3, window_bounds = array<i64: 16, 256>}, {transform_indices = @transform_4, window_bounds = array<i64: 16, 256>}]} {
    %c0 = arith.constant 0 : index
    %c0_0 = arith.constant 0 : index
    %0 = vector.load %arg1[%c0, %c0_0] : memref<16x144xbf16, #tpu.memory_space<vmem>>, vector<16x144xbf16>
    %c0_1 = arith.constant 0 : index
    %c0_2 = arith.constant 0 : index
    %1 = vector.load %arg2[%c0_1, %c0_2] : memref<144x256xbf16, #tpu.memory_space<vmem>>, vector<144x256xbf16>
    %cst = arith.constant dense<0.000000e+00> : vector<16x256xf32>
    %2 = tpu.matmul %0, %1, %cst {dimension_numbers = #tpu.dot_dimension_numbers<[1], [0], [0], [1], [0, 0, 1, 1], [], []>} : vector<16x144xbf16>, vector<144x256xbf16>, vector<16x256xf32> -> vector<16x256xf32>
    %c0_3 = arith.constant 0 : index
    %c0_4 = arith.constant 0 : index
    %3 = vector.load %arg3[%c0_3, %c0_4] : memref<16x1xf32, #tpu.memory_space<vmem>>, vector<16x1xf32>
    %4 = vector.broadcast %3 : vector<16x1xf32> to vector<16x256xf32>
    %5 = arith.addf %2, %4 : vector<16x256xf32>
    %c0_5 = arith.constant 0 : index
    %c0_6 = arith.constant 0 : index
    %6 = vector.load %arg4[%c0_5, %c0_6] : memref<16x256xbf16, #tpu.memory_space<vmem>>, vector<16x256xbf16>
    %7 = arith.extf %6 : vector<16x256xbf16> to vector<16x256xf32>
    %8 = arith.addf %5, %7 : vector<16x256xf32>
    %cst_7 = arith.constant 0.000000e+00 : f32
    %9 = vector.broadcast %cst_7 : f32 to vector<16x256xf32>
    %10 = arith.maximumf %8, %9 : vector<16x256xf32>
    %11 = arith.truncf %10 : vector<16x256xf32> to vector<16x256xbf16>
    %c0_8 = arith.constant 0 : index
    %c0_9 = arith.constant 0 : index
    %12 = vector.load %arg5[%c0_8, %c0_9] : memref<16x256xbf16, #tpu.memory_space<vmem>>, vector<16x256xbf16>
    tpu.vector_store %arg5[%c0_8, %c0_9], %11 {strides = array<i32>} : memref<16x256xbf16, #tpu.memory_space<vmem>>, vector<16x256xbf16>,
    return
  }
  func.func @transform_0(%arg0: i32) -> (i32, i32) {
    %c0_i32 = arith.constant 0 : i32
    %c0_i32_0 = arith.constant 0 : i32
    %c0_i32_1 = arith.constant 0 : i32
    return %c0_i32, %c0_i32_0 : i32, i32
  }
  func.func @transform_1(%arg0: i32) -> (i32, i32) {
    %c0_i32 = arith.constant 0 : i32
    %c0_i32_0 = arith.constant 0 : i32
    return %c0_i32, %arg0 : i32, i32
  }
  func.func @transform_2(%arg0: i32) -> (i32, i32) {
    %c0_i32 = arith.constant 0 : i32
    %c0_i32_0 = arith.constant 0 : i32
    %c0_i32_1 = arith.constant 0 : i32
    return %c0_i32, %c0_i32_0 : i32, i32
  }
  func.func @transform_3(%arg0: i32) -> (i32, i32) {
    %c0_i32 = arith.constant 0 : i32
    %c0_i32_0 = arith.constant 0 : i32
    return %c0_i32, %arg0 : i32, i32
  }
  func.func @transform_4(%arg0: i32) -> (i32, i32) {
    %c0_i32 = arith.constant 0 : i32
    %c0_i32_0 = arith.constant 0 : i32
    return %c0_i32, %arg0 : i32, i32
  }
}

module attributes {stable_mosaic.version = 11 : i64} {
  func.func @kernel(%arg0: i32, %arg1: memref<32x144xbf16, #tpu.memory_space<vmem>>, %arg2: memref<144x128xbf16, #tpu.memory_space<vmem>>, %arg3: memref<32x1xf32, #tpu.memory_space<vmem>>, %arg4: memref<32x128xbf16, #tpu.memory_space<vmem>>) attributes {dimension_semantics = [#tpu.dimension_semantics<parallel>], iteration_bounds = array<i64: 1>, scalar_prefetch = 0 : i64, scratch_operands = 0 : i64, tpu.core_type = #tpu.core_type<tc>, window_params = [{pipeline_mode = #tpu.pipeline_mode<synchronous>, transform_indices = @transform_0, window_bounds = array<i64: 32, 144>}, {transform_indices = @transform_1, window_bounds = array<i64: 144, 128>}, {pipeline_mode = #tpu.pipeline_mode<synchronous>, transform_indices = @transform_2, window_bounds = array<i64: 32, 1>}, {transform_indices = @transform_3, window_bounds = array<i64: 32, 128>}]} {
    %c0 = arith.constant 0 : index
    %c0_0 = arith.constant 0 : index
    %0 = vector.load %arg1[%c0, %c0_0] : memref<32x144xbf16, #tpu.memory_space<vmem>>, vector<32x144xbf16>
    %c0_1 = arith.constant 0 : index
    %c0_2 = arith.constant 0 : index
    %1 = vector.load %arg2[%c0_1, %c0_2] : memref<144x128xbf16, #tpu.memory_space<vmem>>, vector<144x128xbf16>
    %cst = arith.constant dense<0.000000e+00> : vector<32x128xf32>
    %2 = tpu.matmul %0, %1, %cst {dimension_numbers = #tpu.dot_dimension_numbers<[1], [0], [0], [1], [0, 0, 1, 1], [], []>} : vector<32x144xbf16>, vector<144x128xbf16>, vector<32x128xf32> -> vector<32x128xf32>
    %c0_3 = arith.constant 0 : index
    %c0_4 = arith.constant 0 : index
    %3 = vector.load %arg3[%c0_3, %c0_4] : memref<32x1xf32, #tpu.memory_space<vmem>>, vector<32x1xf32>
    %4 = vector.broadcast %3 : vector<32x1xf32> to vector<32x128xf32>
    %5 = arith.addf %2, %4 : vector<32x128xf32>
    %cst_5 = arith.constant 0.000000e+00 : f32
    %6 = vector.broadcast %cst_5 : f32 to vector<32x128xf32>
    %7 = arith.maximumf %5, %6 : vector<32x128xf32>
    %8 = arith.truncf %7 : vector<32x128xf32> to vector<32x128xbf16>
    %c0_6 = arith.constant 0 : index
    %c0_7 = arith.constant 0 : index
    %9 = vector.load %arg4[%c0_6, %c0_7] : memref<32x128xbf16, #tpu.memory_space<vmem>>, vector<32x128xbf16>
    tpu.vector_store %arg4[%c0_6, %c0_7], %8 {strides = array<i32>} : memref<32x128xbf16, #tpu.memory_space<vmem>>, vector<32x128xbf16>,
    return
  }
  func.func @transform_0(%arg0: i32) -> (i32, i32) {
    %c0_i32 = arith.constant 0 : i32
    %c0_i32_0 = arith.constant 0 : i32
    %c0_i32_1 = arith.constant 0 : i32
    return %c0_i32, %c0_i32_0 : i32, i32
  }
  func.func @transform_1(%arg0: i32) -> (i32, i32) {
    %c0_i32 = arith.constant 0 : i32
    %c0_i32_0 = arith.constant 0 : i32
    return %c0_i32, %arg0 : i32, i32
  }
  func.func @transform_2(%arg0: i32) -> (i32, i32) {
    %c0_i32 = arith.constant 0 : i32
    %c0_i32_0 = arith.constant 0 : i32
    %c0_i32_1 = arith.constant 0 : i32
    return %c0_i32, %c0_i32_0 : i32, i32
  }
  func.func @transform_3(%arg0: i32) -> (i32, i32) {
    %c0_i32 = arith.constant 0 : i32
    %c0_i32_0 = arith.constant 0 : i32
    return %c0_i32, %arg0 : i32, i32
  }
}

module attributes {stable_mosaic.version = 11 : i64} {
  func.func @kernel(%arg0: i32, %arg1: memref<32x288xbf16, #tpu.memory_space<vmem>>, %arg2: memref<288x128xbf16, #tpu.memory_space<vmem>>, %arg3: memref<32x1xf32, #tpu.memory_space<vmem>>, %arg4: memref<32x128xbf16, #tpu.memory_space<vmem>>, %arg5: memref<32x128xbf16, #tpu.memory_space<vmem>>) attributes {dimension_semantics = [#tpu.dimension_semantics<parallel>], iteration_bounds = array<i64: 1>, scalar_prefetch = 0 : i64, scratch_operands = 0 : i64, tpu.core_type = #tpu.core_type<tc>, window_params = [{pipeline_mode = #tpu.pipeline_mode<synchronous>, transform_indices = @transform_0, window_bounds = array<i64: 32, 288>}, {transform_indices = @transform_1, window_bounds = array<i64: 288, 128>}, {pipeline_mode = #tpu.pipeline_mode<synchronous>, transform_indices = @transform_2, window_bounds = array<i64: 32, 1>}, {transform_indices = @transform_3, window_bounds = array<i64: 32, 128>}, {transform_indices = @transform_4, window_bounds = array<i64: 32, 128>}]} {
    %c0 = arith.constant 0 : index
    %c0_0 = arith.constant 0 : index
    %0 = vector.load %arg1[%c0, %c0_0] : memref<32x288xbf16, #tpu.memory_space<vmem>>, vector<32x288xbf16>
    %c0_1 = arith.constant 0 : index
    %c0_2 = arith.constant 0 : index
    %1 = vector.load %arg2[%c0_1, %c0_2] : memref<288x128xbf16, #tpu.memory_space<vmem>>, vector<288x128xbf16>
    %cst = arith.constant dense<0.000000e+00> : vector<32x128xf32>
    %2 = tpu.matmul %0, %1, %cst {dimension_numbers = #tpu.dot_dimension_numbers<[1], [0], [0], [1], [0, 0, 1, 1], [], []>} : vector<32x288xbf16>, vector<288x128xbf16>, vector<32x128xf32> -> vector<32x128xf32>
    %c0_3 = arith.constant 0 : index
    %c0_4 = arith.constant 0 : index
    %3 = vector.load %arg3[%c0_3, %c0_4] : memref<32x1xf32, #tpu.memory_space<vmem>>, vector<32x1xf32>
    %4 = vector.broadcast %3 : vector<32x1xf32> to vector<32x128xf32>
    %5 = arith.addf %2, %4 : vector<32x128xf32>
    %c0_5 = arith.constant 0 : index
    %c0_6 = arith.constant 0 : index
    %6 = vector.load %arg4[%c0_5, %c0_6] : memref<32x128xbf16, #tpu.memory_space<vmem>>, vector<32x128xbf16>
    %7 = arith.extf %6 : vector<32x128xbf16> to vector<32x128xf32>
    %8 = arith.addf %5, %7 : vector<32x128xf32>
    %cst_7 = arith.constant 0.000000e+00 : f32
    %9 = vector.broadcast %cst_7 : f32 to vector<32x128xf32>
    %10 = arith.maximumf %8, %9 : vector<32x128xf32>
    %11 = arith.truncf %10 : vector<32x128xf32> to vector<32x128xbf16>
    %c0_8 = arith.constant 0 : index
    %c0_9 = arith.constant 0 : index
    %12 = vector.load %arg5[%c0_8, %c0_9] : memref<32x128xbf16, #tpu.memory_space<vmem>>, vector<32x128xbf16>
    tpu.vector_store %arg5[%c0_8, %c0_9], %11 {strides = array<i32>} : memref<32x128xbf16, #tpu.memory_space<vmem>>, vector<32x128xbf16>,
    return
  }
  func.func @transform_0(%arg0: i32) -> (i32, i32) {
    %c0_i32 = arith.constant 0 : i32
    %c0_i32_0 = arith.constant 0 : i32
    %c0_i32_1 = arith.constant 0 : i32
    return %c0_i32, %c0_i32_0 : i32, i32
  }
  func.func @transform_1(%arg0: i32) -> (i32, i32) {
    %c0_i32 = arith.constant 0 : i32
    %c0_i32_0 = arith.constant 0 : i32
    return %c0_i32, %arg0 : i32, i32
  }
  func.func @transform_2(%arg0: i32) -> (i32, i32) {
    %c0_i32 = arith.constant 0 : i32
    %c0_i32_0 = arith.constant 0 : i32
    %c0_i32_1 = arith.constant 0 : i32
    return %c0_i32, %c0_i32_0 : i32, i32
  }
  func.func @transform_3(%arg0: i32) -> (i32, i32) {
    %c0_i32 = arith.constant 0 : i32
    %c0_i32_0 = arith.constant 0 : i32
    return %c0_i32, %arg0 : i32, i32
  }
  func.func @transform_4(%arg0: i32) -> (i32, i32) {
    %c0_i32 = arith.constant 0 : i32
    %c0_i32_0 = arith.constant 0 : i32
    return %c0_i32, %arg0 : i32, i32
  }
}

module attributes {stable_mosaic.version = 11 : i64} {
  func.func @kernel(%arg0: i32, %arg1: memref<64x288xbf16, #tpu.memory_space<vmem>>, %arg2: memref<288x32xbf16, #tpu.memory_space<vmem>>, %arg3: memref<64x1xf32, #tpu.memory_space<vmem>>, %arg4: memref<64x32xbf16, #tpu.memory_space<vmem>>) attributes {dimension_semantics = [#tpu.dimension_semantics<parallel>], iteration_bounds = array<i64: 1>, scalar_prefetch = 0 : i64, scratch_operands = 0 : i64, tpu.core_type = #tpu.core_type<tc>, window_params = [{pipeline_mode = #tpu.pipeline_mode<synchronous>, transform_indices = @transform_0, window_bounds = array<i64: 64, 288>}, {transform_indices = @transform_1, window_bounds = array<i64: 288, 32>}, {pipeline_mode = #tpu.pipeline_mode<synchronous>, transform_indices = @transform_2, window_bounds = array<i64: 64, 1>}, {transform_indices = @transform_3, window_bounds = array<i64: 64, 32>}]} {
    %c0 = arith.constant 0 : index
    %c0_0 = arith.constant 0 : index
    %0 = vector.load %arg1[%c0, %c0_0] : memref<64x288xbf16, #tpu.memory_space<vmem>>, vector<64x288xbf16>
    %c0_1 = arith.constant 0 : index
    %c0_2 = arith.constant 0 : index
    %1 = vector.load %arg2[%c0_1, %c0_2] : memref<288x32xbf16, #tpu.memory_space<vmem>>, vector<288x32xbf16>
    %cst = arith.constant dense<0.000000e+00> : vector<64x32xf32>
    %2 = tpu.matmul %0, %1, %cst {dimension_numbers = #tpu.dot_dimension_numbers<[1], [0], [0], [1], [0, 0, 1, 1], [], []>} : vector<64x288xbf16>, vector<288x32xbf16>, vector<64x32xf32> -> vector<64x32xf32>
    %c0_3 = arith.constant 0 : index
    %c0_4 = arith.constant 0 : index
    %3 = vector.load %arg3[%c0_3, %c0_4] : memref<64x1xf32, #tpu.memory_space<vmem>>, vector<64x1xf32>
    %4 = vector.broadcast %3 : vector<64x1xf32> to vector<64x32xf32>
    %5 = arith.addf %2, %4 : vector<64x32xf32>
    %cst_5 = arith.constant 0.000000e+00 : f32
    %6 = vector.broadcast %cst_5 : f32 to vector<64x32xf32>
    %7 = arith.maximumf %5, %6 : vector<64x32xf32>
    %8 = arith.truncf %7 : vector<64x32xf32> to vector<64x32xbf16>
    %c0_6 = arith.constant 0 : index
    %c0_7 = arith.constant 0 : index
    %9 = vector.load %arg4[%c0_6, %c0_7] : memref<64x32xbf16, #tpu.memory_space<vmem>>, vector<64x32xbf16>
    tpu.vector_store %arg4[%c0_6, %c0_7], %8 {strides = array<i32>} : memref<64x32xbf16, #tpu.memory_space<vmem>>, vector<64x32xbf16>,
    return
  }
  func.func @transform_0(%arg0: i32) -> (i32, i32) {
    %c0_i32 = arith.constant 0 : i32
    %c0_i32_0 = arith.constant 0 : i32
    %c0_i32_1 = arith.constant 0 : i32
    return %c0_i32, %c0_i32_0 : i32, i32
  }
  func.func @transform_1(%arg0: i32) -> (i32, i32) {
    %c0_i32 = arith.constant 0 : i32
    %c0_i32_0 = arith.constant 0 : i32
    return %c0_i32, %arg0 : i32, i32
  }
  func.func @transform_2(%arg0: i32) -> (i32, i32) {
    %c0_i32 = arith.constant 0 : i32
    %c0_i32_0 = arith.constant 0 : i32
    %c0_i32_1 = arith.constant 0 : i32
    return %c0_i32, %c0_i32_0 : i32, i32
  }
  func.func @transform_3(%arg0: i32) -> (i32, i32) {
    %c0_i32 = arith.constant 0 : i32
    %c0_i32_0 = arith.constant 0 : i32
    return %c0_i32, %arg0 : i32, i32
  }
}

module attributes {stable_mosaic.version = 11 : i64} {
  func.func @kernel(%arg0: i32, %arg1: memref<64x576xbf16, #tpu.memory_space<vmem>>, %arg2: memref<576x32xbf16, #tpu.memory_space<vmem>>, %arg3: memref<64x1xf32, #tpu.memory_space<vmem>>, %arg4: memref<64x32xbf16, #tpu.memory_space<vmem>>, %arg5: memref<64x32xbf16, #tpu.memory_space<vmem>>) attributes {dimension_semantics = [#tpu.dimension_semantics<parallel>], iteration_bounds = array<i64: 1>, scalar_prefetch = 0 : i64, scratch_operands = 0 : i64, tpu.core_type = #tpu.core_type<tc>, window_params = [{pipeline_mode = #tpu.pipeline_mode<synchronous>, transform_indices = @transform_0, window_bounds = array<i64: 64, 576>}, {transform_indices = @transform_1, window_bounds = array<i64: 576, 32>}, {pipeline_mode = #tpu.pipeline_mode<synchronous>, transform_indices = @transform_2, window_bounds = array<i64: 64, 1>}, {transform_indices = @transform_3, window_bounds = array<i64: 64, 32>}, {transform_indices = @transform_4, window_bounds = array<i64: 64, 32>}]} {
    %c0 = arith.constant 0 : index
    %c0_0 = arith.constant 0 : index
    %0 = vector.load %arg1[%c0, %c0_0] : memref<64x576xbf16, #tpu.memory_space<vmem>>, vector<64x576xbf16>
    %c0_1 = arith.constant 0 : index
    %c0_2 = arith.constant 0 : index
    %1 = vector.load %arg2[%c0_1, %c0_2] : memref<576x32xbf16, #tpu.memory_space<vmem>>, vector<576x32xbf16>
    %cst = arith.constant dense<0.000000e+00> : vector<64x32xf32>
    %2 = tpu.matmul %0, %1, %cst {dimension_numbers = #tpu.dot_dimension_numbers<[1], [0], [0], [1], [0, 0, 1, 1], [], []>} : vector<64x576xbf16>, vector<576x32xbf16>, vector<64x32xf32> -> vector<64x32xf32>
    %c0_3 = arith.constant 0 : index
    %c0_4 = arith.constant 0 : index
    %3 = vector.load %arg3[%c0_3, %c0_4] : memref<64x1xf32, #tpu.memory_space<vmem>>, vector<64x1xf32>
    %4 = vector.broadcast %3 : vector<64x1xf32> to vector<64x32xf32>
    %5 = arith.addf %2, %4 : vector<64x32xf32>
    %c0_5 = arith.constant 0 : index
    %c0_6 = arith.constant 0 : index
    %6 = vector.load %arg4[%c0_5, %c0_6] : memref<64x32xbf16, #tpu.memory_space<vmem>>, vector<64x32xbf16>
    %7 = arith.extf %6 : vector<64x32xbf16> to vector<64x32xf32>
    %8 = arith.addf %5, %7 : vector<64x32xf32>
    %cst_7 = arith.constant 0.000000e+00 : f32
    %9 = vector.broadcast %cst_7 : f32 to vector<64x32xf32>
    %10 = arith.maximumf %8, %9 : vector<64x32xf32>
    %11 = arith.truncf %10 : vector<64x32xf32> to vector<64x32xbf16>
    %c0_8 = arith.constant 0 : index
    %c0_9 = arith.constant 0 : index
    %12 = vector.load %arg5[%c0_8, %c0_9] : memref<64x32xbf16, #tpu.memory_space<vmem>>, vector<64x32xbf16>
    tpu.vector_store %arg5[%c0_8, %c0_9], %11 {strides = array<i32>} : memref<64x32xbf16, #tpu.memory_space<vmem>>, vector<64x32xbf16>,
    return
  }
  func.func @transform_0(%arg0: i32) -> (i32, i32) {
    %c0_i32 = arith.constant 0 : i32
    %c0_i32_0 = arith.constant 0 : i32
    %c0_i32_1 = arith.constant 0 : i32
    return %c0_i32, %c0_i32_0 : i32, i32
  }
  func.func @transform_1(%arg0: i32) -> (i32, i32) {
    %c0_i32 = arith.constant 0 : i32
    %c0_i32_0 = arith.constant 0 : i32
    return %c0_i32, %arg0 : i32, i32
  }
  func.func @transform_2(%arg0: i32) -> (i32, i32) {
    %c0_i32 = arith.constant 0 : i32
    %c0_i32_0 = arith.constant 0 : i32
    %c0_i32_1 = arith.constant 0 : i32
    return %c0_i32, %c0_i32_0 : i32, i32
  }
  func.func @transform_3(%arg0: i32) -> (i32, i32) {
    %c0_i32 = arith.constant 0 : i32
    %c0_i32_0 = arith.constant 0 : i32
    return %c0_i32, %arg0 : i32, i32
  }
  func.func @transform_4(%arg0: i32) -> (i32, i32) {
    %c0_i32 = arith.constant 0 : i32
    %c0_i32_0 = arith.constant 0 : i32
    return %c0_i32, %arg0 : i32, i32
  }
}

module attributes {stable_mosaic.version = 11 : i64} {
  func.func @_head_kernel(%arg0: i32, %arg1: memref<64x2x16xbf16, #tpu.memory_space<vmem>>, %arg2: memref<10x64xf32, #tpu.memory_space<vmem>>, %arg3: memref<10x1xf32, #tpu.memory_space<vmem>>, %arg4: memref<10x2xf32, #tpu.memory_space<vmem>>) attributes {dimension_semantics = [#tpu.dimension_semantics<arbitrary>], iteration_bounds = array<i64: 1>, scalar_prefetch = 0 : i64, scratch_operands = 0 : i64, tpu.core_type = #tpu.core_type<tc>, window_params = [{pipeline_mode = #tpu.pipeline_mode<synchronous>, transform_indices = @transform_0, window_bounds = array<i64: 64, 2, 16>}, {pipeline_mode = #tpu.pipeline_mode<synchronous>, transform_indices = @transform_1, window_bounds = array<i64: 10, 64>}, {pipeline_mode = #tpu.pipeline_mode<synchronous>, transform_indices = @transform_2, window_bounds = array<i64: 10, 1>}, {pipeline_mode = #tpu.pipeline_mode<synchronous>, transform_indices = @transform_3, window_bounds = array<i64: 10, 2>}]} {
    %c0 = arith.constant 0 : index
    %c0_0 = arith.constant 0 : index
    %c0_1 = arith.constant 0 : index
    %0 = vector.load %arg1[%c0, %c0_0, %c0_1] : memref<64x2x16xbf16, #tpu.memory_space<vmem>>, vector<64x2x16xbf16>
    %1 = arith.extf %0 : vector<64x2x16xbf16> to vector<64x2x16xf32>
    %cst = arith.constant dense<0.000000e+00> : vector<64x2xf32>
    %2 = vector.multi_reduction <add>, %1, %cst [2] : vector<64x2x16xf32> to vector<64x2xf32>
    %cst_2 = arith.constant 6.250000e-02 : f32
    %3 = vector.broadcast %cst_2 : f32 to vector<64x2xf32>
    %4 = arith.mulf %2, %3 : vector<64x2xf32>
    %c0_3 = arith.constant 0 : index
    %c0_4 = arith.constant 0 : index
    %5 = vector.load %arg2[%c0_3, %c0_4] : memref<10x64xf32, #tpu.memory_space<vmem>>, vector<10x64xf32>
    %cst_5 = arith.constant dense<0.000000e+00> : vector<10x2xf32>
    %6 = tpu.matmul %5, %4, %cst_5 {dimension_numbers = #tpu.dot_dimension_numbers<[1], [0], [0], [1], [0, 0, 1, 1], [], []>} : vector<10x64xf32>, vector<64x2xf32>, vector<10x2xf32> -> vector<10x2xf32>
    %c0_6 = arith.constant 0 : index
    %c0_7 = arith.constant 0 : index
    %7 = vector.load %arg3[%c0_6, %c0_7] : memref<10x1xf32, #tpu.memory_space<vmem>>, vector<10x1xf32>
    %8 = vector.broadcast %7 : vector<10x1xf32> to vector<10x2xf32>
    %9 = arith.addf %6, %8 : vector<10x2xf32>
    %c0_8 = arith.constant 0 : index
    %c0_9 = arith.constant 0 : index
    %10 = vector.load %arg4[%c0_8, %c0_9] : memref<10x2xf32, #tpu.memory_space<vmem>>, vector<10x2xf32>
    tpu.vector_store %arg4[%c0_8, %c0_9], %9 {strides = array<i32>} : memref<10x2xf32, #tpu.memory_space<vmem>>, vector<10x2xf32>,
    return
  }
  func.func @transform_0(%arg0: i32) -> (i32, i32, i32) {
    %c0_i32 = arith.constant 0 : i32
    %c0_i32_0 = arith.constant 0 : i32
    %c0_i32_1 = arith.constant 0 : i32
    %c0_i32_2 = arith.constant 0 : i32
    return %c0_i32, %c0_i32_0, %c0_i32_1 : i32, i32, i32
  }
  func.func @transform_1(%arg0: i32) -> (i32, i32) {
    %c0_i32 = arith.constant 0 : i32
    %c0_i32_0 = arith.constant 0 : i32
    %c0_i32_1 = arith.constant 0 : i32
    return %c0_i32, %c0_i32_0 : i32, i32
  }
  func.func @transform_2(%arg0: i32) -> (i32, i32) {
    %c0_i32 = arith.constant 0 : i32
    %c0_i32_0 = arith.constant 0 : i32
    %c0_i32_1 = arith.constant 0 : i32
    return %c0_i32, %c0_i32_0 : i32, i32
  }
  func.func @transform_3(%arg0: i32) -> (i32, i32) {
    %c0_i32 = arith.constant 0 : i32
    %c0_i32_0 = arith.constant 0 : i32
    %c0_i32_1 = arith.constant 0 : i32
    return %c0_i32, %c0_i32_0 : i32, i32
  }
}

</mosaic_0001>

<bundles_post_ra>
// kernel: resnet_forward.8
= control target key start
LH: loop header
LB: loop body
LE: loop exit
PB: predicated region body
PF: predicated region fallthrough
CT: control target
= control target key end

     0   :  { %s527_s12 = smov 0   ;;  %s529_s13 = smov 0   ;;  %s600_s0 = inlined_call_operand.vmem [shape: bf16[16,27], index: 0, kind: input, shape index: {}]   ;;  %s601_s1 = inlined_call_operand.vmem [shape: bf16[27,512], index: 1, kind: input, shape index: {}]   ;;  %s602_s2 = inlined_call_operand.vmem [shape: f32[16,1], index: 2, kind: input, shape index: {}]   ;;  %s603_s3 = inlined_call_operand.vmem [shape: bf16[16,512], index: 3, kind: output, shape index: {}]  }
   0x1   :  { %s531_s14 = smov 0  }
   0x2 LB: > { %s410_s15 = sadd.s32 4294967295, %s503_s14   ;;  %s544_s16 = sadd.s32 1, %s503_s14   ;;  %s503_s14 = sphi %s531_s14, %s607_s14   ;;  %s499_s13 = sphi %s529_s13, %s606_s13   ;;  %s495_s12 = sphi %s527_s12, %s605_s12  }
   0x3   : > { %s38_s17 = ssub.s32 %s503_s14, %s544_s16  ;;  %s41_s18 = sadd.s32 1, %s499_s13 }
   0x4   : > { %p39_p0 = scmp.eq.s32.totalorder %s38_s17, 0  ;;  %p48_p1 = scmp.ne.s32.totalorder %s499_s13, %s495_s12 }
   0x5   : > { %p49_p2 = scmp.eq.s32.totalorder %s503_s14, 0  ;;  %p99_p3 = scmp.eq.s32.totalorder %s410_s15, 1 }
   0x6   : > { %s555_s19 = scalar_select %p39_p0, %s499_s13, %s41_s18  }
   0x7   : > { %p50_p4 = por %p49_p2, %p48_p1  ;;  %p557_p5 = por %p99_p3, %p48_p1 }
   0x8   : > { %p413_p6 = scmp.ge.s32.totalorder %s503_s14, 2 }
   0xa   : > { %127 = sbr.rel (%p413_p6) target bundleno = 23 (0x17), region = 24 }
   0xf   : > { %130 = sbr.rel (!%p50_p4) target bundleno = 23 (0x17), region = 28  ;;  %s132_s21 = sand.u32 (%p50_p4), 1, %s499_s13  }
  0x10   : > { %s447_s22 = sshll.u32 (%p50_p4), %s503_s14, 3  ;;  %s414_s23 = sshll.u32 (%p50_p4), %s132_s21, 5 }
  0x11   : > { %s137_s26 = scalar_lea.vmem (%p50_p4), %s601_s1, %s447_s22  ;;  %s134_s27 = scalar_lea.vmem (%p50_p4), [#allocation2], %s414_s23 }
  0x12   : > { %v172_v0 = vld [vmem:[%s137_s26] sm:$0xff] (%p50_p4)  ;;  %v174_v1 = vld [vmem:[%s137_s26 + $0x10] sm:$0xff] (%p50_p4) }
  0x13   : > { %v176_v2 = vld [vmem:[%s137_s26 + $0x20] sm:$0xff] (%p50_p4)  ;;  %173 = vst [vmem:[%s134_s27] sm:$0xff] (%p50_p4), %v172_v0  ;;  %v178_v3 = vld [vmem:[%s137_s26 + $0x30] sm:$0xff] (%p50_p4) }
  0x14   : > { %175 = vst [vmem:[%s134_s27 + $0x8] sm:$0xff] %v174_v1 }
  0x15   : > { %177 = vst [vmem:[%s134_s27 + $0x10] sm:$0xff] %v176_v2 }
  0x16   : > { %179 = vst [vmem:[%s134_s27 + $0x18] sm:$0xff] %v178_v3 }
  0x17 PF: > { %p417_p7 = scmp.ge.s32.totalorder %s503_s14, 1  ;;  %p184_p8 = scmp.lt.s32.totalorder %s503_s14, 3 }
  0x19   : > { %p185_p9 = pnand %p417_p7, %p184_p8 }
  0x1a   : > { %s191_s28 = sand.u32 (!%p185_p9), 1, %s495_s12  }
  0x1b   : > { %188 = sbr.rel (%p185_p9) target bundleno = 195 (0xc3), region = 66  ;;  %s418_s29 = sshll.u32 (!%p185_p9), %s191_s28, 5 }
  0x1c   : > { %s193_s5 = scalar_lea.vmem (!%p185_p9), [#allocation2], %s418_s29  ;;  %s419_s10 = sshll.u32 (!%p185_p9), %s191_s28, 4 }
  0x1d   : > { %s212_s11 = scalar_lea.vmem (!%p185_p9), [#allocation3], %s419_s10 }
  0x20   : > { %vm261_vm0 = vcmask 1044480   ;;  %vm262_vm1 = vcmask 1045504   ;;  %v505_v4 = vmov 65535   ;;  %v222_v6 = vld [vmem:[%s602_s2] sm:$0xff]  ;;  %v506_v8 = vmov 0   ;;  %v223_v22 = vld [vmem:[%s602_s2 + $0x8] sm:$0xff] }
  0x21   : > { %v263_v5 = vsel %vm261_vm0, 4294967295, %v505_v4  ;;  %480 = vset.pattern.permute.xlu0 %v506_v8  ;;  %v434_v9 = vld [vmem:[%s193_s5 + $0x10] sm:$0xf]  ;;  %v452_v10 = vld [vmem:[%s193_s5 + $0x14] sm:$0x30]  ;;  %v448_v24 = vld [vmem:[%s600_s0] sm:$0xff] }
  0x22   : > { %v264_v7 = vsel %vm262_vm1, %v263_v5, 0  ;;  %v451_v11 = vld [vmem:[%s193_s5 + $0x14] sm:$0xf]  ;;  %226 = vperm.xlu0 %480, %v222_v6   ;;  %v435_v12 = vor.u32 %v452_v10, %v434_v9  ;;  %v436_v13 = vld [vmem:[%s193_s5 + $0x18] sm:$0x30]  ;;  %vm257_vm2 = vcmask 220160  }
  0x23   : > { %v439_v14 = vor.u32 %v451_v11, %v436_v13  ;;  %v426_v15 = vld [vmem:[%s193_s5] sm:$0xf]  ;;  %v450_v16 = vld [vmem:[%s193_s5 + $0x4] sm:$0xf0]  ;;  %v449_v18 = vld [vmem:[%s193_s5 + $0x4] sm:$0xf] }
  0x24   : > { %v266_v17 = vand.u32 %v435_v12, %v264_v7  ;;  %v428_v19 = vld [vmem:[%s193_s5 + $0x8] sm:$0xf0]  ;;  %v427_v21 = vor.u32 %v450_v16, %v426_v15  ;;  %s453_s12 = sshll.u32 (%p557_p5), %s410_s15, 3 }
  0x25   : > { %v269_v20 = vand.u32 %v439_v14, %v264_v7  ;;  %v431_v23 = vor.u32 %v449_v18, %v428_v19  ;;  %s316_s21 = scalar_lea.vmem (%p557_p5), %s603_s3, %s453_s12 }
  0x26   : > { %277 = vmatpush.bf16.msra.mxu0 %v266_v17 }
  0x27   : > { %291 = vmatpush.bf16.msra.mxu1 %v269_v20 }
  0x2a   : > { %231 = vperm.xlu0 %480, %v223_v22   ;;  %278 = vmatpush.bf16.msra.mxu0 %v427_v21 }
  0x2b   : > { %292 = vmatpush.bf16.msra.mxu1 %v431_v23 }
  0x2d   : > { %440 = vmatmul.msk.bf16.vlgmr.msra.gmra.mxu0 %vm257_vm2, %v448_v24 }
  0x2e   : > { %441 = vmatmul.msk.bf16.vlgmr.msra.gmra.mxu1 %vm257_vm2, %v448_v24 }
  0x94   : > { %v227_v25 = vpop.permute.xlu0 %226 }
  0x9c   : > { %v232_v33 = vpop.permute.xlu0 %231 }
  0xaa   : > { %v280_v26 = vpop.f32.mrf.mxu0 }
  0xab   : > { %v281_v27 = vadd.f32 %v280_v26, %v227_v25  ;;  %v294_v28 = vpop.f32.mrf.mxu1 }
  0xac   : > { %v295_v29 = vadd.f32 %v294_v28, %v227_v25 }
  0xad   : > { %v299_v30 = vmax.f32 %v281_v27, 0.0 }
  0xae   : > { %v300_v31 = vmax.f32 %v295_v29, 0.0 }
  0xb0   : > { %v303_v32 = vpack.c.bf16 %v300_v31, %v299_v30 }
  0xb2   : > { %305 = vst [vmem:[%s212_s11] sm:$0xff] %v303_v32  ;;  %v282_v34 = vpop.f32.mrf.mxu0 }
  0xb3   : > { %v283_v35 = vadd.f32 %v282_v34, %v232_v33  ;;  %v296_v36 = vpop.f32.mrf.mxu1 }
  0xb4   : > { %v297_v37 = vadd.f32 %v296_v36, %v232_v33 }
  0xb5   : > { %v301_v38 = vmax.f32 %v283_v35, 0.0 }
  0xb6   : > { %v302_v39 = vmax.f32 %v297_v37, 0.0  ;;  %313 = sbr.rel (!%p557_p5) target bundleno = 195 (0xc3), region = 74 }
  0xb8   : > { %v304_v40 = vpack.c.bf16 %v302_v39, %v301_v38 }
  0xb9   : > { %v347_v41 = vld [vmem:[%s212_s11] sm:$0xff] (%p557_p5) }
  0xba   : > { %306 = vst [vmem:[%s212_s11 + $0x8] sm:$0xff] %v304_v40 }
  0xbb   : > { %348 = vst [vmem:[%s316_s21] sm:$0xff] %v347_v41 }
  0xc1   : > { %v349_v42 = vld [vmem:[%s212_s11 + $0x8] sm:$0xff] }
  0xc2   : > { %350 = vst [vmem:[%s316_s21 + $0x10] sm:$0xff] %v349_v42 }
  0xc3 PF: > { %p10_p10 = scmp.ge.s32.totalorder %s544_s16, 4   ;;  %s605_s12 = smov %s499_s13 }
  0xc4   : > { %s606_s13 = smov %s555_s19  ;;  %s607_s14 = smov %s544_s16 }
  0xc5   :  { %12 = sbr.rel (!%p10_p10) target bundleno = 2 (0x2), region = 143 }

// kernel: resnet_forward.9
= control target key start
LH: loop header
LB: loop body
LE: loop exit
PB: predicated region body
PF: predicated region fallthrough
CT: control target
= control target key end

     0   :  { %s764_s12 = smov 0   ;;  %s766_s13 = smov 0   ;;  %s926_s0 = inlined_call_operand.vmem [shape: bf16[16,144], index: 0, kind: input, shape index: {}]   ;;  %s927_s1 = inlined_call_operand.vmem [shape: bf16[144,512], index: 1, kind: input, shape index: {}]   ;;  %s928_s2 = inlined_call_operand.vmem [shape: f32[16,1], index: 2, kind: input, shape index: {}]   ;;  %s929_s3 = inlined_call_operand.vmem [shape: bf16[16,512], index: 3, kind: output, shape index: {}]  }
   0x1   :  { %s768_s14 = smov 0  }
   0x2 LB: > { %s574_s15 = sadd.s32 4294967295, %s741_s14   ;;  %s781_s16 = sadd.s32 1, %s741_s14   ;;  %s741_s14 = sphi %s768_s14, %s933_s14   ;;  %s737_s13 = sphi %s766_s13, %s932_s13   ;;  %s733_s12 = sphi %s764_s12, %s931_s12  }
   0x3   : > { %s38_s17 = ssub.s32 %s741_s14, %s781_s16  ;;  %s41_s18 = sadd.s32 1, %s737_s13 }
   0x4   : > { %p39_p0 = scmp.eq.s32.totalorder %s38_s17, 0  ;;  %p48_p1 = scmp.ne.s32.totalorder %s737_s13, %s733_s12 }
   0x5   : > { %p49_p2 = scmp.eq.s32.totalorder %s741_s14, 0  ;;  %p99_p3 = scmp.eq.s32.totalorder %s574_s15, 1 }
   0x6   : > { %s792_s19 = scalar_select %p39_p0, %s737_s13, %s41_s18  }
   0x7   : > { %p50_p4 = por %p49_p2, %p48_p1  ;;  %p794_p5 = por %p99_p3, %p48_p1 }
   0x8   : > { %p577_p6 = scmp.ge.s32.totalorder %s741_s14, 2 }
   0xa   : > { %127 = sbr.rel (%p577_p6) target bundleno = 37 (0x25), region = 24 }
   0xf   : > { %130 = sbr.rel (!%p50_p4) target bundleno = 37 (0x25), region = 28  ;;  %s132_s21 = sand.u32 (%p50_p4), 1, %s737_s13  }
  0x10   : > { %s669_s22 = sshll.u32 (%p50_p4), %s741_s14, 3  ;;  %s691_s23 = smul.u32 (%p50_p4), 144, %s132_s21 }
  0x11   : > { %s804_s26 = scalar_lea.vmem (%p50_p4), %s927_s1, %s669_s22 }
  0x12   : > { %v200_v0 = vld [vmem:[%s804_s26] sm:$0xff] (%p50_p4)  ;;  %v202_v1 = vld [vmem:[%s804_s26 + $0x10] sm:$0xff] (%p50_p4)  ;;  %s809_s27 = scalar_lea.vmem (%p50_p4), [#allocation2], %s691_s23 }
  0x13   : > { %v204_v2 = vld [vmem:[%s804_s26 + $0x20] sm:$0xff] (%p50_p4)  ;;  %201 = vst [vmem:[%s809_s27] sm:$0xff] (%p50_p4), %v200_v0  ;;  %v206_v3 = vld [vmem:[%s804_s26 + $0x30] sm:$0xff] (%p50_p4) }
  0x14   : > { %203 = vst [vmem:[%s809_s27 + $0x8] sm:$0xff] %v202_v1  ;;  %v208_v4 = vld [vmem:[%s804_s26 + $0x40] sm:$0xff]  ;;  %v210_v5 = vld [vmem:[%s804_s26 + $0x50] sm:$0xff] }
  0x15   : > { %205 = vst [vmem:[%s809_s27 + $0x10] sm:$0xff] %v204_v2  ;;  %v212_v6 = vld [vmem:[%s804_s26 + $0x60] sm:$0xff]  ;;  %v214_v7 = vld [vmem:[%s804_s26 + $0x70] sm:$0xff] }
  0x16   : > { %207 = vst [vmem:[%s809_s27 + $0x18] sm:$0xff] %v206_v3  ;;  %v216_v8 = vld [vmem:[%s804_s26 + $0x80] sm:$0xff]  ;;  %v218_v9 = vld [vmem:[%s804_s26 + $0x90] sm:$0xff] }
  0x17   : > { %209 = vst [vmem:[%s809_s27 + $0x20] sm:$0xff] %v208_v4  ;;  %v220_v10 = vld [vmem:[%s804_s26 + $0xa0] sm:$0xff]  ;;  %v222_v11 = vld [vmem:[%s804_s26 + $0xb0] sm:$0xff] }
  0x18   : > { %211 = vst [vmem:[%s809_s27 + $0x28] sm:$0xff] %v210_v5  ;;  %v224_v12 = vld [vmem:[%s804_s26 + $0xc0] sm:$0xff]  ;;  %v226_v13 = vld [vmem:[%s804_s26 + $0xd0] sm:$0xff] }
  0x19   : > { %213 = vst [vmem:[%s809_s27 + $0x30] sm:$0xff] %v212_v6  ;;  %v228_v14 = vld [vmem:[%s804_s26 + $0xe0] sm:$0xff]  ;;  %v230_v15 = vld [vmem:[%s804_s26 + $0xf0] sm:$0xff] }
  0x1a   : > { %215 = vst [vmem:[%s809_s27 + $0x38] sm:$0xff] %v214_v7  ;;  %v232_v16 = vld [vmem:[%s804_s26 + $0x100] sm:$0xff]  ;;  %v234_v17 = vld [vmem:[%s804_s26 + $0x110] sm:$0xff] }
  0x1b   : > { %217 = vst [vmem:[%s809_s27 + $0x40] sm:$0xff] %v216_v8 }
  0x1c   : > { %219 = vst [vmem:[%s809_s27 + $0x48] sm:$0xff] %v218_v9 }
  0x1d   : > { %221 = vst [vmem:[%s809_s27 + $0x50] sm:$0xff] %v220_v10 }
  0x1e   : > { %223 = vst [vmem:[%s809_s27 + $0x58] sm:$0xff] %v222_v11 }
  0x1f   : > { %225 = vst [vmem:[%s809_s27 + $0x60] sm:$0xff] %v224_v12 }
  0x20   : > { %227 = vst [vmem:[%s809_s27 + $0x68] sm:$0xff] %v226_v13 }
  0x21   : > { %229 = vst [vmem:[%s809_s27 + $0x70] sm:$0xff] %v228_v14 }
  0x22   : > { %231 = vst [vmem:[%s809_s27 + $0x78] sm:$0xff] %v230_v15 }
  0x23   : > { %233 = vst [vmem:[%s809_s27 + $0x80] sm:$0xff] %v232_v16 }
  0x24   : > { %235 = vst [vmem:[%s809_s27 + $0x88] sm:$0xff] %v234_v17 }
  0x25 PF: > { %p580_p7 = scmp.ge.s32.totalorder %s741_s14, 1  ;;  %p240_p8 = scmp.lt.s32.totalorder %s741_s14, 3 }
  0x27   : > { %p241_p9 = pnand %p580_p7, %p240_p8 }
  0x28   : > { %s247_s28 = sand.u32 (!%p241_p9), 1, %s733_s12  }
  0x29   : > { %244 = sbr.rel (%p241_p9) target bundleno = 238 (0xee), region = 66  ;;  %s581_s23 = sshll.u32 (!%p241_p9), %s247_s28, 4 }
  0x2a   : > { %s692_s29 = smul.u32 (!%p241_p9), 144, %s247_s28  ;;  %s268_s24 = scalar_lea.vmem (!%p241_p9), [#allocation3], %s581_s23 }
  0x2c   : > { %s849_s30 = scalar_lea.vmem (!%p241_p9), [#allocation2], %s692_s29 }
  0x2e   : > { %v648_v18 = vld [vmem:[%s849_s30 + $0x70] sm:$0xf]  ;;  %v687_v19 = vld [vmem:[%s849_s30 + $0x74] sm:$0xf0]  ;;  %v686_v20 = vld [vmem:[%s849_s30 + $0x74] sm:$0xf] }
  0x2f   : > { %v649_v21 = vor.u32 %v687_v19, %v648_v18  ;;  %v650_v22 = vld [vmem:[%s849_s30 + $0x78] sm:$0xf0]  ;;  %v640_v23 = vld [vmem:[%s849_s30 + $0x60] sm:$0xf]  ;;  %v685_v24 = vld [vmem:[%s849_s30 + $0x64] sm:$0xf0] }
  0x30   : > { %v653_v25 = vor.u32 %v686_v20, %v650_v22  ;;  %v684_v26 = vld [vmem:[%s849_s30 + $0x64] sm:$0xf]  ;;  %v642_v27 = vld [vmem:[%s849_s30 + $0x68] sm:$0xf0]  ;;  %v641_v28 = vor.u32 %v685_v24, %v640_v23  ;;  %v632_v30 = vld [vmem:[%s849_s30 + $0x50] sm:$0xf] }
  0x31   : > { %407 = vmatpush.bf16.msra.mxu0 %v649_v21  ;;  %v645_v29 = vor.u32 %v684_v26, %v642_v27  ;;  %v683_v31 = vld [vmem:[%s849_s30 + $0x54] sm:$0xf0]  ;;  %v682_v32 = vld [vmem:[%s849_s30 + $0x54] sm:$0xf]  ;;  %v634_v33 = vld [vmem:[%s849_s30 + $0x58] sm:$0xf0] }
  0x32   : > { %435 = vmatpush.bf16.msra.mxu2 %v653_v25  ;;  %v633_v34 = vor.u32 %v683_v31, %v632_v30  ;;  %v624_v35 = vld [vmem:[%s849_s30 + $0x40] sm:$0xf]  ;;  %v670_v36 = vld [vmem:[%s926_s0 + $0x4] sm:$0xf]  ;;  %v586_v37 = vld [vmem:[%s926_s0 + $0x8] sm:$0xf0]  ;;  %v637_v38 = vor.u32 %v682_v32, %v634_v33 }
  0x33   : > { %v681_v39 = vld [vmem:[%s849_s30 + $0x44] sm:$0xf0]  ;;  %v688_v40 = vld [vmem:[%s849_s30 + $0x84] sm:$0xf]  ;;  %v658_v41 = vld [vmem:[%s849_s30 + $0x88] sm:$0xf0]  ;;  %v589_v45 = vor.u32 %v670_v36, %v586_v37 }
  0x34   : > { %v680_v42 = vld [vmem:[%s849_s30 + $0x44] sm:$0xf]  ;;  %v626_v43 = vld [vmem:[%s849_s30 + $0x48] sm:$0xf0]  ;;  %v661_v44 = vor.u32 %v688_v40, %v658_v41  ;;  %v656_v46 = vld [vmem:[%s849_s30 + $0x80] sm:$0xf]  ;;  %v625_v47 = vor.u32 %v681_v39, %v624_v35 }
  0x35   : > { %408 = vmatpush.bf16.msra.mxu0 %v641_v28  ;;  %vm403_vm0 = vcmask 130048   ;;  %v689_v48 = vld [vmem:[%s849_s30 + $0x84] sm:$0xf0]  ;;  %v629_v49 = vor.u32 %v680_v42, %v626_v43  ;;  %v616_v50 = vld [vmem:[%s849_s30 + $0x30] sm:$0xf]  ;;  %v743_v56 = vmov 0  }
  0x36   : > { %436 = vmatpush.bf16.msra.mxu2 %v645_v29  ;;  %456 = vmatpush.bf16.msra.mxu3 %v661_v44  ;;  %v679_v51 = vld [vmem:[%s849_s30 + $0x34] sm:$0xf0]  ;;  %v657_v52 = vor.u32 %v689_v48, %v656_v46  ;;  %v292_v53 = vld [vmem:[%s928_s2] sm:$0xff]  ;;  %v618_v55 = vld [vmem:[%s849_s30 + $0x38] sm:$0xf0]  ;;  %s690_s12 = sshll.u32 (%p794_p5), %s574_s15, 3 }
  0x37   : > { %v678_v54 = vld [vmem:[%s849_s30 + $0x34] sm:$0xf]  ;;  %718 = vset.pattern.permute.xlu0 %v743_v56  ;;  %v617_v57 = vor.u32 %v679_v51, %v616_v50  ;;  %v608_v59 = vld [vmem:[%s849_s30 + $0x20] sm:$0xf]  ;;  %v677_v60 = vld [vmem:[%s849_s30 + $0x24] sm:$0xf0]  ;;  %s480_s27 = scalar_lea.vmem (%p794_p5), %s929_s3, %s690_s12 }
  0x38   : > { %428 = vmatpush.bf16.msra.mxu1 %v657_v52  ;;  %296 = vperm.xlu0 %718, %v292_v53   ;;  %v621_v58 = vor.u32 %v678_v54, %v618_v55  ;;  %v676_v61 = vld [vmem:[%s849_s30 + $0x24] sm:$0xf]  ;;  %v610_v62 = vld [vmem:[%s849_s30 + $0x28] sm:$0xf0]  ;;  %v609_v63 = vor.u32 %v677_v60, %v608_v59  ;;  %v600_v1 = vld [vmem:[%s849_s30 + $0x10] sm:$0xf] }
  0x39   : > { %409 = vmatpush.bf16.msra.mxu0 %v633_v34  ;;  %663 = vmatmul.msk.bf16.vlgmr.msra.gmra.mxu3 %vm403_vm0, %v589_v45  ;;  %v613_v0 = vor.u32 %v676_v61, %v610_v62  ;;  %v675_v2 = vld [vmem:[%s849_s30 + $0x14] sm:$0xf0]  ;;  %v674_v4 = vld [vmem:[%s849_s30 + $0x14] sm:$0xf]  ;;  %v602_v5 = vld [vmem:[%s849_s30 + $0x18] sm:$0xf0] }
  0x3a   : > { %437 = vmatpush.bf16.msra.mxu2 %v637_v38  ;;  %v293_v3 = vld [vmem:[%s928_s2 + $0x8] sm:$0xff]  ;;  %v601_v6 = vor.u32 %v675_v2, %v600_v1  ;;  %v605_v7 = vor.u32 %v674_v4, %v602_v5  ;;  %v592_v8 = vld [vmem:[%s849_s30] sm:$0xf]  ;;  %v672_v10 = vld [vmem:[%s849_s30 + $0x4] sm:$0xf] }
  0x3b   : > { %662 = vmatmul.msk.bf16.vlgmr.msra.gmra.mxu1 %vm403_vm0, %v589_v45  ;;  %v673_v9 = vld [vmem:[%s849_s30 + $0x4] sm:$0xf0]  ;;  %v594_v11 = vld [vmem:[%s849_s30 + $0x8] sm:$0xf0]  ;;  %v584_v13 = vld [vmem:[%s926_s0] sm:$0xf] }
  0x3c   : > { %v593_v12 = vor.u32 %v673_v9, %v592_v8  ;;  %v671_v14 = vld [vmem:[%s926_s0 + $0x4] sm:$0xf0]  ;;  %v597_v15 = vor.u32 %v672_v10, %v594_v11 }
  0x3d   : > { %410 = vmatpush.bf16.msra.mxu0 %v625_v47  ;;  %v585_v16 = vor.u32 %v671_v14, %v584_v13 }
  0x3e   : > { %438 = vmatpush.bf16.msra.mxu2 %v629_v49 }
  0x40   : > { %301 = vperm.xlu0 %718, %v293_v3  }
  0x41   : > { %411 = vmatpush.bf16.msra.mxu0 %v617_v57 }
  0x42   : > { %439 = vmatpush.bf16.msra.mxu2 %v621_v58 }
  0x45   : > { %412 = vmatpush.bf16.msra.mxu0 %v609_v63 }
  0x46   : > { %440 = vmatpush.bf16.msra.mxu2 %v613_v0 }
  0x49   : > { %413 = vmatpush.bf16.msra.mxu0 %v601_v6 }
  0x4a   : > { %441 = vmatpush.bf16.msra.mxu2 %v605_v7 }
  0x4d   : > { %414 = vmatpush.bf16.msra.mxu0 %v593_v12 }
  0x4e   : > { %442 = vmatpush.bf16.msra.mxu2 %v597_v15 }
  0x50   : > { %415 = vmatmul.bf16.vlgmr.msra.gmra.mxu0 %v585_v16 }
  0x51   : > { %443 = vmatmul.bf16.vlgmr.msra.gmra.mxu2 %v585_v16 }
  0xaa   : > { %v297_v18 = vpop.permute.xlu0 %296 }
  0xb2   : > { %v302_v28 = vpop.permute.xlu0 %301 }
  0xb8   : > { %v430_v20 = vpop.f32.mrf.mxu1 }
  0xbc   : > { %v458_v22 = vpop.f32.mrf.mxu3 }
  0xc0   : > { %v432_v32 = vpop.f32.mrf.mxu1 }
  0xc4   : > { %v460_v36 = vpop.f32.mrf.mxu3 }
  0xcd   : > { %v416_v17 = vpop.f32.mrf.mxu0 }
  0xce   : > { %v417_v19 = vadd.f32 %v416_v17, %v297_v18 }
  0xd0   : > { %v431_v21 = vadd.f32 %v430_v20, %v417_v19 }
  0xd2   : > { %v463_v26 = vmax.f32 %v431_v21, 0.0 }
  0xd4   : > { %v444_v23 = vpop.f32.mrf.mxu2 }
  0xd5   : > { %v445_v24 = vadd.f32 %v444_v23, %v297_v18  ;;  %v418_v25 = vpop.f32.mrf.mxu0 }
  0xd6   : > { %v419_v30 = vadd.f32 %v418_v25, %v302_v28 }
  0xd7   : > { %v459_v27 = vadd.f32 %v458_v22, %v445_v24 }
  0xd8   : > { %v433_v34 = vadd.f32 %v432_v32, %v419_v30 }
  0xd9   : > { %v464_v29 = vmax.f32 %v459_v27, 0.0 }
  0xda   : > { %v465_v38 = vmax.f32 %v433_v34, 0.0 }
  0xdb   : > { %v467_v31 = vpack.c.bf16 %v464_v29, %v463_v26 }
  0xdc   : > { %v446_v33 = vpop.f32.mrf.mxu2 }
  0xdd   : > { %469 = vst [vmem:[%s268_s24] sm:$0xff] %v467_v31  ;;  %v447_v35 = vadd.f32 %v446_v33, %v302_v28 }
  0xdf   : > { %v461_v37 = vadd.f32 %v460_v36, %v447_v35 }
  0xe1   : > { %v466_v39 = vmax.f32 %v461_v37, 0.0  ;;  %477 = sbr.rel (!%p794_p5) target bundleno = 238 (0xee), region = 74 }
  0xe3   : > { %v468_v40 = vpack.c.bf16 %v466_v39, %v465_v38 }
  0xe4   : > { %v511_v41 = vld [vmem:[%s268_s24] sm:$0xff] (%p794_p5) }
  0xe5   : > { %470 = vst [vmem:[%s268_s24 + $0x8] sm:$0xff] %v468_v40 }
  0xe6   : > { %512 = vst [vmem:[%s480_s27] sm:$0xff] %v511_v41 }
  0xec   : > { %v513_v42 = vld [vmem:[%s268_s24 + $0x8] sm:$0xff] }
  0xed   : > { %514 = vst [vmem:[%s480_s27 + $0x10] sm:$0xff] %v513_v42 }
  0xee PF: > { %p10_p10 = scmp.ge.s32.totalorder %s781_s16, 4   ;;  %s931_s12 = smov %s737_s13 }
  0xef   : > { %s932_s13 = smov %s792_s19  ;;  %s933_s14 = smov %s781_s16 }
  0xf0   :  { %12 = sbr.rel (!%p10_p10) target bundleno = 2 (0x2), region = 143 }

// kernel: resnet_forward.10
= control target key start
LH: loop header
LB: loop body
LE: loop exit
PB: predicated region body
PF: predicated region fallthrough
CT: control target
= control target key end

     0   :  { %s890_s15 = smov 0   ;;  %s892_s16 = smov 0   ;;  %s1065_s0 = inlined_call_operand.vmem [shape: bf16[16,144], index: 0, kind: input, shape index: {}]   ;;  %s1066_s1 = inlined_call_operand.vmem [shape: bf16[144,512], index: 1, kind: input, shape index: {}]   ;;  %s1067_s2 = inlined_call_operand.vmem [shape: f32[16,1], index: 2, kind: input, shape index: {}]   ;;  %s1068_s3 = inlined_call_operand.vmem [shape: bf16[16,512], index: 3, kind: input, shape index: {}]   ;;  %s1069_s4 = inlined_call_operand.vmem [shape: bf16[16,512], index: 4, kind: output, shape index: {}]  }
   0x1   :  { %s894_s17 = smov 0  }
   0x2 LB: > { %s690_s18 = sadd.s32 4294967295, %s862_s17   ;;  %s907_s19 = sadd.s32 1, %s862_s17   ;;  %s862_s17 = sphi %s894_s17, %s1074_s17   ;;  %s858_s16 = sphi %s892_s16, %s1073_s16   ;;  %s854_s15 = sphi %s890_s15, %s1072_s15  }
   0x3   : > { %s39_s20 = ssub.s32 %s862_s17, %s907_s19  ;;  %s42_s21 = sadd.s32 1, %s858_s16 }
   0x4   : > { %p40_p0 = scmp.eq.s32.totalorder %s39_s20, 0  ;;  %p49_p1 = scmp.ne.s32.totalorder %s858_s16, %s854_s15 }
   0x5   : > { %p50_p2 = scmp.eq.s32.totalorder %s862_s17, 0  ;;  %p126_p3 = scmp.eq.s32.totalorder %s690_s18, 1 }
   0x6   : > { %s918_s22 = scalar_select %p40_p0, %s858_s16, %s42_s21  }
   0x7   : > { %p920_p4 = por %p50_p2, %p49_p1  ;;  %p924_p5 = por %p126_p3, %p49_p1 }
   0x8   : > { %p693_p6 = scmp.ge.s32.totalorder %s862_s17, 2 }
   0xa   : > { %154 = sbr.rel (%p693_p6) target bundleno = 43 (0x2b), region = 24 }
   0xf   : > { %157 = sbr.rel (!%p920_p4) target bundleno = 37 (0x25), region = 28  ;;  %s159_s25 = sand.u32 (%p920_p4), 1, %s858_s16  }
  0x10   : > { %s789_s26 = sshll.u32 (%p920_p4), %s862_s17, 3  ;;  %s812_s27 = smul.u32 (%p920_p4), 144, %s159_s25 }
  0x11   : > { %s936_s30 = scalar_lea.vmem (%p920_p4), %s1066_s1, %s789_s26 }
  0x12   : > { %v227_v0 = vld [vmem:[%s936_s30] sm:$0xff] (%p920_p4)  ;;  %v229_v1 = vld [vmem:[%s936_s30 + $0x10] sm:$0xff] (%p920_p4)  ;;  %s941_s5 = scalar_lea.vmem (%p920_p4), [#allocation2], %s812_s27 }
  0x13   : > { %v231_v2 = vld [vmem:[%s936_s30 + $0x20] sm:$0xff] (%p920_p4)  ;;  %228 = vst [vmem:[%s941_s5] sm:$0xff] (%p920_p4), %v227_v0  ;;  %v233_v3 = vld [vmem:[%s936_s30 + $0x30] sm:$0xff] (%p920_p4) }
  0x14   : > { %230 = vst [vmem:[%s941_s5 + $0x8] sm:$0xff] %v229_v1  ;;  %v235_v4 = vld [vmem:[%s936_s30 + $0x40] sm:$0xff]  ;;  %v237_v5 = vld [vmem:[%s936_s30 + $0x50] sm:$0xff] }
  0x15   : > { %232 = vst [vmem:[%s941_s5 + $0x10] sm:$0xff] %v231_v2  ;;  %v239_v6 = vld [vmem:[%s936_s30 + $0x60] sm:$0xff]  ;;  %v241_v7 = vld [vmem:[%s936_s30 + $0x70] sm:$0xff] }
  0x16   : > { %234 = vst [vmem:[%s941_s5 + $0x18] sm:$0xff] %v233_v3  ;;  %v243_v8 = vld [vmem:[%s936_s30 + $0x80] sm:$0xff]  ;;  %v245_v9 = vld [vmem:[%s936_s30 + $0x90] sm:$0xff] }
  0x17   : > { %236 = vst [vmem:[%s941_s5 + $0x20] sm:$0xff] %v235_v4  ;;  %v247_v10 = vld [vmem:[%s936_s30 + $0xa0] sm:$0xff]  ;;  %v249_v11 = vld [vmem:[%s936_s30 + $0xb0] sm:$0xff] }
  0x18   : > { %238 = vst [vmem:[%s941_s5 + $0x28] sm:$0xff] %v237_v5  ;;  %v251_v12 = vld [vmem:[%s936_s30 + $0xc0] sm:$0xff]  ;;  %v253_v13 = vld [vmem:[%s936_s30 + $0xd0] sm:$0xff] }
  0x19   : > { %240 = vst [vmem:[%s941_s5 + $0x30] sm:$0xff] %v239_v6  ;;  %v255_v14 = vld [vmem:[%s936_s30 + $0xe0] sm:$0xff]  ;;  %v257_v15 = vld [vmem:[%s936_s30 + $0xf0] sm:$0xff] }
  0x1a   : > { %242 = vst [vmem:[%s941_s5 + $0x38] sm:$0xff] %v241_v7  ;;  %v259_v16 = vld [vmem:[%s936_s30 + $0x100] sm:$0xff]  ;;  %v261_v17 = vld [vmem:[%s936_s30 + $0x110] sm:$0xff] }
  0x1b   : > { %244 = vst [vmem:[%s941_s5 + $0x40] sm:$0xff] %v243_v8 }
  0x1c   : > { %246 = vst [vmem:[%s941_s5 + $0x48] sm:$0xff] %v245_v9 }
  0x1d   : > { %248 = vst [vmem:[%s941_s5 + $0x50] sm:$0xff] %v247_v10 }
  0x1e   : > { %250 = vst [vmem:[%s941_s5 + $0x58] sm:$0xff] %v249_v11 }
  0x1f   : > { %252 = vst [vmem:[%s941_s5 + $0x60] sm:$0xff] %v251_v12 }
  0x20   : > { %254 = vst [vmem:[%s941_s5 + $0x68] sm:$0xff] %v253_v13 }
  0x21   : > { %256 = vst [vmem:[%s941_s5 + $0x70] sm:$0xff] %v255_v14 }
  0x22   : > { %258 = vst [vmem:[%s941_s5 + $0x78] sm:$0xff] %v257_v15 }
  0x23   : > { %260 = vst [vmem:[%s941_s5 + $0x80] sm:$0xff] %v259_v16 }
  0x24   : > { %262 = vst [vmem:[%s941_s5 + $0x88] sm:$0xff] %v261_v17 }
  0x25 PF: > { %268 = sbr.rel (!%p920_p4) target bundleno = 43 (0x2b), region = 66  ;;  %s270_s6 = sand.u32 (%p920_p4), 1, %s858_s16  }
  0x26   : > { %s790_s7 = sshll.u32 (%p920_p4), %s862_s17, 3  ;;  %s696_s8 = sshll.u32 (%p920_p4), %s270_s6, 4 }
  0x27   : > { %s275_s11 = scalar_lea.vmem (%p920_p4), %s1068_s3, %s790_s7  ;;  %s272_s12 = scalar_lea.vmem (%p920_p4), [#allocation3], %s696_s8 }
  0x28   : > { %v306_v18 = vld [vmem:[%s275_s11] sm:$0xff] (%p920_p4)  ;;  %v308_v19 = vld [vmem:[%s275_s11 + $0x10] sm:$0xff] (%p920_p4) }
  0x29   : > { %307 = vst [vmem:[%s272_s12] sm:$0xff] (%p920_p4), %v306_v18 }
  0x2a   : > { %309 = vst [vmem:[%s272_s12 + $0x8] sm:$0xff] %v308_v19 }
  0x2b PF: > { %p699_p7 = scmp.ge.s32.totalorder %s862_s17, 1  ;;  %p314_p8 = scmp.lt.s32.totalorder %s862_s17, 3 }
  0x2d   : > { %p315_p9 = pnand %p699_p7, %p314_p8 }
  0x2e   : > { %s321_s13 = sand.u32 (!%p315_p9), 1, %s854_s15  }
  0x2f   : > { %318 = sbr.rel (%p315_p9) target bundleno = 246 (0xf6), region = 104  ;;  %s700_s9 = sshll.u32 (!%p315_p9), %s321_s13, 4 }
  0x30   : > { %s813_s14 = smul.u32 (!%p315_p9), 144, %s321_s13  ;;  %s330_s10 = scalar_lea.vmem (!%p315_p9), [#allocation3], %s700_s9 }
  0x31   : > { %s355_s15 = scalar_lea.vmem (!%p315_p9), [#allocation4], %s700_s9 }
  0x32   : > { %s988_s20 = scalar_lea.vmem (!%p315_p9), [#allocation2], %s813_s14 }
  0x34   : > { %v768_v20 = vld [vmem:[%s988_s20 + $0x70] sm:$0xf]  ;;  %v808_v21 = vld [vmem:[%s988_s20 + $0x74] sm:$0xf0]  ;;  %v807_v22 = vld [vmem:[%s988_s20 + $0x74] sm:$0xf] }
  0x35   : > { %v769_v23 = vor.u32 %v808_v21, %v768_v20  ;;  %v770_v24 = vld [vmem:[%s988_s20 + $0x78] sm:$0xf0]  ;;  %v760_v25 = vld [vmem:[%s988_s20 + $0x60] sm:$0xf]  ;;  %v806_v26 = vld [vmem:[%s988_s20 + $0x64] sm:$0xf0] }
  0x36   : > { %v773_v27 = vor.u32 %v807_v22, %v770_v24  ;;  %v805_v28 = vld [vmem:[%s988_s20 + $0x64] sm:$0xf]  ;;  %v762_v29 = vld [vmem:[%s988_s20 + $0x68] sm:$0xf0]  ;;  %v761_v30 = vor.u32 %v806_v26, %v760_v25  ;;  %v752_v32 = vld [vmem:[%s988_s20 + $0x50] sm:$0xf] }
  0x37   : > { %495 = vmatpush.bf16.msra.mxu0 %v769_v23  ;;  %v765_v31 = vor.u32 %v805_v28, %v762_v29  ;;  %v804_v33 = vld [vmem:[%s988_s20 + $0x54] sm:$0xf0]  ;;  %v803_v34 = vld [vmem:[%s988_s20 + $0x54] sm:$0xf]  ;;  %v754_v35 = vld [vmem:[%s988_s20 + $0x58] sm:$0xf0] }
  0x38   : > { %523 = vmatpush.bf16.msra.mxu2 %v773_v27  ;;  %v753_v36 = vor.u32 %v804_v33, %v752_v32  ;;  %v744_v37 = vld [vmem:[%s988_s20 + $0x40] sm:$0xf]  ;;  %v791_v38 = vld [vmem:[%s1065_s0 + $0x4] sm:$0xf]  ;;  %v706_v39 = vld [vmem:[%s1065_s0 + $0x8] sm:$0xf0]  ;;  %v757_v40 = vor.u32 %v803_v34, %v754_v35 }
  0x39   : > { %v802_v41 = vld [vmem:[%s988_s20 + $0x44] sm:$0xf0]  ;;  %v809_v42 = vld [vmem:[%s988_s20 + $0x84] sm:$0xf]  ;;  %v778_v43 = vld [vmem:[%s988_s20 + $0x88] sm:$0xf0]  ;;  %v709_v47 = vor.u32 %v791_v38, %v706_v39 }
  0x3a   : > { %v801_v44 = vld [vmem:[%s988_s20 + $0x44] sm:$0xf]  ;;  %v746_v45 = vld [vmem:[%s988_s20 + $0x48] sm:$0xf0]  ;;  %v781_v46 = vor.u32 %v809_v42, %v778_v43  ;;  %v776_v48 = vld [vmem:[%s988_s20 + $0x80] sm:$0xf]  ;;  %v745_v49 = vor.u32 %v802_v41, %v744_v37 }
  0x3b   : > { %496 = vmatpush.bf16.msra.mxu0 %v761_v30  ;;  %vm491_vm0 = vcmask 130048   ;;  %v810_v50 = vld [vmem:[%s988_s20 + $0x84] sm:$0xf0]  ;;  %v749_v51 = vor.u32 %v801_v44, %v746_v45  ;;  %v736_v52 = vld [vmem:[%s988_s20 + $0x30] sm:$0xf]  ;;  %v864_v58 = vmov 0  }
  0x3c   : > { %524 = vmatpush.bf16.msra.mxu2 %v765_v31  ;;  %544 = vmatpush.bf16.msra.mxu3 %v781_v46  ;;  %v800_v53 = vld [vmem:[%s988_s20 + $0x34] sm:$0xf0]  ;;  %v777_v54 = vor.u32 %v810_v50, %v776_v48  ;;  %v380_v55 = vld [vmem:[%s1067_s2] sm:$0xff]  ;;  %v738_v57 = vld [vmem:[%s988_s20 + $0x38] sm:$0xf0]  ;;  %s811_s11 = sshll.u32 (%p924_p5), %s690_s18, 3 }
  0x3d   : > { %v799_v56 = vld [vmem:[%s988_s20 + $0x34] sm:$0xf]  ;;  %839 = vset.pattern.permute.xlu0 %v864_v58  ;;  %v737_v59 = vor.u32 %v800_v53, %v736_v52  ;;  %v728_v61 = vld [vmem:[%s988_s20 + $0x20] sm:$0xf]  ;;  %v798_v62 = vld [vmem:[%s988_s20 + $0x24] sm:$0xf0]  ;;  %s578_s14 = scalar_lea.vmem (%p924_p5), %s1069_s4, %s811_s11 }
  0x3e   : > { %516 = vmatpush.bf16.msra.mxu1 %v777_v54  ;;  %384 = vperm.xlu0 %839, %v380_v55   ;;  %v741_v60 = vor.u32 %v799_v56, %v738_v57  ;;  %v797_v63 = vld [vmem:[%s988_s20 + $0x24] sm:$0xf]  ;;  %v730_v0 = vld [vmem:[%s988_s20 + $0x28] sm:$0xf0]  ;;  %v729_v1 = vor.u32 %v798_v62, %v728_v61  ;;  %v720_v3 = vld [vmem:[%s988_s20 + $0x10] sm:$0xf] }
  0x3f   : > { %497 = vmatpush.bf16.msra.mxu0 %v753_v36  ;;  %783 = vmatmul.msk.bf16.vlgmr.msra.gmra.mxu3 %vm491_vm0, %v709_v47  ;;  %v733_v2 = vor.u32 %v797_v63, %v730_v0  ;;  %v796_v4 = vld [vmem:[%s988_s20 + $0x14] sm:$0xf0]  ;;  %v795_v6 = vld [vmem:[%s988_s20 + $0x14] sm:$0xf]  ;;  %v722_v7 = vld [vmem:[%s988_s20 + $0x18] sm:$0xf0] }
  0x40   : > { %525 = vmatpush.bf16.msra.mxu2 %v757_v40  ;;  %v381_v5 = vld [vmem:[%s1067_s2 + $0x8] sm:$0xff]  ;;  %v721_v8 = vor.u32 %v796_v4, %v720_v3  ;;  %v725_v9 = vor.u32 %v795_v6, %v722_v7  ;;  %v712_v10 = vld [vmem:[%s988_s20] sm:$0xf]  ;;  %v793_v12 = vld [vmem:[%s988_s20 + $0x4] sm:$0xf] }
  0x41   : > { %782 = vmatmul.msk.bf16.vlgmr.msra.gmra.mxu1 %vm491_vm0, %v709_v47  ;;  %v794_v11 = vld [vmem:[%s988_s20 + $0x4] sm:$0xf0]  ;;  %v714_v13 = vld [vmem:[%s988_s20 + $0x8] sm:$0xf0]  ;;  %v704_v15 = vld [vmem:[%s1065_s0] sm:$0xf] }
  0x42   : > { %v713_v14 = vor.u32 %v794_v11, %v712_v10  ;;  %v792_v16 = vld [vmem:[%s1065_s0 + $0x4] sm:$0xf0]  ;;  %v717_v17 = vor.u32 %v793_v12, %v714_v13  ;;  %v551_v22 = vld [vmem:[%s330_s10] sm:$0xff] }
  0x43   : > { %498 = vmatpush.bf16.msra.mxu0 %v745_v49  ;;  %v705_v18 = vor.u32 %v792_v16, %v704_v15  ;;  %v553_v25 = vunpack.c.l.bf16 %v551_v22  ;;  %v554_v30 = vunpack.c.h.bf16 %v551_v22  ;;  %v552_v35 = vld [vmem:[%s330_s10 + $0x8] sm:$0xff] }
  0x44   : > { %526 = vmatpush.bf16.msra.mxu2 %v749_v51  ;;  %v555_v41 = vunpack.c.l.bf16 %v552_v35  ;;  %v556_v45 = vunpack.c.h.bf16 %v552_v35 }
  0x46   : > { %389 = vperm.xlu0 %839, %v381_v5  }
  0x47   : > { %499 = vmatpush.bf16.msra.mxu0 %v737_v59 }
  0x48   : > { %527 = vmatpush.bf16.msra.mxu2 %v741_v60 }
  0x4b   : > { %500 = vmatpush.bf16.msra.mxu0 %v729_v1 }
  0x4c   : > { %528 = vmatpush.bf16.msra.mxu2 %v733_v2 }
  0x4f   : > { %501 = vmatpush.bf16.msra.mxu0 %v721_v8 }
  0x50   : > { %529 = vmatpush.bf16.msra.mxu2 %v725_v9 }
  0x53   : > { %502 = vmatpush.bf16.msra.mxu0 %v713_v14 }
  0x54   : > { %530 = vmatpush.bf16.msra.mxu2 %v717_v17 }
  0x56   : > { %503 = vmatmul.bf16.vlgmr.msra.gmra.mxu0 %v705_v18 }
  0x57   : > { %531 = vmatmul.bf16.vlgmr.msra.gmra.mxu2 %v705_v18 }
  0xb0   : > { %v385_v19 = vpop.permute.xlu0 %384 }
  0xb8   : > { %v390_v32 = vpop.permute.xlu0 %389 }
  0xbe   : > { %v518_v23 = vpop.f32.mrf.mxu1 }
  0xc2   : > { %v546_v26 = vpop.f32.mrf.mxu3 }
  0xc6   : > { %v520_v38 = vpop.f32.mrf.mxu1 }
  0xca   : > { %v548_v46 = vpop.f32.mrf.mxu3 }
  0xd3   : > { %v504_v20 = vpop.f32.mrf.mxu0 }
  0xd4   : > { %v505_v21 = vadd.f32 %v504_v20, %v385_v19 }
  0xd6   : > { %v519_v24 = vadd.f32 %v518_v23, %v505_v21 }
  0xd8   : > { %v557_v28 = vadd.f32 %v553_v25, %v519_v24 }
  0xda   : > { %v532_v27 = vpop.f32.mrf.mxu2  ;;  %v561_v36 = vmax.f32 %v557_v28, 0.0 }
  0xdb   : > { %v533_v29 = vadd.f32 %v532_v27, %v385_v19  ;;  %v506_v31 = vpop.f32.mrf.mxu0 }
  0xdc   : > { %v507_v34 = vadd.f32 %v506_v31, %v390_v32 }
  0xdd   : > { %v547_v33 = vadd.f32 %v546_v26, %v533_v29 }
  0xde   : > { %v521_v40 = vadd.f32 %v520_v38, %v507_v34 }
  0xdf   : > { %v558_v37 = vadd.f32 %v554_v30, %v547_v33 }
  0xe0   : > { %v559_v47 = vadd.f32 %v555_v41, %v521_v40 }
  0xe1   : > { %v562_v39 = vmax.f32 %v558_v37, 0.0 }
  0xe2   : > { %v534_v42 = vpop.f32.mrf.mxu2  ;;  %v563_v50 = vmax.f32 %v559_v47, 0.0 }
  0xe3   : > { %v565_v43 = vpack.c.bf16 %v562_v39, %v561_v36  ;;  %v535_v44 = vadd.f32 %v534_v42, %v390_v32 }
  0xe5   : > { %567 = vst [vmem:[%s355_s15] sm:$0xff] %v565_v43  ;;  %v549_v48 = vadd.f32 %v548_v46, %v535_v44 }
  0xe7   : > { %v560_v49 = vadd.f32 %v556_v45, %v549_v48 }
  0xe9   : > { %v564_v51 = vmax.f32 %v560_v49, 0.0  ;;  %575 = sbr.rel (!%p924_p5) target bundleno = 246 (0xf6), region = 116 }
  0xeb   : > { %v566_v52 = vpack.c.bf16 %v564_v51, %v563_v50 }
  0xec   : > { %v609_v53 = vld [vmem:[%s355_s15] sm:$0xff] (%p924_p5) }
  0xed   : > { %568 = vst [vmem:[%s355_s15 + $0x8] sm:$0xff] %v566_v52 }
  0xee   : > { %610 = vst [vmem:[%s578_s14] sm:$0xff] %v609_v53 }
  0xf4   : > { %v611_v54 = vld [vmem:[%s355_s15 + $0x8] sm:$0xff] }
  0xf5   : > { %612 = vst [vmem:[%s578_s14 + $0x10] sm:$0xff] %v611_v54 }
  0xf6 PF: > { %p11_p10 = scmp.ge.s32.totalorder %s907_s19, 4   ;;  %s1072_s15 = smov %s858_s16 }
  0xf7   : > { %s1073_s16 = smov %s918_s22  ;;  %s1074_s17 = smov %s907_s19 }
  0xf8   :  { %13 = sbr.rel (!%p11_p10) target bundleno = 2 (0x2), region = 193 }

// kernel: resnet_forward.11
= control target key start
LH: loop header
LB: loop body
LE: loop exit
PB: predicated region body
PF: predicated region fallthrough
CT: control target
= control target key end

     0   :  { %v283_v6 = vmov 0   ;;  %vm133_vm0 = vcmask 130048   ;;  %s375_s1 = inlined_call_operand.vmem [shape: bf16[144,128], index: 1, kind: input, shape index: {}]   ;;  %s376_s0 = inlined_call_operand.vmem [shape: bf16[32,144], index: 0, kind: input, shape index: {}]   ;;  %s377_s2 = inlined_call_operand.vmem [shape: f32[32,1], index: 2, kind: input, shape index: {}]   ;;  %s378_s3 = inlined_call_operand.vmem [shape: bf16[32,128], index: 3, kind: output, shape index: {}]  }
   0x1   :  { %v259_v0 = vld [vmem:[%s375_s1 + $0x38] sm:$0xff]  ;;  %v260_v1 = vld [vmem:[%s375_s1 + $0x40] sm:$0xff]  ;;  %v258_v3 = vld [vmem:[%s375_s1 + $0x30] sm:$0xff]  ;;  %282 = vset.pattern.permute.xlu1 %v283_v6  ;;  %281 = vset.pattern.permute.xlu0 %v283_v6 }
   0x2   :  { %v248_v2 = vld [vmem:[%s376_s0 + $0x4] sm:$0xf]  ;;  %140 = vmatpush.bf16.msra.mxu0 %v259_v0  ;;  %272 = vmatpush.bf16.msra.mxu2 %v259_v0  ;;  %v198_v4 = vld [vmem:[%s376_s0 + $0x8] sm:$0xf0]  ;;  %v39_v7 = vld [vmem:[%s377_s2 + $0x10] sm:$0xff] }
   0x3   :  { %166 = vmatpush.bf16.msra.mxu1 %v260_v1  ;;  %v201_v5 = vor.u32 %v248_v2, %v198_v4  ;;  %v257_v8 = vld [vmem:[%s375_s1 + $0x28] sm:$0xff]  ;;  %v37_v9 = vld [vmem:[%s377_s2] sm:$0xff]  ;;  %53 = vperm.xlu1 %282, %v39_v7   ;;  %v40_v11 = vld [vmem:[%s377_s2 + $0x18] sm:$0xff] }
   0x4   :  { %43 = vperm.xlu0 %281, %v37_v9   ;;  %v256_v10 = vld [vmem:[%s375_s1 + $0x20] sm:$0xff]  ;;  %v38_v12 = vld [vmem:[%s377_s2 + $0x8] sm:$0xff]  ;;  %v255_v13 = vld [vmem:[%s375_s1 + $0x18] sm:$0xff] }
   0x5   :  { %v250_v14 = vld [vmem:[%s376_s0 + $0x14] sm:$0xf]  ;;  %v206_v15 = vld [vmem:[%s376_s0 + $0x18] sm:$0xf0]  ;;  %v253_v18 = vld [vmem:[%s375_s1 + $0x8] sm:$0xff] }
   0x6   :  { %141 = vmatpush.bf16.msra.mxu0 %v258_v3  ;;  %273 = vmatpush.bf16.msra.mxu2 %v258_v3  ;;  %v254_v16 = vld [vmem:[%s375_s1 + $0x10] sm:$0xff]  ;;  %v209_v17 = vor.u32 %v250_v14, %v206_v15  ;;  %v252_v19 = vld [vmem:[%s375_s1] sm:$0xff]  ;;  %v249_v21 = vld [vmem:[%s376_s0 + $0x4] sm:$0xf0] }
   0x7   :  { %246 = vmatmul.msk.bf16.vlgmr.msra.gmra.mxu1 %vm133_vm0, %v201_v5  ;;  %v196_v20 = vld [vmem:[%s376_s0] sm:$0xf]  ;;  %v204_v22 = vld [vmem:[%s376_s0 + $0x10] sm:$0xf]  ;;  %v251_v23 = vld [vmem:[%s376_s0 + $0x14] sm:$0xf0] }
   0x8   :  { %v197_v24 = vor.u32 %v249_v21, %v196_v20  ;;  %v205_v25 = vor.u32 %v251_v23, %v204_v22 }
   0xa   :  { %142 = vmatpush.bf16.msra.mxu0 %v257_v8  ;;  %274 = vmatpush.bf16.msra.mxu2 %v257_v8 }
   0xb   :  { %58 = vperm.xlu1 %282, %v40_v11  }
   0xc   :  { %48 = vperm.xlu0 %281, %v38_v12  }
   0xe   :  { %143 = vmatpush.bf16.msra.mxu0 %v256_v10  ;;  %275 = vmatpush.bf16.msra.mxu2 %v256_v10 }
  0x12   :  { %144 = vmatpush.bf16.msra.mxu0 %v255_v13  ;;  %276 = vmatpush.bf16.msra.mxu2 %v255_v13 }
  0x16   :  { %145 = vmatpush.bf16.msra.mxu0 %v254_v16  ;;  %277 = vmatpush.bf16.msra.mxu2 %v254_v16 }
  0x17   :  { %247 = vmatmul.msk.bf16.gmra.mxu1 %vm133_vm0, %v209_v17 }
  0x1a   :  { %146 = vmatpush.bf16.msra.mxu0 %v253_v18  ;;  %278 = vmatpush.bf16.msra.mxu2 %v253_v18 }
  0x1e   :  { %147 = vmatpush.bf16.msra.mxu0 %v252_v19  ;;  %279 = vmatpush.bf16.msra.mxu2 %v252_v19 }
  0x21   :  { %148 = vmatmul.bf16.vlgmr.msra.gmra.mxu0 %v197_v24  ;;  %153 = vmatmul.bf16.vlgmr.msra.gmra.mxu2 %v205_v25 }
  0x75   :  { %v54_v30 = vpop.permute.xlu1 %53 }
  0x76   :  { %v44_v28 = vpop.permute.xlu0 %43 }
  0x7d   :  { %v59_v42 = vpop.permute.xlu1 %58 }
  0x7e   :  { %v49_v34 = vpop.permute.xlu0 %48 }
  0x84   :  { %v168_v26 = vpop.f32.mrf.mxu1 }
  0x8c   :  { %v170_v27 = vpop.f32.mrf.mxu1 }
  0x94   :  { %v173_v32 = vpop.f32.mrf.mxu1 }
  0x9c   :  { %v175_v47 = vpop.f32.mrf.mxu1 }
  0x9e   :  { %v149_v29 = vpop.f32.mrf.mxu0 }
  0x9f   :  { %v150_v31 = vadd.f32 %v149_v29, %v44_v28 }
  0xa1   :  { %v169_v36 = vadd.f32 %v168_v26, %v150_v31 }
  0xa3   :  { %v178_v40 = vmax.f32 %v169_v36, 0.0 }
  0xa4   :  { %v154_v33 = vpop.f32.mrf.mxu2 }
  0xa5   :  { %v155_v38 = vadd.f32 %v154_v33, %v54_v30 }
  0xa6   :  { %v151_v35 = vpop.f32.mrf.mxu0 }
  0xa7   :  { %v152_v37 = vadd.f32 %v151_v35, %v49_v34  ;;  %v174_v44 = vadd.f32 %v173_v32, %v155_v38 }
  0xa9   :  { %v171_v39 = vadd.f32 %v170_v27, %v152_v37  ;;  %v180_v49 = vmax.f32 %v174_v44, 0.0 }
  0xab   :  { %v179_v41 = vmax.f32 %v171_v39, 0.0 }
  0xac   :  { %v156_v43 = vpop.f32.mrf.mxu2 }
  0xad   :  { %v264_v45 = vpack.c.bf16 %v179_v41, %v178_v40  ;;  %v157_v46 = vadd.f32 %v156_v43, %v59_v42 }
  0xaf   :  { %265 = vst [vmem:[%s378_s3] sm:$0xff] %v264_v45   ;;  %v176_v48 = vadd.f32 %v175_v47, %v157_v46 }
  0xb1   :  { %v181_v50 = vmax.f32 %v176_v48, 0.0 }
  0xb3   :  { %v269_v51 = vpack.c.bf16 %v181_v50, %v180_v49 }
  0xb5   :  { %271 = vst [vmem:[%s378_s3 + $0x8] sm:$0xff] %v269_v51  }

// kernel: resnet_forward.12
= control target key start
LH: loop header
LB: loop body
LE: loop exit
PB: predicated region body
PF: predicated region fallthrough
CT: control target
= control target key end

     0   :  { %v469_v5 = vmov 0   ;;  %vm224_vm0 = vcmask 261120   ;;  %s611_s1 = inlined_call_operand.vmem [shape: bf16[288,128], index: 1, kind: input, shape index: {}]   ;;  %s612_s0 = inlined_call_operand.vmem [shape: bf16[32,288], index: 0, kind: input, shape index: {}]   ;;  %s613_s2 = inlined_call_operand.vmem [shape: f32[32,1], index: 2, kind: input, shape index: {}]   ;;  %s614_s3 = inlined_call_operand.vmem [shape: bf16[32,128], index: 3, kind: input, shape index: {}]   ;;  %s615_s4 = inlined_call_operand.vmem [shape: bf16[32,128], index: 4, kind: output, shape index: {}]  }
   0x1   :  { %v427_v0 = vld [vmem:[%s611_s1 + $0x38] sm:$0xff]  ;;  %v426_v2 = vld [vmem:[%s611_s1 + $0x30] sm:$0xff]  ;;  %v437_v3 = vld [vmem:[%s611_s1 + $0x88] sm:$0xff]  ;;  %467 = vset.pattern.permute.xlu0 %v469_v5  ;;  %468 = vset.pattern.permute.xlu1 %v469_v5 }
   0x2   :  { %v435_v1 = vld [vmem:[%s611_s1 + $0x78] sm:$0xff]  ;;  %231 = vmatpush.bf16.msra.mxu0 %v427_v0  ;;  %458 = vmatpush.bf16.msra.mxu3 %v427_v0  ;;  %v434_v4 = vld [vmem:[%s611_s1 + $0x70] sm:$0xff]  ;;  %v436_v6 = vld [vmem:[%s611_s1 + $0x80] sm:$0xff] }
   0x3   :  { %250 = vmatpush.bf16.msra.mxu1 %v435_v1  ;;  %275 = vmatpush.bf16.msra.mxu2 %v437_v3  ;;  %v326_v7 = vld [vmem:[%s612_s0 + $0x8] sm:$0xf]  ;;  %v416_v8 = vld [vmem:[%s612_s0 + $0x10] sm:$0xf0]  ;;  %v62_v12 = vld [vmem:[%s613_s2] sm:$0xff] }
   0x4   :  { %v425_v9 = vld [vmem:[%s611_s1 + $0x28] sm:$0xff]  ;;  %v327_v11 = vor.u32 %v416_v8, %v326_v7  ;;  %v424_v13 = vld [vmem:[%s611_s1 + $0x20] sm:$0xff]  ;;  %68 = vperm.xlu0 %467, %v62_v12   ;;  %v423_v15 = vld [vmem:[%s611_s1 + $0x18] sm:$0xff] }
   0x5   :  { %v433_v10 = vld [vmem:[%s611_s1 + $0x68] sm:$0xff]  ;;  %v432_v14 = vld [vmem:[%s611_s1 + $0x60] sm:$0xff]  ;;  %v431_v16 = vld [vmem:[%s611_s1 + $0x58] sm:$0xff] }
   0x6   :  { %232 = vmatpush.bf16.msra.mxu0 %v426_v2  ;;  %459 = vmatpush.bf16.msra.mxu3 %v426_v2  ;;  %v422_v17 = vld [vmem:[%s611_s1 + $0x10] sm:$0xff]  ;;  %v63_v19 = vld [vmem:[%s613_s2 + $0x8] sm:$0xff]  ;;  %v338_v21 = vld [vmem:[%s612_s0 + $0x20] sm:$0xf] }
   0x7   :  { %251 = vmatpush.bf16.msra.mxu1 %v434_v4  ;;  %276 = vmatpush.bf16.msra.mxu2 %v436_v6  ;;  %v64_v18 = vld [vmem:[%s613_s2 + $0x10] sm:$0xff]  ;;  %v419_v22 = vld [vmem:[%s612_s0 + $0x28] sm:$0xf0]  ;;  %v420_v26 = vld [vmem:[%s611_s1] sm:$0xff] }
   0x8   :  { %v430_v20 = vld [vmem:[%s611_s1 + $0x50] sm:$0xff]  ;;  %78 = vperm.xlu1 %468, %v64_v18   ;;  %v421_v23 = vld [vmem:[%s611_s1 + $0x8] sm:$0xff]  ;;  %v339_v25 = vor.u32 %v419_v22, %v338_v21  ;;  %v318_v27 = vld [vmem:[%s612_s0] sm:$0xf] }
   0x9   :  { %v429_v24 = vld [vmem:[%s611_s1 + $0x48] sm:$0xff]  ;;  %v65_v28 = vld [vmem:[%s613_s2 + $0x18] sm:$0xff]  ;;  %v418_v31 = vld [vmem:[%s612_s0 + $0x20] sm:$0xf0] }
   0xa   :  { %233 = vmatpush.bf16.msra.mxu0 %v425_v9  ;;  %460 = vmatpush.bf16.msra.mxu3 %v425_v9  ;;  %v415_v29 = vld [vmem:[%s612_s0 + $0x8] sm:$0xf0]  ;;  %v330_v30 = vld [vmem:[%s612_s0 + $0x18] sm:$0xf]  ;;  %v428_v32 = vld [vmem:[%s611_s1 + $0x40] sm:$0xff] }
   0xb   :  { %252 = vmatpush.bf16.msra.mxu1 %v433_v10  ;;  %412 = vmatmul.msk.bf16.vlgmr.msra.gmra.mxu2 %vm224_vm0, %v327_v11  ;;  %v414_v33 = vld [vmem:[%s612_s0 + $0x4] sm:$0xf]  ;;  %v320_v34 = vld [vmem:[%s612_s0 + $0xc] sm:$0xf0]  ;;  %v319_v35 = vor.u32 %v415_v29, %v318_v27  ;;  %v331_v36 = vor.u32 %v418_v31, %v330_v30  ;;  %v417_v38 = vld [vmem:[%s612_s0 + $0x1c] sm:$0xf] }
   0xc   :  { %73 = vperm.xlu0 %467, %v63_v19   ;;  %v323_v37 = vor.u32 %v414_v33, %v320_v34  ;;  %v332_v39 = vld [vmem:[%s612_s0 + $0x24] sm:$0xf0]  ;;  %v439_v47 = vld [vmem:[%s614_s3] sm:$0xff]  }
   0xd   :  { %v335_v40 = vor.u32 %v417_v38, %v332_v39  ;;  %v440_v52 = vunpack.c.l.bf16 %v439_v47  ;;  %v441_v58 = vunpack.c.h.bf16 %v439_v47  ;;  %v456_v7 = vld [vmem:[%s614_s3 + $0x8] sm:$0xff]  }
   0xe   :  { %234 = vmatpush.bf16.msra.mxu0 %v424_v13  ;;  %461 = vmatpush.bf16.msra.mxu3 %v424_v13  ;;  %v444_v10 = vunpack.c.l.bf16 %v456_v7  ;;  %v445_v13 = vunpack.c.h.bf16 %v456_v7 }
   0xf   :  { %253 = vmatpush.bf16.msra.mxu1 %v432_v14 }
  0x10   :  { %83 = vperm.xlu1 %468, %v65_v28  }
  0x12   :  { %235 = vmatpush.bf16.msra.mxu0 %v423_v15  ;;  %462 = vmatpush.bf16.msra.mxu3 %v423_v15 }
  0x13   :  { %254 = vmatpush.bf16.msra.mxu1 %v431_v16 }
  0x16   :  { %236 = vmatpush.bf16.msra.mxu0 %v422_v17  ;;  %463 = vmatpush.bf16.msra.mxu3 %v422_v17 }
  0x17   :  { %255 = vmatpush.bf16.msra.mxu1 %v430_v20 }
  0x1a   :  { %237 = vmatpush.bf16.msra.mxu0 %v421_v23  ;;  %464 = vmatpush.bf16.msra.mxu3 %v421_v23 }
  0x1b   :  { %256 = vmatpush.bf16.msra.mxu1 %v429_v24  ;;  %413 = vmatmul.msk.bf16.gmra.mxu2 %vm224_vm0, %v339_v25 }
  0x1e   :  { %238 = vmatpush.bf16.msra.mxu0 %v420_v26  ;;  %465 = vmatpush.bf16.msra.mxu3 %v420_v26 }
  0x1f   :  { %257 = vmatpush.bf16.msra.mxu1 %v428_v32 }
  0x21   :  { %239 = vmatmul.bf16.vlgmr.msra.gmra.mxu0 %v319_v35  ;;  %244 = vmatmul.bf16.vlgmr.msra.gmra.mxu3 %v331_v36 }
  0x22   :  { %258 = vmatmul.bf16.vlgmr.msra.gmra.mxu1 %v323_v37 }
  0x32   :  { %263 = vmatmul.bf16.gmra.mxu1 %v335_v40 }
  0x76   :  { %v69_v41 = vpop.permute.xlu0 %68 }
  0x7a   :  { %v79_v55 = vpop.permute.xlu1 %78 }
  0x7e   :  { %v74_v48 = vpop.permute.xlu0 %73 }
  0x82   :  { %v84_v5 = vpop.permute.xlu1 %83 }
  0x8e   :  { %v278_v42 = vpop.f32.mrf.mxu2 }
  0x96   :  { %v280_v49 = vpop.f32.mrf.mxu2 }
  0x9e   :  { %v240_v43 = vpop.f32.mrf.mxu0  ;;  %v283_v1 = vpop.f32.mrf.mxu2 }
  0x9f   :  { %v241_v44 = vadd.f32 %v240_v43, %v69_v41  ;;  %v259_v45 = vpop.f32.mrf.mxu1 }
  0xa1   :  { %v260_v46 = vadd.f32 %v259_v45, %v241_v44 }
  0xa3   :  { %v279_v51 = vadd.f32 %v278_v42, %v260_v46 }
  0xa4   :  { %v245_v56 = vpop.f32.mrf.mxu3 }
  0xa5   :  { %v296_v59 = vadd.f32 %v440_v52, %v279_v51  ;;  %v246_v62 = vadd.f32 %v245_v56, %v79_v55 }
  0xa6   :  { %v242_v50 = vpop.f32.mrf.mxu0  ;;  %v285_v14 = vpop.f32.mrf.mxu2 }
  0xa7   :  { %v243_v53 = vadd.f32 %v242_v50, %v74_v48  ;;  %v261_v54 = vpop.f32.mrf.mxu1  ;;  %v300_v63 = vmax.f32 %v296_v59, 0.0 }
  0xa9   :  { %v262_v57 = vadd.f32 %v261_v54, %v243_v53 }
  0xab   :  { %v281_v60 = vadd.f32 %v280_v49, %v262_v57 }
  0xac   :  { %v247_v6 = vpop.f32.mrf.mxu3 }
  0xad   :  { %v297_v61 = vadd.f32 %v441_v58, %v281_v60  ;;  %v248_v8 = vadd.f32 %v247_v6, %v84_v5 }
  0xaf   :  { %v301_v0 = vmax.f32 %v297_v61, 0.0  ;;  %v264_v2 = vpop.f32.mrf.mxu1 }
  0xb0   :  { %v265_v4 = vadd.f32 %v264_v2, %v246_v62 }
  0xb1   :  { %v449_v3 = vpack.c.bf16 %v301_v0, %v300_v63 }
  0xb2   :  { %v284_v9 = vadd.f32 %v283_v1, %v265_v4 }
  0xb3   :  { %450 = vst [vmem:[%s615_s4] sm:$0xff] %v449_v3  }
  0xb4   :  { %v298_v15 = vadd.f32 %v444_v10, %v284_v9 }
  0xb6   :  { %v302_v18 = vmax.f32 %v298_v15, 0.0 }
  0xb7   :  { %v266_v11 = vpop.f32.mrf.mxu1 }
  0xb8   :  { %v267_v12 = vadd.f32 %v266_v11, %v248_v8 }
  0xba   :  { %v286_v16 = vadd.f32 %v285_v14, %v267_v12 }
  0xbc   :  { %v299_v17 = vadd.f32 %v445_v13, %v286_v16 }
  0xbe   :  { %v303_v19 = vmax.f32 %v299_v17, 0.0 }
  0xc0   :  { %v454_v20 = vpack.c.bf16 %v303_v19, %v302_v18 }
  0xc2   :  { %457 = vst [vmem:[%s615_s4 + $0x8] sm:$0xff] %v454_v20  }

// kernel: resnet_forward.13
= control target key start
LH: loop header
LB: loop body
LE: loop exit
PB: predicated region body
PF: predicated region fallthrough
CT: control target
= control target key end

     0   :  { %vm283_vm0 = vcmask 261120   ;;  %v586_v15 = vmov 0   ;;  %vm399_vm1 = vcmask 257024   ;;  %s813_s1 = inlined_call_operand.vmem [shape: bf16[288,32], index: 1, kind: input, shape index: {}]   ;;  %s814_s0 = inlined_call_operand.vmem [shape: bf16[64,288], index: 0, kind: input, shape index: {}]   ;;  %s815_s2 = inlined_call_operand.vmem [shape: f32[64,1], index: 2, kind: input, shape index: {}]   ;;  %s816_s3 = inlined_call_operand.vmem [shape: bf16[64,32], index: 3, kind: output, shape index: {}]  }
   0x1   :  { %v555_v0 = vld [vmem:[%s813_s1 + $0x38] sm:$0xff]  ;;  %v565_v2 = vld [vmem:[%s813_s1 + $0x88] sm:$0xff]  ;;  %v554_v3 = vld [vmem:[%s813_s1 + $0x30] sm:$0xff]  ;;  %584 = vset.pattern.permute.xlu1 %v586_v15  ;;  %583 = vset.pattern.permute.xlu0 %v586_v15 }
   0x2   :  { %v613_v1 = vld [vmem:[%s813_s1 + $0x78] sm:$0xff]  ;;  %296 = vmatpush.bf16.msra.mxu0 %v555_v0  ;;  %566 = vmatpush.bf16.msra.mxu3 %v555_v0  ;;  %v625_v4 = vld [vmem:[%s813_s1 + $0x70] sm:$0xff]  ;;  %v564_v5 = vld [vmem:[%s813_s1 + $0x80] sm:$0xff] }
   0x3   :  { %574 = vmatpush.bf16.msra.mxu1 %v613_v1  ;;  %360 = vmatpush.bf16.msra.mxu2 %v565_v2  ;;  %v422_v6 = vld [vmem:[%s814_s0 + $0x8] sm:$0xf]  ;;  %v538_v7 = vld [vmem:[%s814_s0 + $0x10] sm:$0xf0]  ;;  %v552_v11 = vld [vmem:[%s813_s1 + $0x20] sm:$0xff] }
   0x4   :  { %v553_v8 = vld [vmem:[%s813_s1 + $0x28] sm:$0xff]  ;;  %v423_v10 = vor.u32 %v538_v7, %v422_v6  ;;  %v653_v12 = vld [vmem:[%s813_s1 + $0x60] sm:$0xff]  ;;  %v551_v13 = vld [vmem:[%s813_s1 + $0x18] sm:$0xff]  ;;  %585 = vset.pattern.permute.xlu2 %v586_v15 }
   0x5   :  { %v643_v9 = vld [vmem:[%s813_s1 + $0x68] sm:$0xff]  ;;  %v662_v14 = vld [vmem:[%s813_s1 + $0x58] sm:$0xff]  ;;  %v550_v16 = vld [vmem:[%s813_s1 + $0x10] sm:$0xff] }
   0x6   :  { %297 = vmatpush.bf16.msra.mxu0 %v554_v3  ;;  %567 = vmatpush.bf16.msra.mxu3 %v554_v3  ;;  %v69_v17 = vld [vmem:[%s815_s2 + $0x10] sm:$0xff]  ;;  %v434_v19 = vld [vmem:[%s814_s0 + $0x20] sm:$0xf]  ;;  %v541_v20 = vld [vmem:[%s814_s0 + $0x28] sm:$0xf0] }
   0x7   :  { %575 = vmatpush.bf16.msra.mxu1 %v625_v4  ;;  %361 = vmatpush.bf16.msra.mxu2 %v564_v5  ;;  %v558_v18 = vld [vmem:[%s813_s1 + $0x50] sm:$0xff]  ;;  %v549_v21 = vld [vmem:[%s813_s1 + $0x8] sm:$0xff]  ;;  %v435_v23 = vor.u32 %v541_v20, %v434_v19  ;;  %v67_v24 = vld [vmem:[%s815_s2] sm:$0xff] }
   0x8   :  { %87 = vperm.xlu1 %584, %v69_v17   ;;  %v557_v22 = vld [vmem:[%s813_s1 + $0x48] sm:$0xff]  ;;  %77 = vperm.xlu0 %583, %v67_v24   ;;  %v548_v25 = vld [vmem:[%s813_s1] sm:$0xff]  ;;  %v426_v26 = vld [vmem:[%s814_s0 + $0x18] sm:$0xf] }
   0x9   :  { %v70_v27 = vld [vmem:[%s815_s2 + $0x18] sm:$0xff]  ;;  %v540_v28 = vld [vmem:[%s814_s0 + $0x20] sm:$0xf0]  ;;  %v414_v29 = vld [vmem:[%s814_s0] sm:$0xf] }
   0xa   :  { %298 = vmatpush.bf16.msra.mxu0 %v553_v8  ;;  %568 = vmatpush.bf16.msra.mxu3 %v553_v8  ;;  %v537_v30 = vld [vmem:[%s814_s0 + $0x8] sm:$0xf0]  ;;  %v556_v31 = vld [vmem:[%s813_s1 + $0x40] sm:$0xff]  ;;  %v539_v32 = vld [vmem:[%s814_s0 + $0x1c] sm:$0xf]  ;;  %v427_v34 = vor.u32 %v540_v28, %v426_v26 }
   0xb   :  { %576 = vmatpush.bf16.msra.mxu1 %v643_v9  ;;  %532 = vmatmul.msk.bf16.vlgmr.msra.gmra.mxu2 %vm283_vm0, %v423_v10  ;;  %v428_v33 = vld [vmem:[%s814_s0 + $0x24] sm:$0xf0]  ;;  %v415_v35 = vor.u32 %v537_v30, %v414_v29  ;;  %v74_v38 = vld [vmem:[%s815_s2 + $0x38] sm:$0xff]  ;;  %v71_v39 = vld [vmem:[%s815_s2 + $0x20] sm:$0xff] }
   0xc   :  { %v431_v36 = vor.u32 %v539_v32, %v428_v33  ;;  %v68_v37 = vld [vmem:[%s815_s2 + $0x8] sm:$0xff]  ;;  %v446_v40 = vld [vmem:[%s814_s0 + $0x38] sm:$0xf]  ;;  %v544_v41 = vld [vmem:[%s814_s0 + $0x40] sm:$0xf0]  ;;  %97 = vperm.xlu2 %585, %v71_v39  }
   0xd   :  { %v447_v42 = vor.u32 %v544_v41, %v446_v40  ;;  %v73_v43 = vld [vmem:[%s815_s2 + $0x30] sm:$0xff]  ;;  %v72_v44 = vld [vmem:[%s815_s2 + $0x28] sm:$0xff]  ;;  %v543_v46 = vld [vmem:[%s814_s0 + $0x38] sm:$0xf0] }
   0xe   :  { %299 = vmatpush.bf16.msra.mxu0 %v552_v11  ;;  %569 = vmatpush.bf16.msra.mxu3 %v552_v11  ;;  %v438_v45 = vld [vmem:[%s814_s0 + $0x30] sm:$0xf]  ;;  %v542_v47 = vld [vmem:[%s814_s0 + $0x34] sm:$0xf]  ;;  %v440_v48 = vld [vmem:[%s814_s0 + $0x3c] sm:$0xf0] }
   0xf   :  { %577 = vmatpush.bf16.msra.mxu1 %v653_v12  ;;  %v439_v49 = vor.u32 %v543_v46, %v438_v45  ;;  %v443_v50 = vor.u32 %v542_v47, %v440_v48  ;;  %v458_v51 = vld [vmem:[%s814_s0 + $0x50] sm:$0xf]  ;;  %v547_v52 = vld [vmem:[%s814_s0 + $0x58] sm:$0xf0]  ;;  %v536_v54 = vld [vmem:[%s814_s0 + $0x4] sm:$0xf] }
  0x10   :  { %92 = vperm.xlu1 %584, %v70_v27   ;;  %82 = vperm.xlu0 %583, %v68_v37   ;;  %v459_v53 = vor.u32 %v547_v52, %v458_v51  ;;  %v416_v55 = vld [vmem:[%s814_s0 + $0xc] sm:$0xf0]  ;;  %v450_v57 = vld [vmem:[%s814_s0 + $0x48] sm:$0xf]  ;;  %v546_v58 = vld [vmem:[%s814_s0 + $0x50] sm:$0xf0] }
  0x11   :  { %v419_v56 = vor.u32 %v536_v54, %v416_v55  ;;  %v545_v59 = vld [vmem:[%s814_s0 + $0x4c] sm:$0xf]  ;;  %v452_v60 = vld [vmem:[%s814_s0 + $0x54] sm:$0xf0]  ;;  %v451_v61 = vor.u32 %v546_v58, %v450_v57 }
  0x12   :  { %300 = vmatpush.bf16.msra.mxu0 %v551_v13  ;;  %570 = vmatpush.bf16.msra.mxu3 %v551_v13  ;;  %v455_v62 = vor.u32 %v545_v59, %v452_v60 }
  0x13   :  { %578 = vmatpush.bf16.msra.mxu1 %v662_v14 }
  0x14   :  { %102 = vperm.xlu2 %585, %v72_v44  }
  0x16   :  { %301 = vmatpush.bf16.msra.mxu0 %v550_v16  ;;  %571 = vmatpush.bf16.msra.mxu3 %v550_v16 }
  0x17   :  { %579 = vmatpush.bf16.msra.mxu1 %v558_v18 }
  0x18   :  { %112 = vperm.xlu1 %584, %v74_v38   ;;  %107 = vperm.xlu0 %583, %v73_v43  }
  0x1a   :  { %302 = vmatpush.bf16.msra.mxu0 %v549_v21  ;;  %572 = vmatpush.bf16.msra.mxu3 %v549_v21 }
  0x1b   :  { %580 = vmatpush.bf16.msra.mxu1 %v557_v22  ;;  %533 = vmatmul.msk.bf16.gmra.mxu2 %vm283_vm0, %v435_v23 }
  0x1e   :  { %303 = vmatpush.bf16.msra.mxu0 %v548_v25  ;;  %573 = vmatpush.bf16.msra.mxu3 %v548_v25 }
  0x1f   :  { %581 = vmatpush.bf16.msra.mxu1 %v556_v31 }
  0x21   :  { %309 = vmatmul.bf16.vlgmr.msra.gmra.mxu3 %v427_v34  ;;  %304 = vmatmul.bf16.vlgmr.msra.gmra.mxu0 %v415_v35 }
  0x22   :  { %325 = vmatpush.bf16.msrb.mxu0 %v613_v1  ;;  %338 = vmatmul.bf16.vlgmr.msra.gmra.mxu1 %v431_v36 }
  0x26   :  { %326 = vmatpush.bf16.msrb.mxu0 %v625_v4 }
  0x2a   :  { %327 = vmatpush.bf16.msrb.mxu0 %v643_v9 }
  0x2b   :  { %534 = vmatmul.msk.bf16.gmra.mxu2 %vm283_vm0, %v447_v42 }
  0x2e   :  { %328 = vmatpush.bf16.msrb.mxu0 %v653_v12 }
  0x31   :  { %314 = vmatmul.bf16.gmra.mxu3 %v439_v49 }
  0x32   :  { %329 = vmatpush.bf16.msrb.mxu0 %v662_v14  ;;  %343 = vmatmul.bf16.gmra.mxu1 %v443_v50 }
  0x36   :  { %330 = vmatpush.bf16.msrb.mxu0 %v558_v18 }
  0x3a   :  { %331 = vmatpush.bf16.msrb.mxu0 %v557_v22 }
  0x3b   :  { %535 = vmatmul.msk.bf16.gmra.mxu2 %vm283_vm0, %v459_v53 }
  0x3e   :  { %332 = vmatpush.bf16.msrb.mxu0 %v556_v31 }
  0x41   :  { %333 = vmatmul.bf16.vlgmr.msrb.gmra.mxu0 %v419_v56  ;;  %319 = vmatmul.bf16.gmra.mxu3 %v451_v61 }
  0x42   :  { %348 = vmatmul.bf16.gmra.mxu1 %v455_v62 }
  0x66   :  { %v98_v19 = vpop.permute.xlu2 %97 }
  0x6e   :  { %v103_v32 = vpop.permute.xlu2 %102 }
  0x7a   :  { %v88_v3 = vpop.permute.xlu1 %87  ;;  %v78_v16 = vpop.permute.xlu0 %77 }
  0x82   :  { %v93_v11 = vpop.permute.xlu1 %92  ;;  %v83_v28 = vpop.permute.xlu0 %82 }
  0x8a   :  { %v108_v46 = vpop.permute.xlu0 %107  ;;  %v113_v61 = vpop.permute.xlu1 %112 }
  0x8e   :  { %v363_v63 = vpop.f32.mrf.mxu2 }
  0x96   :  { %v365_v0 = vpop.f32.mrf.mxu2 }
  0x9e   :  { %v368_v1 = vpop.f32.mrf.mxu2  ;;  %v305_v8 = vpop.f32.mrf.mxu0 }
  0x9f   :  { %v339_v2 = vpop.f32.mrf.mxu1  ;;  %v306_v30 = vadd.f32 %v305_v8, %v78_v16 }
  0xa4   :  { %v310_v4 = vpop.f32.mrf.mxu3 }
  0xa5   :  { %v311_v5 = vadd.f32 %v310_v4, %v88_v3 }
  0xa6   :  { %v370_v9 = vpop.f32.mrf.mxu2  ;;  %v307_v21 = vpop.f32.mrf.mxu0 }
  0xa7   :  { %v340_v6 = vadd.f32 %v339_v2, %v311_v5  ;;  %v341_v7 = vpop.f32.mrf.mxu1  ;;  %v308_v44 = vadd.f32 %v307_v21, %v83_v28 }
  0xa9   :  { %v369_v10 = vadd.f32 %v368_v1, %v340_v6 }
  0xab   :  { %v385_v12 = vmax.f32 %v369_v10, 0.0 }
  0xac   :  { %v312_v13 = vpop.f32.mrf.mxu3 }
  0xad   :  { %v393_v14 = vpack.c.bf16 %v385_v12, %v385_v12  ;;  %v313_v15 = vadd.f32 %v312_v13, %v93_v11 }
  0xae   :  { %v373_v22 = vpop.f32.mrf.mxu2 }
  0xaf   :  { %402 = vst.msk [vmem:[%s816_s3 + $0x8] sm:$0xf] %vm399_vm1, %v393_v14  ;;  %v342_v17 = vadd.f32 %v341_v7, %v313_v15  ;;  %v344_v18 = vpop.f32.mrf.mxu1 }
  0xb1   :  { %v371_v20 = vadd.f32 %v370_v9, %v342_v17 }
  0xb3   :  { %v386_v23 = vmax.f32 %v371_v20, 0.0 }
  0xb4   :  { %v315_v24 = vpop.f32.mrf.mxu3 }
  0xb5   :  { %v394_v25 = vpack.c.bf16 %v386_v23, %v386_v23  ;;  %v316_v26 = vadd.f32 %v315_v24, %v98_v19 }
  0xb6   :  { %v375_v35 = vpop.f32.mrf.mxu2 }
  0xb7   :  { %403 = vst.msk [vmem:[%s816_s3 + $0xc] sm:$0xf] %vm399_vm1, %v394_v25  ;;  %v345_v27 = vadd.f32 %v344_v18, %v316_v26  ;;  %v346_v31 = vpop.f32.mrf.mxu1 }
  0xb9   :  { %v374_v29 = vadd.f32 %v373_v22, %v345_v27 }
  0xbb   :  { %v387_v33 = vmax.f32 %v374_v29, 0.0 }
  0xbc   :  { %v317_v37 = vpop.f32.mrf.mxu3 }
  0xbd   :  { %v395_v38 = vpack.c.bf16 %v387_v33, %v387_v33  ;;  %v318_v39 = vadd.f32 %v317_v37, %v103_v32 }
  0xbe   :  { %v334_v34 = vpop.f32.mrf.mxu0  ;;  %v378_v54 = vpop.f32.mrf.mxu2 }
  0xbf   :  { %v335_v36 = vadd.f32 %v334_v34, %v306_v30  ;;  %404 = vst.msk [vmem:[%s816_s3 + $0x10] sm:$0xf] %vm399_vm1, %v395_v38  ;;  %v347_v41 = vadd.f32 %v346_v31, %v318_v39  ;;  %v349_v49 = vpop.f32.mrf.mxu1 }
  0xc1   :  { %v364_v40 = vadd.f32 %v363_v63, %v335_v36  ;;  %v376_v43 = vadd.f32 %v375_v35, %v347_v41 }
  0xc3   :  { %v383_v42 = vmax.f32 %v364_v40, 0.0  ;;  %v388_v47 = vmax.f32 %v376_v43, 0.0 }
  0xc4   :  { %v320_v51 = vpop.f32.mrf.mxu3 }
  0xc5   :  { %v391_v45 = vpack.c.bf16 %v383_v42, %v383_v42  ;;  %v396_v52 = vpack.c.bf16 %v388_v47, %v388_v47  ;;  %v321_v53 = vadd.f32 %v320_v51, %v108_v46 }
  0xc6   :  { %v336_v48 = vpop.f32.mrf.mxu0  ;;  %v380_v3 = vpop.f32.mrf.mxu2 }
  0xc7   :  { %400 = vst.msk [vmem:[%s816_s3] sm:$0xf] %vm399_vm1, %v391_v45  ;;  %v337_v50 = vadd.f32 %v336_v48, %v308_v44  ;;  %v350_v56 = vadd.f32 %v349_v49, %v321_v53 }
  0xc8   :  { %405 = vst.msk [vmem:[%s816_s3 + $0x14] sm:$0xf] %vm399_vm1, %v396_v52 }
  0xc9   :  { %v366_v55 = vadd.f32 %v365_v0, %v337_v50  ;;  %v379_v58 = vadd.f32 %v378_v54, %v350_v56  ;;  %v351_v0 = vpop.f32.mrf.mxu1 }
  0xcb   :  { %v384_v57 = vmax.f32 %v366_v55, 0.0  ;;  %v389_v60 = vmax.f32 %v379_v58, 0.0 }
  0xcc   :  { %v322_v62 = vpop.f32.mrf.mxu3 }
  0xcd   :  { %v392_v59 = vpack.c.bf16 %v384_v57, %v384_v57  ;;  %v397_v63 = vpack.c.bf16 %v389_v60, %v389_v60  ;;  %v323_v1 = vadd.f32 %v322_v62, %v113_v61 }
  0xcf   :  { %401 = vst.msk [vmem:[%s816_s3 + $0x4] sm:$0xf] %vm399_vm1, %v392_v59  ;;  %v352_v2 = vadd.f32 %v351_v0, %v323_v1 }
  0xd0   :  { %406 = vst.msk [vmem:[%s816_s3 + $0x18] sm:$0xf] %vm399_vm1, %v397_v63 }
  0xd1   :  { %v381_v4 = vadd.f32 %v380_v3, %v352_v2 }
  0xd3   :  { %v390_v5 = vmax.f32 %v381_v4, 0.0 }
  0xd5   :  { %v398_v6 = vpack.c.bf16 %v390_v5, %v390_v5 }
  0xd7   :  { %407 = vst.msk [vmem:[%s816_s3 + $0x1c] sm:$0xf] %vm399_vm1, %v398_v6 }

// kernel: resnet_forward.14
= control target key start
LH: loop header
LB: loop body
LE: loop exit
PB: predicated region body
PF: predicated region fallthrough
CT: control target
= control target key end

     0   :  { %v1012_v6 = vmov 0   ;;  %vm478_vm0 = vcmask 523264   ;;  %vm676_vm1 = vcmask 257024   ;;  %s1350_s1 = inlined_call_operand.vmem [shape: bf16[576,32], index: 1, kind: input, shape index: {}]   ;;  %s1351_s2 = inlined_call_operand.vmem [shape: f32[64,1], index: 2, kind: input, shape index: {}]   ;;  %s1352_s0 = inlined_call_operand.vmem [shape: bf16[64,576], index: 0, kind: input, shape index: {}]   ;;  %s1353_s3 = inlined_call_operand.vmem [shape: bf16[64,32], index: 3, kind: input, shape index: {}]   ;;  %s1354_s4 = inlined_call_operand.vmem [shape: bf16[64,32], index: 4, kind: output, shape index: {}]  }
   0x1   :  { %v944_v0 = vld [vmem:[%s1350_s1 + $0x38] sm:$0xff]  ;;  %v943_v1 = vld [vmem:[%s1350_s1 + $0x30] sm:$0xff]  ;;  %v942_v4 = vld [vmem:[%s1350_s1 + $0x28] sm:$0xff]  ;;  %1010 = vset.pattern.permute.xlu1 %v1012_v6  ;;  %1009 = vset.pattern.permute.xlu0 %v1012_v6 }
   0x2   :  { %992 = vmatpush.bf16.msra.mxu1 %v944_v0  ;;  %993 = vmatpush.bf16.msra.mxu2 %v944_v0  ;;  %v968_v2 = vld [vmem:[%s1350_s1 + $0xf8] sm:$0xff]  ;;  %v967_v3 = vld [vmem:[%s1350_s1 + $0xf0] sm:$0xff]  ;;  %v966_v5 = vld [vmem:[%s1350_s1 + $0xe8] sm:$0xff] }
   0x3   :  { %491 = vmatpush.bf16.msra.mxu0 %v944_v0  ;;  %578 = vmatpush.bf16.msra.mxu3 %v968_v2  ;;  %v941_v7 = vld [vmem:[%s1350_s1 + $0x20] sm:$0xff]  ;;  %v116_v8 = vld [vmem:[%s1351_s2 + $0x10] sm:$0xff]  ;;  %v940_v11 = vld [vmem:[%s1350_s1 + $0x18] sm:$0xff] }
   0x4   :  { %1011 = vset.pattern.permute.xlu2 %v1012_v6  ;;  %v965_v9 = vld [vmem:[%s1350_s1 + $0xe0] sm:$0xff]  ;;  %134 = vperm.xlu1 %1010, %v116_v8   ;;  %v964_v12 = vld [vmem:[%s1350_s1 + $0xd8] sm:$0xff]  ;;  %v939_v13 = vld [vmem:[%s1350_s1 + $0x10] sm:$0xff] }
   0x5   :  { %v114_v10 = vld [vmem:[%s1351_s2] sm:$0xff]  ;;  %v117_v14 = vld [vmem:[%s1351_s2 + $0x18] sm:$0xff]  ;;  %v963_v15 = vld [vmem:[%s1350_s1 + $0xd0] sm:$0xff] }
   0x6   :  { %994 = vmatpush.bf16.msra.mxu1 %v943_v1  ;;  %995 = vmatpush.bf16.msra.mxu2 %v943_v1  ;;  %v115_v16 = vld [vmem:[%s1351_s2 + $0x8] sm:$0xff]  ;;  %v937_v19 = vld [vmem:[%s1350_s1] sm:$0xff]  ;;  %v924_v21 = vld [vmem:[%s1352_s0 + $0x38] sm:$0xf0] }
   0x7   :  { %492 = vmatpush.bf16.msra.mxu0 %v943_v1  ;;  %579 = vmatpush.bf16.msra.mxu3 %v967_v3  ;;  %v938_v17 = vld [vmem:[%s1350_s1 + $0x8] sm:$0xff]  ;;  %v751_v22 = vld [vmem:[%s1352_s0 + $0x78] sm:$0xf]  ;;  %v691_v26 = vld [vmem:[%s1352_s0] sm:$0xf] }
   0x8   :  { %124 = vperm.xlu0 %1009, %v114_v10   ;;  %v962_v18 = vld [vmem:[%s1350_s1 + $0xc8] sm:$0xff]  ;;  %v960_v24 = vld [vmem:[%s1350_s1 + $0xb8] sm:$0xff]  ;;  %v961_v27 = vld [vmem:[%s1350_s1 + $0xc0] sm:$0xff] }
   0x9   :  { %v711_v20 = vld [vmem:[%s1352_s0 + $0x28] sm:$0xf]  ;;  %v934_v23 = vld [vmem:[%s1352_s0 + $0x88] sm:$0xf0]  ;;  %v952_v25 = vld [vmem:[%s1350_s1 + $0x78] sm:$0xff] }
   0xa   :  { %996 = vmatpush.bf16.msra.mxu1 %v942_v4  ;;  %997 = vmatpush.bf16.msra.mxu2 %v942_v4  ;;  %v712_v28 = vor.u32 %v924_v21, %v711_v20  ;;  %v752_v29 = vor.u32 %v934_v23, %v751_v22  ;;  %v919_v30 = vld [vmem:[%s1352_s0 + $0x10] sm:$0xf0]  ;;  %v918_v31 = vld [vmem:[%s1352_s0 + $0xc] sm:$0xf]  ;;  %v701_v32 = vld [vmem:[%s1352_s0 + $0x1c] sm:$0xf0] }
   0xb   :  { %493 = vmatpush.bf16.msra.mxu0 %v942_v4  ;;  %580 = vmatpush.bf16.msra.mxu3 %v966_v5  ;;  %v972_v33 = vld [vmem:[%s1350_s1 + $0x118] sm:$0xff]  ;;  %v959_v34 = vld [vmem:[%s1350_s1 + $0xb0] sm:$0xff]  ;;  %v692_v37 = vor.u32 %v919_v30, %v691_v26  ;;  %v704_v38 = vor.u32 %v918_v31, %v701_v32  ;;  %v958_v41 = vld [vmem:[%s1350_s1 + $0xa8] sm:$0xff] }
   0xc   :  { %139 = vperm.xlu1 %1010, %v117_v14   ;;  %v951_v35 = vld [vmem:[%s1350_s1 + $0x70] sm:$0xff]  ;;  %v121_v36 = vld [vmem:[%s1351_s2 + $0x38] sm:$0xff]  ;;  %v950_v42 = vld [vmem:[%s1350_s1 + $0x68] sm:$0xff] }
   0xd   :  { %v971_v39 = vld [vmem:[%s1350_s1 + $0x110] sm:$0xff]  ;;  %v970_v43 = vld [vmem:[%s1350_s1 + $0x108] sm:$0xff]  ;;  %v957_v44 = vld [vmem:[%s1350_s1 + $0xa0] sm:$0xff] }
   0xe   :  { %998 = vmatpush.bf16.msra.mxu1 %v941_v7  ;;  %999 = vmatpush.bf16.msra.mxu2 %v941_v7  ;;  %v120_v40 = vld [vmem:[%s1351_s2 + $0x30] sm:$0xff]  ;;  %v949_v45 = vld [vmem:[%s1350_s1 + $0x60] sm:$0xff]  ;;  %v956_v49 = vld [vmem:[%s1350_s1 + $0x98] sm:$0xff] }
   0xf   :  { %494 = vmatpush.bf16.msra.mxu0 %v941_v7  ;;  %581 = vmatpush.bf16.msra.mxu3 %v965_v9  ;;  %v731_v46 = vld [vmem:[%s1352_s0 + $0x50] sm:$0xf]  ;;  %v929_v47 = vld [vmem:[%s1352_s0 + $0x60] sm:$0xf0]  ;;  %v948_v50 = vld [vmem:[%s1350_s1 + $0x58] sm:$0xff] }
  0x10   :  { %129 = vperm.xlu0 %1009, %v115_v16   ;;  %v969_v48 = vld [vmem:[%s1350_s1 + $0x100] sm:$0xff]  ;;  %v707_v51 = vld [vmem:[%s1352_s0 + $0x10] sm:$0xf]  ;;  %v732_v52 = vor.u32 %v929_v47, %v731_v46  ;;  %v923_v54 = vld [vmem:[%s1352_s0 + $0x34] sm:$0xf] }
  0x11   :  { %v921_v53 = vld [vmem:[%s1352_s0 + $0x20] sm:$0xf0]  ;;  %v721_v55 = vld [vmem:[%s1352_s0 + $0x44] sm:$0xf0]  ;;  %v955_v56 = vld [vmem:[%s1350_s1 + $0x90] sm:$0xff] }
  0x12   :  { %1000 = vmatpush.bf16.msra.mxu1 %v940_v11  ;;  %1001 = vmatpush.bf16.msra.mxu2 %v940_v11  ;;  %v947_v57 = vld [vmem:[%s1350_s1 + $0x50] sm:$0xff]  ;;  %v708_v58 = vor.u32 %v921_v53, %v707_v51  ;;  %v724_v59 = vor.u32 %v923_v54, %v721_v55  ;;  %v118_v60 = vld [vmem:[%s1351_s2 + $0x20] sm:$0xff]  ;;  %v954_v61 = vld [vmem:[%s1350_s1 + $0x88] sm:$0xff] }
  0x13   :  { %495 = vmatpush.bf16.msra.mxu0 %v940_v11  ;;  %582 = vmatpush.bf16.msra.mxu3 %v964_v12  ;;  %v946_v62 = vld [vmem:[%s1350_s1 + $0x48] sm:$0xff]  ;;  %v953_v63 = vld [vmem:[%s1350_s1 + $0x80] sm:$0xff]  ;;  %v920_v2 = vld [vmem:[%s1352_s0 + $0x18] sm:$0xf0] }
  0x14   :  { %159 = vperm.xlu1 %1010, %v121_v36   ;;  %144 = vperm.xlu2 %1011, %v118_v60   ;;  %v945_v0 = vld [vmem:[%s1350_s1 + $0x40] sm:$0xff]  ;;  %v699_v1 = vld [vmem:[%s1352_s0 + $0x8] sm:$0xf]  ;;  %v693_v6 = vld [vmem:[%s1352_s0 + $0x14] sm:$0xf0] }
  0x15   :  { %v119_v3 = vld [vmem:[%s1351_s2 + $0x28] sm:$0xff]  ;;  %v700_v4 = vor.u32 %v920_v2, %v699_v1  ;;  %v917_v5 = vld [vmem:[%s1352_s0 + $0x4] sm:$0xf]  ;;  %v727_v7 = vld [vmem:[%s1352_s0 + $0x38] sm:$0xf] }
  0x16   :  { %1002 = vmatpush.bf16.msra.mxu1 %v939_v13  ;;  %1003 = vmatpush.bf16.msra.mxu2 %v939_v13  ;;  %v696_v8 = vor.u32 %v917_v5, %v693_v6  ;;  %v926_v9 = vld [vmem:[%s1352_s0 + $0x48] sm:$0xf0]  ;;  %v928_v10 = vld [vmem:[%s1352_s0 + $0x5c] sm:$0xf]  ;;  %v741_v11 = vld [vmem:[%s1352_s0 + $0x6c] sm:$0xf0] }
  0x17   :  { %496 = vmatpush.bf16.msra.mxu0 %v939_v13  ;;  %583 = vmatpush.bf16.msra.mxu3 %v963_v15  ;;  %v728_v12 = vor.u32 %v926_v9, %v727_v7  ;;  %v744_v13 = vor.u32 %v928_v10, %v741_v11  ;;  %v719_v14 = vld [vmem:[%s1352_s0 + $0x30] sm:$0xf]  ;;  %v925_v15 = vld [vmem:[%s1352_s0 + $0x40] sm:$0xf0]  ;;  %v931_v21 = vld [vmem:[%s1352_s0 + $0x70] sm:$0xf0] }
  0x18   :  { %154 = vperm.xlu0 %1009, %v120_v40   ;;  %v720_v16 = vor.u32 %v925_v15, %v719_v14  ;;  %v933_v22 = vld [vmem:[%s1352_s0 + $0x84] sm:$0xf]  ;;  %v761_v23 = vld [vmem:[%s1352_s0 + $0x94] sm:$0xf0]  ;;  %v733_v30 = vld [vmem:[%s1352_s0 + $0x64] sm:$0xf0] }
  0x19   :  { %v739_v26 = vld [vmem:[%s1352_s0 + $0x58] sm:$0xf]  ;;  %v767_v32 = vld [vmem:[%s1352_s0 + $0x88] sm:$0xf]  ;;  %v935_v36 = vld [vmem:[%s1352_s0 + $0x90] sm:$0xf0] }
  0x1a   :  { %1004 = vmatpush.bf16.msra.mxu1 %v938_v17  ;;  %1005 = vmatpush.bf16.msra.mxu2 %v938_v17 }
  0x1b   :  { %497 = vmatpush.bf16.msra.mxu0 %v938_v17  ;;  %584 = vmatpush.bf16.msra.mxu3 %v962_v18  ;;  %v922_v17 = vld [vmem:[%s1352_s0 + $0x2c] sm:$0xf]  ;;  %v713_v18 = vld [vmem:[%s1352_s0 + $0x3c] sm:$0xf0] }
  0x1c   :  { %149 = vperm.xlu2 %1011, %v119_v3   ;;  %v716_v20 = vor.u32 %v922_v17, %v713_v18 }
  0x1e   :  { %1006 = vmatpush.bf16.msra.mxu1 %v937_v19  ;;  %1007 = vmatpush.bf16.msra.mxu2 %v937_v19 }
  0x1f   :  { %498 = vmatpush.bf16.msra.mxu0 %v937_v19  ;;  %585 = vmatpush.bf16.msra.mxu3 %v961_v27  ;;  %v747_v19 = vld [vmem:[%s1352_s0 + $0x60] sm:$0xf]  ;;  %v930_v27 = vld [vmem:[%s1352_s0 + $0x68] sm:$0xf0] }
  0x21   :  { %504 = vmatmul.bf16.vlgmr.msra.gmra.mxu1 %v712_v28  ;;  %514 = vmatmul.bf16.vlgmr.msra.gmra.mxu2 %v752_v29  ;;  %v740_v28 = vor.u32 %v930_v27, %v739_v26  ;;  %v927_v29 = vld [vmem:[%s1352_s0 + $0x54] sm:$0xf] }
  0x22   :  { %549 = vmatpush.bf16.msrb.mxu2 %v960_v24  ;;  %520 = vmatpush.bf16.msrb.mxu1 %v952_v25  ;;  %v748_v24 = vor.u32 %v931_v21, %v747_v19  ;;  %v764_v25 = vor.u32 %v933_v22, %v761_v23  ;;  %v736_v31 = vor.u32 %v927_v29, %v733_v30  ;;  %v989_v19 = vld [vmem:[%s1353_s3 + $0x8] sm:$0xff]  }
  0x23   :  { %611 = vmatpush.bf16.msrb.mxu0 %v972_v33  ;;  %586 = vmatmul.bf16.vlgmr.msra.gmra.mxu3 %v704_v38  ;;  %v936_v33 = vld [vmem:[%s1352_s0 + $0x98] sm:$0xf0]  ;;  %v979_v26 = vunpack.c.l.bf16 %v989_v19 }
  0x24   :  { %499 = vmatmul.bf16.vlgmr.msra.gmra.mxu0 %v692_v37  ;;  %v932_v38 = vld [vmem:[%s1352_s0 + $0x7c] sm:$0xf] }
  0x26   :  { %550 = vmatpush.bf16.msrb.mxu2 %v959_v34  ;;  %521 = vmatpush.bf16.msrb.mxu1 %v951_v35  ;;  %v768_v34 = vor.u32 %v936_v33, %v767_v32  ;;  %v759_v35 = vld [vmem:[%s1352_s0 + $0x80] sm:$0xf] }
  0x27   :  { %612 = vmatpush.bf16.msrb.mxu0 %v971_v39  ;;  %v760_v37 = vor.u32 %v935_v36, %v759_v35  ;;  %v753_v39 = vld [vmem:[%s1352_s0 + $0x8c] sm:$0xf0] }
  0x28   :  { %v756_v40 = vor.u32 %v932_v38, %v753_v39  ;;  %v980_v39 = vunpack.c.h.bf16 %v989_v19 }
  0x2a   :  { %551 = vmatpush.bf16.msrb.mxu2 %v958_v41  ;;  %522 = vmatpush.bf16.msrb.mxu1 %v950_v42 }
  0x2b   :  { %613 = vmatpush.bf16.msrb.mxu0 %v970_v43 }
  0x2e   :  { %552 = vmatpush.bf16.msrb.mxu2 %v957_v44  ;;  %523 = vmatpush.bf16.msrb.mxu1 %v949_v45 }
  0x2f   :  { %614 = vmatpush.bf16.msrb.mxu0 %v969_v48 }
  0x31   :  { %509 = vmatmul.bf16.gmra.mxu1 %v732_v52 }
  0x32   :  { %553 = vmatpush.bf16.msrb.mxu2 %v956_v49  ;;  %524 = vmatpush.bf16.msrb.mxu1 %v948_v50 }
  0x33   :  { %591 = vmatmul.bf16.gmra.mxu3 %v724_v59 }
  0x34   :  { %913 = vmatmul.msk.bf16.vlgmr.msrb.gmra.mxu0 %vm478_vm0, %v708_v58 }
  0x36   :  { %554 = vmatpush.bf16.msrb.mxu2 %v955_v56  ;;  %525 = vmatpush.bf16.msrb.mxu1 %v947_v57  ;;  %v974_v57 = vld [vmem:[%s1353_s3] sm:$0xff]  }
  0x3a   :  { %555 = vmatpush.bf16.msrb.mxu2 %v954_v61  ;;  %526 = vmatpush.bf16.msrb.mxu1 %v946_v62  ;;  %v975_v62 = vunpack.c.l.bf16 %v974_v57 }
  0x3e   :  { %556 = vmatpush.bf16.msrb.mxu2 %v953_v63  ;;  %527 = vmatpush.bf16.msrb.mxu1 %v945_v0 }
  0x41   :  { %557 = vmatmul.bf16.vlgmr.msrb.gmra.mxu2 %v700_v4  ;;  %528 = vmatmul.bf16.vlgmr.msrb.gmra.mxu1 %v696_v8 }
  0x43   :  { %596 = vmatmul.bf16.gmra.mxu3 %v744_v13 }
  0x44   :  { %914 = vmatmul.msk.bf16.gmra.mxu0 %vm478_vm0, %v728_v12  ;;  %v976_v12 = vunpack.c.h.bf16 %v974_v57 }
  0x51   :  { %562 = vmatmul.bf16.gmra.mxu2 %v720_v16  ;;  %533 = vmatmul.bf16.gmra.mxu1 %v716_v20 }
  0x53   :  { %601 = vmatmul.bf16.gmra.mxu3 %v764_v25 }
  0x54   :  { %915 = vmatmul.msk.bf16.gmra.mxu0 %vm478_vm0, %v748_v24 }
  0x61   :  { %567 = vmatmul.bf16.gmra.mxu2 %v740_v28  ;;  %538 = vmatmul.bf16.gmra.mxu1 %v736_v31 }
  0x64   :  { %916 = vmatmul.msk.bf16.gmra.mxu0 %vm478_vm0, %v768_v34 }
  0x6e   :  { %v145_v32 = vpop.permute.xlu2 %144 }
  0x71   :  { %572 = vmatmul.bf16.gmra.mxu2 %v760_v37  ;;  %543 = vmatmul.bf16.gmra.mxu1 %v756_v40 }
  0x76   :  { %v135_v3 = vpop.permute.xlu1 %134 }
  0x7a   :  { %v125_v51 = vpop.permute.xlu0 %124 }
  0x7e   :  { %v140_v20 = vpop.permute.xlu1 %139 }
  0x82   :  { %v130_v60 = vpop.permute.xlu0 %129 }
  0x9e   :  { %v505_v41 = vpop.f32.mrf.mxu1 }
  0x9f   :  { %v506_v13 = vadd.f32 %v505_v41, %v135_v3 }
  0xa1   :  { %v500_v42 = vpop.f32.mrf.mxu0 }
  0xa2   :  { %v501_v52 = vadd.f32 %v500_v42, %v125_v51 }
  0xa4   :  { %v1296_v46 = vpop.f32.mrf.mxu2 }
  0xa6   :  { %v507_v43 = vpop.f32.mrf.mxu1  ;;  %v587_v47 = vpop.f32.mrf.mxu3 }
  0xa7   :  { %v508_v27 = vadd.f32 %v507_v43, %v140_v20 }
  0xa9   :  { %v502_v44 = vpop.f32.mrf.mxu0 }
  0xaa   :  { %v503_v63 = vadd.f32 %v502_v44, %v130_v60 }
  0xac   :  { %v1300_v50 = vpop.f32.mrf.mxu2 }
  0xae   :  { %v1294_v45 = vpop.f32.mrf.mxu1  ;;  %v589_v55 = vpop.f32.mrf.mxu3 }
  0xaf   :  { %v511_v40 = vadd.f32 %v1294_v45, %v145_v32 }
  0xb1   :  { %v616_v49 = vpop.f32.mrf.mxu0 }
  0xb6   :  { %v1298_v48 = vpop.f32.mrf.mxu1  ;;  %v592_v6 = vpop.f32.mrf.mxu3 }
  0xb9   :  { %v618_v58 = vpop.f32.mrf.mxu0 }
  0xbe   :  { %v529_v53 = vpop.f32.mrf.mxu1  ;;  %v594_v23 = vpop.f32.mrf.mxu3 }
  0xbf   :  { %v530_v54 = vadd.f32 %v529_v53, %v501_v52  ;;  %v990_v52 = vld [vmem:[%s1353_s3 + $0x10] sm:$0xff]   ;;  %v150_v53 = vpop.permute.xlu2 %149 }
  0xc0   :  { %v983_v57 = vunpack.c.l.bf16 %v990_v52 }
  0xc1   :  { %v621_v9 = vpop.f32.mrf.mxu0 }
  0xc4   :  { %v558_v56 = vpop.f32.mrf.mxu2 }
  0xc5   :  { %v559_v59 = vadd.f32 %v558_v56, %v530_v54 }
  0xc6   :  { %v531_v1 = vpop.f32.mrf.mxu1  ;;  %v597_v41 = vpop.f32.mrf.mxu3 }
  0xc7   :  { %v588_v61 = vadd.f32 %v587_v47, %v559_v59  ;;  %v532_v2 = vadd.f32 %v531_v1, %v503_v63 }
  0xc9   :  { %v617_v0 = vadd.f32 %v616_v49, %v588_v61  ;;  %v623_v28 = vpop.f32.mrf.mxu0 }
  0xcb   :  { %v652_v4 = vadd.f32 %v975_v62, %v617_v0 }
  0xcc   :  { %v560_v5 = vpop.f32.mrf.mxu2 }
  0xcd   :  { %v660_v7 = vmax.f32 %v652_v4, 0.0  ;;  %v561_v8 = vadd.f32 %v560_v5, %v532_v2  ;;  %v155_v2 = vpop.permute.xlu0 %154 }
  0xce   :  { %v534_v15 = vpop.f32.mrf.mxu1  ;;  %v599_v61 = vpop.f32.mrf.mxu3 }
  0xcf   :  { %v668_v10 = vpack.c.bf16 %v660_v7, %v660_v7  ;;  %v590_v11 = vadd.f32 %v589_v55, %v561_v8  ;;  %v535_v16 = vadd.f32 %v534_v15, %v506_v13  ;;  %v984_v7 = vunpack.c.h.bf16 %v990_v52  ;;  %v160_v15 = vpop.permute.xlu1 %159 }
  0xd1   :  { %677 = vst.msk [vmem:[%s1354_s4] sm:$0xf] %vm676_vm1, %v668_v10  ;;  %v619_v14 = vadd.f32 %v618_v58, %v590_v11  ;;  %v626_v44 = vpop.f32.mrf.mxu0  ;;  %v513_v58 = vadd.f32 %v1298_v48, %v150_v53  ;;  %v516_v48 = vadd.f32 %v1296_v46, %v155_v2 }
  0xd3   :  { %v653_v17 = vadd.f32 %v976_v12, %v619_v14  ;;  %v991_v14 = vld [vmem:[%s1353_s3 + $0x18] sm:$0xff]  }
  0xd4   :  { %v563_v18 = vpop.f32.mrf.mxu2  ;;  %v987_v20 = vunpack.c.l.bf16 %v991_v14  ;;  %v988_v32 = vunpack.c.h.bf16 %v991_v14 }
  0xd5   :  { %v661_v21 = vmax.f32 %v653_v17, 0.0  ;;  %v564_v22 = vadd.f32 %v563_v18, %v535_v16 }
  0xd6   :  { %v536_v30 = vpop.f32.mrf.mxu1  ;;  %v602_v12 = vpop.f32.mrf.mxu3 }
  0xd7   :  { %v669_v24 = vpack.c.bf16 %v661_v21, %v661_v21  ;;  %v593_v25 = vadd.f32 %v592_v6, %v564_v22  ;;  %v537_v31 = vadd.f32 %v536_v30, %v508_v27  ;;  %v518_v21 = vadd.f32 %v1300_v50, %v160_v15 }
  0xd9   :  { %678 = vst.msk [vmem:[%s1354_s4 + $0x4] sm:$0xf] %vm676_vm1, %v669_v24  ;;  %v622_v29 = vadd.f32 %v621_v9, %v593_v25  ;;  %v628_v0 = vpop.f32.mrf.mxu0 }
  0xdb   :  { %v654_v33 = vadd.f32 %v979_v26, %v622_v29 }
  0xdc   :  { %v565_v34 = vpop.f32.mrf.mxu2 }
  0xdd   :  { %v662_v35 = vmax.f32 %v654_v33, 0.0  ;;  %v566_v36 = vadd.f32 %v565_v34, %v537_v31 }
  0xde   :  { %v539_v43 = vpop.f32.mrf.mxu1  ;;  %v604_v29 = vpop.f32.mrf.mxu3 }
  0xdf   :  { %v670_v37 = vpack.c.bf16 %v662_v35, %v662_v35  ;;  %v595_v38 = vadd.f32 %v594_v23, %v566_v36  ;;  %v540_v47 = vadd.f32 %v539_v43, %v511_v40 }
  0xe1   :  { %679 = vst.msk [vmem:[%s1354_s4 + $0x8] sm:$0xf] %vm676_vm1, %v670_v37  ;;  %v624_v42 = vadd.f32 %v623_v28, %v595_v38  ;;  %v631_v18 = vpop.f32.mrf.mxu0 }
  0xe3   :  { %v655_v49 = vadd.f32 %v980_v39, %v624_v42 }
  0xe4   :  { %v568_v51 = vpop.f32.mrf.mxu2 }
  0xe5   :  { %v663_v54 = vmax.f32 %v655_v49, 0.0  ;;  %v569_v55 = vadd.f32 %v568_v51, %v540_v47 }
  0xe6   :  { %v541_v60 = vpop.f32.mrf.mxu1 }
  0xe7   :  { %v671_v45 = vpack.c.bf16 %v663_v54, %v663_v54  ;;  %v598_v56 = vadd.f32 %v597_v41, %v569_v55  ;;  %v542_v62 = vadd.f32 %v541_v60, %v513_v58 }
  0xe9   :  { %680 = vst.msk [vmem:[%s1354_s4 + $0xc] sm:$0xf] %vm676_vm1, %v671_v45  ;;  %v627_v59 = vadd.f32 %v626_v44, %v598_v56  ;;  %v633_v33 = vpop.f32.mrf.mxu0 }
  0xeb   :  { %v656_v63 = vadd.f32 %v983_v57, %v627_v59 }
  0xec   :  { %v570_v1 = vpop.f32.mrf.mxu2 }
  0xed   :  { %v664_v3 = vmax.f32 %v656_v63, 0.0  ;;  %v571_v4 = vadd.f32 %v570_v1, %v542_v62 }
  0xee   :  { %v544_v9 = vpop.f32.mrf.mxu1 }
  0xef   :  { %v672_v5 = vpack.c.bf16 %v664_v3, %v664_v3  ;;  %v600_v6 = vadd.f32 %v599_v61, %v571_v4  ;;  %v545_v10 = vadd.f32 %v544_v9, %v516_v48 }
  0xf1   :  { %681 = vst.msk [vmem:[%s1354_s4 + $0x10] sm:$0xf] %vm676_vm1, %v672_v5  ;;  %v629_v8 = vadd.f32 %v628_v0, %v600_v6 }
  0xf3   :  { %v657_v11 = vadd.f32 %v984_v7, %v629_v8 }
  0xf4   :  { %v573_v13 = vpop.f32.mrf.mxu2 }
  0xf5   :  { %v665_v16 = vmax.f32 %v657_v11, 0.0  ;;  %v574_v17 = vadd.f32 %v573_v13, %v545_v10 }
  0xf6   :  { %v546_v23 = vpop.f32.mrf.mxu1 }
  0xf7   :  { %v673_v46 = vpack.c.bf16 %v665_v16, %v665_v16  ;;  %v603_v19 = vadd.f32 %v602_v12, %v574_v17  ;;  %v547_v24 = vadd.f32 %v546_v23, %v518_v21 }
  0xf9   :  { %682 = vst.msk [vmem:[%s1354_s4 + $0x14] sm:$0xf] %vm676_vm1, %v673_v46  ;;  %v632_v22 = vadd.f32 %v631_v18, %v603_v19 }
  0xfb   :  { %v658_v25 = vadd.f32 %v987_v20, %v632_v22 }
  0xfc   :  { %v575_v26 = vpop.f32.mrf.mxu2 }
  0xfd   :  { %v666_v27 = vmax.f32 %v658_v25, 0.0  ;;  %v576_v28 = vadd.f32 %v575_v26, %v547_v24 }
  0xff   :  { %v674_v30 = vpack.c.bf16 %v666_v27, %v666_v27  ;;  %v605_v31 = vadd.f32 %v604_v29, %v576_v28 }
 0x101   :  { %683 = vst.msk [vmem:[%s1354_s4 + $0x18] sm:$0xf] %vm676_vm1, %v674_v30  ;;  %v634_v50 = vadd.f32 %v633_v33, %v605_v31 }
 0x103   :  { %v659_v34 = vadd.f32 %v988_v32, %v634_v50 }
 0x105   :  { %v667_v35 = vmax.f32 %v659_v34, 0.0 }
 0x107   :  { %v675_v36 = vpack.c.bf16 %v667_v35, %v667_v35 }
 0x109   :  { %684 = vst.msk [vmem:[%s1354_s4 + $0x1c] sm:$0xf] %vm676_vm1, %v675_v36 }

// kernel: resnet_forward.15
= control target key start
LH: loop header
LB: loop body
LE: loop exit
PB: predicated region body
PF: predicated region fallthrough
CT: control target
= control target key end

     0   :  { %vm142_vm0 = vcmask 123904   ;;  %vm543_vm1 = vcmask 1041409   ;;  %vm545_vm2 = vcmask 1042434   ;;  %vm547_vm3 = vcmask 1043459   ;;  %s1143_s0 = inlined_call_operand.vmem [shape: bf16[64,2,16], index: 0, kind: input, shape index: {}]   ;;  %s1144_s2 = inlined_call_operand.vmem [shape: f32[10,1], index: 2, kind: input, shape index: {}]   ;;  %s1145_s1 = inlined_call_operand.vmem [shape: f32[10,64], index: 1, kind: input, shape index: {}]   ;;  %s1146_s3 = inlined_call_operand.vmem [shape: f32[10,2], index: 3, kind: output, shape index: {}]  }
   0x1   :  { %v18_v0 = vld [vmem:[%s1143_s0 + $0x4] sm:$0x1]  ;;  %v16_v1 = vld [vmem:[%s1143_s0 + $0x2] sm:$0x1]  ;;  %v14_v2 = vld [vmem:[%s1143_s0] sm:$0x1] }
   0x2   :  { %v82_v3 = vunpack.c.l.bf16 %v18_v0  ;;  %v80_v4 = vunpack.c.l.bf16 %v16_v1  ;;  %v78_v5 = vunpack.c.l.bf16 %v14_v2  ;;  %v19_v6 = vld [vmem:[%s1143_s0 + $0x5] sm:$0x1]  ;;  %v17_v7 = vld [vmem:[%s1143_s0 + $0x3] sm:$0x1]  ;;  %v15_v11 = vld [vmem:[%s1143_s0 + $0x1] sm:$0x1] }
   0x3   :  { %v83_v12 = vunpack.c.l.bf16 %v19_v6  ;;  %v81_v13 = vunpack.c.l.bf16 %v17_v7  ;;  %v79_v14 = vunpack.c.l.bf16 %v15_v11  ;;  %v72_v18 = vld [vmem:[%s1143_s0 + $0x3a] sm:$0x1]  ;;  %v71_v19 = vld [vmem:[%s1143_s0 + $0x39] sm:$0x1]  ;;  %v70_v20 = vld [vmem:[%s1143_s0 + $0x38] sm:$0x1] }
   0x4   :  { %v155_v8 = vsel %vm142_vm0, %v82_v3, 0.0  ;;  %v149_v9 = vsel %vm142_vm0, %v80_v4, 0.0  ;;  %v143_v10 = vsel %vm142_vm0, %v78_v5, 0.0  ;;  %v136_v21 = vunpack.c.l.bf16 %v72_v18  ;;  %v73_v27 = vld [vmem:[%s1143_s0 + $0x3b] sm:$0x1] }
   0x5   :  { %156 = vadd.xlane.f32.xlu2 %v155_v8  ;;  %150 = vadd.xlane.f32.xlu1 %v149_v9  ;;  %v158_v15 = vsel %vm142_vm0, %v83_v12, 0.0  ;;  %v152_v16 = vsel %vm142_vm0, %v81_v13, 0.0  ;;  %v146_v17 = vsel %vm142_vm0, %v79_v14, 0.0  ;;  %v135_v22 = vunpack.c.l.bf16 %v71_v19  ;;  %v63_v28 = vld [vmem:[%s1143_s0 + $0x31] sm:$0x1] }
   0x6   :  { %144 = vadd.xlane.f32.xlu0 %v143_v10  ;;  %v134_v23 = vunpack.c.l.bf16 %v70_v20  ;;  %v317_v24 = vsel %vm142_vm0, %v136_v21, 0.0  ;;  %v62_v29 = vld [vmem:[%s1143_s0 + $0x30] sm:$0x1]  ;;  %v137_v30 = vunpack.c.l.bf16 %v73_v27  ;;  %v127_v31 = vunpack.c.l.bf16 %v63_v28  ;;  %v54_v36 = vld [vmem:[%s1143_s0 + $0x28] sm:$0x1] }
   0x7   :  { %v314_v25 = vsel %vm142_vm0, %v135_v22, 0.0  ;;  %v126_v32 = vunpack.c.l.bf16 %v62_v29  ;;  %v74_v37 = vld [vmem:[%s1143_s0 + $0x3c] sm:$0x1]  ;;  %v64_v38 = vld [vmem:[%s1143_s0 + $0x32] sm:$0x1]  ;;  %v118_v39 = vunpack.c.l.bf16 %v54_v36  ;;  %vm549_vm4 = vcmask 1044484  }
   0x8   :  { %v311_v26 = vsel %vm142_vm0, %v134_v23, 0.0  ;;  %v320_v33 = vsel %vm142_vm0, %v137_v30, 0.0  ;;  %v290_v34 = vsel %vm142_vm0, %v127_v31, 0.0  ;;  %v138_v40 = vunpack.c.l.bf16 %v74_v37  ;;  %v75_v45 = vld [vmem:[%s1143_s0 + $0x3d] sm:$0x1] }
   0x9   :  { %v287_v35 = vsel %vm142_vm0, %v126_v32, 0.0  ;;  %v128_v41 = vunpack.c.l.bf16 %v64_v38  ;;  %v263_v42 = vsel %vm142_vm0, %v118_v39, 0.0  ;;  %v65_v46 = vld [vmem:[%s1143_s0 + $0x33] sm:$0x1]  ;;  %v55_v47 = vld [vmem:[%s1143_s0 + $0x29] sm:$0x1]  ;;  %v139_v48 = vunpack.c.l.bf16 %v75_v45 }
   0xa   :  { %v323_v43 = vsel %vm142_vm0, %v138_v40, 0.0  ;;  %v129_v49 = vunpack.c.l.bf16 %v65_v46  ;;  %v119_v50 = vunpack.c.l.bf16 %v55_v47  ;;  %v76_v54 = vld [vmem:[%s1143_s0 + $0x3e] sm:$0x1]  ;;  %v66_v55 = vld [vmem:[%s1143_s0 + $0x34] sm:$0x1]  ;;  %vm551_vm5 = vcmask 1045509  }
   0xb   :  { %v293_v44 = vsel %vm142_vm0, %v128_v41, 0.0  ;;  %v326_v51 = vsel %vm142_vm0, %v139_v48, 0.0  ;;  %v56_v56 = vld [vmem:[%s1143_s0 + $0x2a] sm:$0x1]  ;;  %v140_v57 = vunpack.c.l.bf16 %v76_v54  ;;  %v130_v58 = vunpack.c.l.bf16 %v66_v55  ;;  %v57_v63 = vld [vmem:[%s1143_s0 + $0x2b] sm:$0x1] }
   0xc   :  { %v296_v52 = vsel %vm142_vm0, %v129_v49, 0.0  ;;  %v266_v53 = vsel %vm142_vm0, %v119_v50, 0.0  ;;  %v120_v59 = vunpack.c.l.bf16 %v56_v56  ;;  %v47_v0 = vld [vmem:[%s1143_s0 + $0x21] sm:$0x1]  ;;  %v46_v1 = vld [vmem:[%s1143_s0 + $0x20] sm:$0x1]  ;;  %v121_v2 = vunpack.c.l.bf16 %v57_v63 }
   0xd   :  { %159 = vadd.xlane.f32.xlu2 %v158_v15  ;;  %153 = vadd.xlane.f32.xlu1 %v152_v16  ;;  %v329_v60 = vsel %vm142_vm0, %v140_v57, 0.0  ;;  %v299_v61 = vsel %vm142_vm0, %v130_v58, 0.0  ;;  %v111_v3 = vunpack.c.l.bf16 %v47_v0  ;;  %v110_v4 = vunpack.c.l.bf16 %v46_v1  ;;  %v48_v8 = vld [vmem:[%s1143_s0 + $0x22] sm:$0x1]  ;;  %v77_v9 = vld [vmem:[%s1143_s0 + $0x3f] sm:$0x1] }
   0xe   :  { %147 = vadd.xlane.f32.xlu0 %v146_v17  ;;  %v269_v62 = vsel %vm142_vm0, %v120_v59, 0.0  ;;  %v272_v5 = vsel %vm142_vm0, %v121_v2, 0.0  ;;  %v67_v10 = vld [vmem:[%s1143_s0 + $0x35] sm:$0x1]  ;;  %v112_v11 = vunpack.c.l.bf16 %v48_v8  ;;  %v141_v12 = vunpack.c.l.bf16 %v77_v9  ;;  %v38_v17 = vld [vmem:[%s1143_s0 + $0x18] sm:$0x1] }
   0xf   :  { %v242_v6 = vsel %vm142_vm0, %v111_v3, 0.0  ;;  %v239_v7 = vsel %vm142_vm0, %v110_v4, 0.0  ;;  %v131_v13 = vunpack.c.l.bf16 %v67_v10  ;;  %v68_v18 = vld [vmem:[%s1143_s0 + $0x36] sm:$0x1]  ;;  %v58_v19 = vld [vmem:[%s1143_s0 + $0x2c] sm:$0x1]  ;;  %v102_v20 = vunpack.c.l.bf16 %v38_v17 }
  0x10   :  { %v245_v14 = vsel %vm142_vm0, %v112_v11, 0.0  ;;  %v332_v15 = vsel %vm142_vm0, %v141_v12, 0.0  ;;  %v132_v21 = vunpack.c.l.bf16 %v68_v18  ;;  %v122_v22 = vunpack.c.l.bf16 %v58_v19  ;;  %v49_v27 = vld [vmem:[%s1143_s0 + $0x23] sm:$0x1]  ;;  %v39_v28 = vld [vmem:[%s1143_s0 + $0x19] sm:$0x1] }
  0x11   :  { %v302_v16 = vsel %vm142_vm0, %v131_v13, 0.0  ;;  %v215_v23 = vsel %vm142_vm0, %v102_v20, 0.0  ;;  %v113_v30 = vunpack.c.l.bf16 %v49_v27  ;;  %v103_v31 = vunpack.c.l.bf16 %v39_v28  ;;  %v40_v36 = vld [vmem:[%s1143_s0 + $0x1a] sm:$0x1]  ;;  %v69_v37 = vld [vmem:[%s1143_s0 + $0x37] sm:$0x1] }
  0x12   :  { %v104_v39 = vunpack.c.l.bf16 %v40_v36  ;;  %v133_v40 = vunpack.c.l.bf16 %v69_v37  ;;  %v30_v45 = vld [vmem:[%s1143_s0 + $0x10] sm:$0x1]  ;;  %v60_v46 = vld [vmem:[%s1143_s0 + $0x2e] sm:$0x1]  ;;  %v51_v54 = vld [vmem:[%s1143_s0 + $0x25] sm:$0x1] }
  0x13   :  { %v94_v48 = vunpack.c.l.bf16 %v30_v45  ;;  %v124_v49 = vunpack.c.l.bf16 %v60_v46  ;;  %v41_v55 = vld [vmem:[%s1143_s0 + $0x1b] sm:$0x1]  ;;  %v115_v57 = vunpack.c.l.bf16 %v51_v54  ;;  %v42_v63 = vld [vmem:[%s1143_s0 + $0x1c] sm:$0x1]  ;;  %v32_v0 = vld [vmem:[%s1143_s0 + $0x12] sm:$0x1] }
  0x14   :  { %v105_v58 = vunpack.c.l.bf16 %v41_v55  ;;  %v106_v2 = vunpack.c.l.bf16 %v42_v63  ;;  %v96_v3 = vunpack.c.l.bf16 %v32_v0  ;;  %v23_v8 = vld [vmem:[%s1143_s0 + $0x9] sm:$0x1]  ;;  %v22_v9 = vld [vmem:[%s1143_s0 + $0x8] sm:$0x1]  ;;  %v24_v19 = vld [vmem:[%s1143_s0 + $0xa] sm:$0x1] }
  0x15   :  { %318 = vadd.xlane.f32.xlu2 %v317_v24  ;;  %315 = vadd.xlane.f32.xlu1 %v314_v25  ;;  %v305_v24 = vsel %vm142_vm0, %v132_v21, 0.0  ;;  %v275_v25 = vsel %vm142_vm0, %v122_v22, 0.0  ;;  %v87_v11 = vunpack.c.l.bf16 %v23_v8  ;;  %v86_v12 = vunpack.c.l.bf16 %v22_v9  ;;  %v53_v20 = vld [vmem:[%s1143_s0 + $0x27] sm:$0x1]  ;;  %v43_v22 = vld [vmem:[%s1143_s0 + $0x1d] sm:$0x1] }
  0x16   :  { %312 = vadd.xlane.f32.xlu0 %v311_v26  ;;  %v59_v26 = vld [vmem:[%s1143_s0 + $0x2d] sm:$0x1]  ;;  %v477_v21 = vlaneseq  ;;  %v45_v63 = vld [vmem:[%s1143_s0 + $0x1f] sm:$0x1]  ;;  %v35_v0 = vld [vmem:[%s1143_s0 + $0x15] sm:$0x1] }
  0x17   :  { %v123_v29 = vunpack.c.l.bf16 %v59_v26  ;;  %v170_v17 = vsel %vm142_vm0, %v87_v11, 0.0  ;;  %v167_v18 = vsel %vm142_vm0, %v86_v12, 0.0  ;;  %v27_v11 = vld [vmem:[%s1143_s0 + $0xd] sm:$0x1]  ;;  %v36_v12 = vld [vmem:[%s1143_s0 + $0x16] sm:$0x1] }
  0x18   :  { %v888_v26 = vand.u32 127, %v477_v21  ;;  %vm553_vm6 = vcmask 1046534   ;;  %vm555_vm7 = vcmask 1047559   ;;  %vm614_vm8 = vcmask 523264  }
  0x19   :  { %v278_v32 = vsel %vm142_vm0, %v123_v29, 0.0  ;;  %vm644_vm9 = vcmask 15360   ;;  %vm646_vm10 = vcmask 9216  }
  0x1d   :  { %321 = vadd.xlane.f32.xlu2 %v320_v33  ;;  %291 = vadd.xlane.f32.xlu1 %v290_v34  ;;  %v248_v33 = vsel %vm142_vm0, %v113_v30, 0.0  ;;  %v218_v34 = vsel %vm142_vm0, %v103_v31, 0.0 }
  0x1e   :  { %288 = vadd.xlane.f32.xlu0 %v287_v35  ;;  %v50_v35 = vld [vmem:[%s1143_s0 + $0x24] sm:$0x1] }
  0x1f   :  { %v114_v38 = vunpack.c.l.bf16 %v50_v35 }
  0x21   :  { %v251_v41 = vsel %vm142_vm0, %v114_v38, 0.0 }
  0x25   :  { %264 = vadd.xlane.f32.xlu2 %v263_v42  ;;  %324 = vadd.xlane.f32.xlu1 %v323_v43  ;;  %v221_v42 = vsel %vm142_vm0, %v104_v39, 0.0  ;;  %v308_v43 = vsel %vm142_vm0, %v133_v40, 0.0  ;;  %v25_v39 = vld [vmem:[%s1143_s0 + $0xb] sm:$0x1]  ;;  %v44_v40 = vld [vmem:[%s1143_s0 + $0x1e] sm:$0x1] }
  0x26   :  { %294 = vadd.xlane.f32.xlu0 %v293_v44  ;;  %v31_v44 = vld [vmem:[%s1143_s0 + $0x11] sm:$0x1] }
  0x27   :  { %v95_v47 = vunpack.c.l.bf16 %v31_v44  ;;  %v34_v44 = vld [vmem:[%s1143_s0 + $0x14] sm:$0x1] }
  0x29   :  { %v194_v50 = vsel %vm142_vm0, %v95_v47, 0.0 }
  0x2d   :  { %327 = vadd.xlane.f32.xlu2 %v326_v51  ;;  %297 = vadd.xlane.f32.xlu1 %v296_v52  ;;  %v191_v51 = vsel %vm142_vm0, %v94_v48, 0.0  ;;  %v281_v52 = vsel %vm142_vm0, %v124_v49, 0.0  ;;  %v89_v48 = vunpack.c.l.bf16 %v25_v39  ;;  %v108_v49 = vunpack.c.l.bf16 %v44_v40 }
  0x2e   :  { %267 = vadd.xlane.f32.xlu0 %v266_v53  ;;  %v61_v53 = vld [vmem:[%s1143_s0 + $0x2f] sm:$0x1] }
  0x2f   :  { %v125_v56 = vunpack.c.l.bf16 %v61_v53 }
  0x31   :  { %v284_v59 = vsel %vm142_vm0, %v125_v56, 0.0 }
  0x35   :  { %330 = vadd.xlane.f32.xlu2 %v329_v60  ;;  %300 = vadd.xlane.f32.xlu1 %v299_v61  ;;  %v254_v60 = vsel %vm142_vm0, %v115_v57, 0.0  ;;  %v224_v61 = vsel %vm142_vm0, %v105_v58, 0.0  ;;  %v176_v58 = vsel %vm142_vm0, %v89_v48, 0.0 }
  0x36   :  { %270 = vadd.xlane.f32.xlu0 %v269_v62  ;;  %v52_v62 = vld [vmem:[%s1143_s0 + $0x26] sm:$0x1] }
  0x37   :  { %v116_v1 = vunpack.c.l.bf16 %v52_v62  ;;  %v26_v62 = vld [vmem:[%s1143_s0 + $0xc] sm:$0x1] }
  0x39   :  { %v257_v4 = vsel %vm142_vm0, %v116_v1, 0.0  ;;  %v90_v1 = vunpack.c.l.bf16 %v26_v62 }
  0x3d   :  { %273 = vadd.xlane.f32.xlu2 %v272_v5  ;;  %243 = vadd.xlane.f32.xlu1 %v242_v6  ;;  %v227_v5 = vsel %vm142_vm0, %v106_v2, 0.0  ;;  %v197_v6 = vsel %vm142_vm0, %v96_v3, 0.0  ;;  %v109_v2 = vunpack.c.l.bf16 %v45_v63  ;;  %v99_v3 = vunpack.c.l.bf16 %v35_v0 }
  0x3e   :  { %240 = vadd.xlane.f32.xlu0 %v239_v7  ;;  %v33_v7 = vld [vmem:[%s1143_s0 + $0x13] sm:$0x1] }
  0x3f   :  { %v97_v10 = vunpack.c.l.bf16 %v33_v7  ;;  %v179_v7 = vsel %vm142_vm0, %v90_v1, 0.0  ;;  %v236_v8 = vsel %vm142_vm0, %v109_v2, 0.0  ;;  %v206_v9 = vsel %vm142_vm0, %v99_v3, 0.0 }
  0x45   :  { %246 = vadd.xlane.f32.xlu2 %v245_v14  ;;  %333 = vadd.xlane.f32.xlu1 %v332_v15 }
  0x46   :  { %303 = vadd.xlane.f32.xlu0 %v302_v16  ;;  %v200_v16 = vsel %vm142_vm0, %v97_v10, 0.0  ;;  %v37_v10 = vld [vmem:[%s1143_s0 + $0x17] sm:$0x1] }
  0x4d   :  { %216 = vadd.xlane.f32.xlu2 %v215_v23  ;;  %306 = vadd.xlane.f32.xlu1 %v305_v24  ;;  %v88_v23 = vunpack.c.l.bf16 %v24_v19  ;;  %v117_v24 = vunpack.c.l.bf16 %v53_v20 }
  0x4e   :  { %276 = vadd.xlane.f32.xlu0 %v275_v25  ;;  %v107_v25 = vunpack.c.l.bf16 %v43_v22  ;;  %v20_v22 = vld [vmem:[%s1143_s0 + $0x6] sm:$0x1] }
  0x4f   :  { %v173_v35 = vsel %vm142_vm0, %v88_v23, 0.0  ;;  %v260_v36 = vsel %vm142_vm0, %v117_v24, 0.0  ;;  %v29_v23 = vld [vmem:[%s1143_s0 + $0xf] sm:$0x1]  ;;  %v28_v24 = vld [vmem:[%s1143_s0 + $0xe] sm:$0x1] }
  0x50   :  { %v230_v38 = vsel %vm142_vm0, %v107_v25, 0.0  ;;  %v84_v25 = vunpack.c.l.bf16 %v20_v22 }
  0x55   :  { %279 = vadd.xlane.f32.xlu2 %v278_v32  ;;  %249 = vadd.xlane.f32.xlu1 %v248_v33 }
  0x56   :  { %219 = vadd.xlane.f32.xlu0 %v218_v34 }
  0x5d   :  { %252 = vadd.xlane.f32.xlu2 %v251_v41  ;;  %222 = vadd.xlane.f32.xlu1 %v221_v42 }
  0x5e   :  { %309 = vadd.xlane.f32.xlu0 %v308_v43 }
  0x65   :  { %195 = vadd.xlane.f32.xlu2 %v194_v50  ;;  %192 = vadd.xlane.f32.xlu1 %v191_v51 }
  0x66   :  { %282 = vadd.xlane.f32.xlu0 %v281_v52  ;;  %v98_v52 = vunpack.c.l.bf16 %v34_v44 }
  0x6d   :  { %285 = vadd.xlane.f32.xlu2 %v284_v59  ;;  %255 = vadd.xlane.f32.xlu1 %v254_v60  ;;  %v233_v59 = vsel %vm142_vm0, %v108_v49, 0.0 }
  0x6e   :  { %225 = vadd.xlane.f32.xlu0 %v224_v61  ;;  %v203_v61 = vsel %vm142_vm0, %v98_v52, 0.0 }
  0x75   :  { %258 = vadd.xlane.f32.xlu2 %v257_v4  ;;  %228 = vadd.xlane.f32.xlu1 %v227_v5 }
  0x76   :  { %198 = vadd.xlane.f32.xlu0 %v197_v6 }
  0x78   :  { %v157_v13 = vpop.xlane.xlu2 %156  ;;  %v151_v14 = vpop.xlane.xlu1 %150 }
  0x79   :  { %v145_v15 = vpop.xlane.xlu0 %144  ;;  %v337_v30 = vmul.f32 0.0625, %v151_v14  ;;  %v339_v37 = vmul.f32 0.0625, %v157_v13  ;;  %v101_v13 = vunpack.c.l.bf16 %v37_v10  ;;  %v91_v14 = vunpack.c.l.bf16 %v27_v11 }
  0x7a   :  { %v335_v27 = vmul.f32 0.0625, %v145_v15  ;;  %v100_v15 = vunpack.c.l.bf16 %v36_v12 }
  0x7b   :  { %v481_v45 = vperm.slane %v337_v30, %v888_v26  ;;  %v483_v50 = vperm.slane %v339_v37, %v888_v26  ;;  %v212_v19 = vsel %vm142_vm0, %v101_v13, 0.0  ;;  %v182_v20 = vsel %vm142_vm0, %v91_v14, 0.0 }
  0x7c   :  { %v479_v41 = vperm.slane %v335_v27, %v888_v26  ;;  %v209_v21 = vsel %vm142_vm0, %v100_v15, 0.0  ;;  %v93_v27 = vunpack.c.l.bf16 %v29_v23 }
  0x7d   :  { %201 = vadd.xlane.f32.xlu2 %v200_v16  ;;  %171 = vadd.xlane.f32.xlu1 %v170_v17 }
  0x7e   :  { %168 = vadd.xlane.f32.xlu0 %v167_v18 }
  0x80   :  { %v160_v28 = vpop.xlane.xlu2 %159  ;;  %v154_v29 = vpop.xlane.xlu1 %153 }
  0x81   :  { %v338_v31 = vmul.f32 0.0625, %v154_v29  ;;  %v148_v32 = vpop.xlane.xlu0 %147  ;;  %v340_v33 = vmul.f32 0.0625, %v160_v28  ;;  %v92_v28 = vunpack.c.l.bf16 %v28_v24 }
  0x82   :  { %v336_v34 = vmul.f32 0.0625, %v148_v32  ;;  %v161_v32 = vsel %vm142_vm0, %v84_v25, 0.0 }
  0x83   :  { %v482_v42 = vperm.slane %v338_v31, %v888_v26  ;;  %v484_v46 = vperm.slane %v340_v33, %v888_v26  ;;  %v188_v33 = vsel %vm142_vm0, %v93_v27, 0.0 }
  0x84   :  { %v480_v43 = vperm.slane %v336_v34, %v888_v26  ;;  %v185_v34 = vsel %vm142_vm0, %v92_v28, 0.0 }
  0x85   :  { %174 = vadd.xlane.f32.xlu2 %v173_v35  ;;  %261 = vadd.xlane.f32.xlu1 %v260_v36  ;;  %v21_v35 = vld [vmem:[%s1143_s0 + $0x7] sm:$0x1] }
  0x86   :  { %v544_v47 = vsel %vm543_vm1, %v480_v43, %v479_v41  ;;  %231 = vadd.xlane.f32.xlu0 %v230_v38  ;;  %v85_v36 = vunpack.c.l.bf16 %v21_v35 }
  0x87   :  { %v546_v51 = vsel %vm545_vm2, %v481_v45, %v544_v47 }
  0x88   :  { %v910_v53 = vpop.xlane.xlu2 %318  ;;  %v316_v54 = vpop.xlane.xlu1 %315  ;;  %v548_v55 = vsel %vm547_vm3, %v482_v42, %v546_v51  ;;  %v164_v40 = vsel %vm142_vm0, %v85_v36, 0.0 }
  0x89   :  { %v313_v56 = vpop.xlane.xlu0 %312  ;;  %v550_v57 = vsel %vm549_vm4, %v483_v50, %v548_v55  ;;  %v392_v41 = vmul.f32 0.0625, %v316_v54  ;;  %v393_v43 = vmul.f32 0.0625, %v910_v53 }
  0x8a   :  { %v917_v60 = vsel %vm551_vm5, %v484_v46, %v550_v57  ;;  %v391_v42 = vmul.f32 0.0625, %v313_v56 }
  0x8b   :  { %v536_v46 = vperm.slane %v392_v41, %v888_v26  ;;  %v537_v54 = vperm.slane %v393_v43, %v888_v26 }
  0x8c   :  { %v535_v47 = vperm.slane %v391_v42, %v888_v26 }
  0x8d   :  { %177 = vadd.xlane.f32.xlu2 %v176_v58  ;;  %234 = vadd.xlane.f32.xlu1 %v233_v59 }
  0x8e   :  { %204 = vadd.xlane.f32.xlu0 %v203_v61  ;;  %v599_v58 = vsel %vm543_vm1, %v536_v46, %v535_v47 }
  0x8f   :  { %v600_v0 = vsel %vm545_vm2, %v537_v54, %v599_v58 }
  0x90   :  { %v322_v4 = vpop.xlane.xlu2 %321  ;;  %v929_v5 = vpop.xlane.xlu1 %291 }
  0x91   :  { %v931_v6 = vpop.xlane.xlu0 %288  ;;  %v394_v48 = vmul.f32 0.0625, %v322_v4 }
  0x93   :  { %v538_v59 = vperm.slane %v394_v48, %v888_v26 }
  0x95   :  { %180 = vadd.xlane.f32.xlu2 %v179_v7  ;;  %237 = vadd.xlane.f32.xlu1 %v236_v8  ;;  %v601_v4 = vsel %vm547_vm3, %v538_v59, %v600_v0 }
  0x96   :  { %207 = vadd.xlane.f32.xlu0 %v206_v9 }
  0x98   :  { %v945_v16 = vpop.xlane.xlu2 %264  ;;  %v325_v17 = vpop.xlane.xlu1 %324 }
  0x99   :  { %v947_v18 = vpop.xlane.xlu0 %294  ;;  %v395_v51 = vmul.f32 0.0625, %v325_v17 }
  0x9a   :  { %v385_v23 = vmul.f32 0.0625, %v947_v18 }
  0x9b   :  { %v539_v61 = vperm.slane %v395_v51, %v888_v26 }
  0x9d   :  { %213 = vadd.xlane.f32.xlu2 %v212_v19  ;;  %183 = vadd.xlane.f32.xlu1 %v182_v20  ;;  %v602_v9 = vsel %vm549_vm4, %v539_v61, %v601_v4  ;;  %v384_v19 = vmul.f32 0.0625, %v929_v5  ;;  %v383_v20 = vmul.f32 0.0625, %v931_v6 }
  0x9e   :  { %210 = vadd.xlane.f32.xlu0 %v209_v21 }
  0x9f   :  { %v528_v28 = vperm.slane %v384_v19, %v888_v26 }
  0xa0   :  { %v328_v29 = vpop.xlane.xlu2 %327  ;;  %v298_v30 = vpop.xlane.xlu1 %297 }
  0xa1   :  { %v961_v31 = vpop.xlane.xlu0 %267  ;;  %v396_v55 = vmul.f32 0.0625, %v328_v29  ;;  %v386_v25 = vmul.f32 0.0625, %v298_v30  ;;  %v527_v29 = vperm.slane %v383_v20, %v888_v26 }
  0xa3   :  { %v540_v63 = vperm.slane %v396_v55, %v888_v26  ;;  %v530_v5 = vperm.slane %v386_v25, %v888_v26  ;;  %v592_v35 = vsel %vm543_vm1, %v528_v28, %v527_v29 }
  0xa5   :  { %162 = vadd.xlane.f32.xlu2 %v161_v32  ;;  %189 = vadd.xlane.f32.xlu1 %v188_v33  ;;  %v603_v11 = vsel %vm551_vm5, %v540_v63, %v602_v9  ;;  %v529_v33 = vperm.slane %v385_v23, %v888_v26 }
  0xa6   :  { %186 = vadd.xlane.f32.xlu0 %v185_v34 }
  0xa7   :  { %v593_v30 = vsel %vm545_vm2, %v529_v33, %v592_v35 }
  0xa8   :  { %v331_v37 = vpop.xlane.xlu2 %330  ;;  %v301_v38 = vpop.xlane.xlu1 %300  ;;  %v594_v41 = vsel %vm547_vm3, %v530_v5, %v593_v30 }
  0xa9   :  { %v969_v39 = vpop.xlane.xlu0 %270  ;;  %v397_v56 = vmul.f32 0.0625, %v331_v37  ;;  %v387_v27 = vmul.f32 0.0625, %v301_v38 }
  0xaa   :  { %v377_v51 = vmul.f32 0.0625, %v969_v39 }
  0xab   :  { %v541_v1 = vperm.slane %v397_v56, %v888_v26  ;;  %v531_v6 = vperm.slane %v387_v27, %v888_v26 }
  0xad   :  { %v604_v12 = vsel %vm553_vm6, %v541_v1, %v603_v11  ;;  %v595_v43 = vsel %vm549_vm4, %v531_v6, %v594_v41 }
  0xae   :  { %165 = vadd.xlane.f32.xlu0 %v164_v40 }
  0xb0   :  { %v973_v44 = vpop.xlane.xlu2 %273  ;;  %v244_v45 = vpop.xlane.xlu1 %243 }
  0xb1   :  { %v368_v49 = vmul.f32 0.0625, %v244_v45  ;;  %v241_v50 = vpop.xlane.xlu0 %240 }
  0xb2   :  { %v367_v52 = vmul.f32 0.0625, %v241_v50  ;;  %v376_v50 = vmul.f32 0.0625, %v961_v31 }
  0xb3   :  { %v512_v57 = vperm.slane %v368_v49, %v888_v26  ;;  %v375_v49 = vmul.f32 0.0625, %v945_v16  ;;  %v521_v16 = vperm.slane %v377_v51, %v888_v26 }
  0xb4   :  { %v511_v53 = vperm.slane %v367_v52, %v888_v26  ;;  %v520_v58 = vperm.slane %v376_v50, %v888_v26 }
  0xb6   :  { %v984_v62 = vsel %vm543_vm1, %v512_v57, %v511_v53  ;;  %v378_v57 = vmul.f32 0.0625, %v973_v44  ;;  %v519_v53 = vperm.slane %v375_v49, %v888_v26 }
  0xb8   :  { %v989_v2 = vpop.xlane.xlu2 %246  ;;  %v334_v3 = vpop.xlane.xlu1 %333  ;;  %v522_v61 = vperm.slane %v378_v57, %v888_v26  ;;  %v585_v63 = vsel %vm543_vm1, %v520_v58, %v519_v53 }
  0xb9   :  { %v398_v7 = vmul.f32 0.0625, %v334_v3  ;;  %v304_v8 = vpop.xlane.xlu0 %303  ;;  %v586_v44 = vsel %vm545_vm2, %v521_v16, %v585_v63 }
  0xba   :  { %v388_v32 = vmul.f32 0.0625, %v304_v8 }
  0xbb   :  { %v542_v10 = vperm.slane %v398_v7, %v888_v26  ;;  %v587_v7 = vsel %vm547_vm3, %v522_v61, %v586_v44 }
  0xbc   :  { %v532_v18 = vperm.slane %v388_v32, %v888_v26 }
  0xbd   :  { %v605_v13 = vsel %vm555_vm7, %v542_v10, %v604_v12 }
  0xbe   :  { %629 = vmatpush.msra.mxu0 %v605_v13  ;;  %654 = vmatpush.msra.mxu1 %v605_v13  ;;  %v596_v46 = vsel %vm551_vm5, %v532_v18, %v595_v43 }
  0xc0   :  { %v997_v14 = vpop.xlane.xlu2 %216  ;;  %v307_v15 = vpop.xlane.xlu1 %306 }
  0xc1   :  { %v277_v17 = vpop.xlane.xlu0 %276  ;;  %v389_v34 = vmul.f32 0.0625, %v307_v15 }
  0xc2   :  { %v379_v56 = vmul.f32 0.0625, %v277_v17 }
  0xc3   :  { %v533_v38 = vperm.slane %v389_v34, %v888_v26 }
  0xc4   :  { %v523_v39 = vperm.slane %v379_v56, %v888_v26 }
  0xc5   :  { %v597_v47 = vsel %vm553_vm6, %v533_v38, %v596_v46 }
  0xc6   :  { %v588_v10 = vsel %vm549_vm4, %v523_v39, %v587_v7 }
  0xc8   :  { %v280_v21 = vpop.xlane.xlu2 %279  ;;  %v1001_v22 = vpop.xlane.xlu1 %249 }
  0xc9   :  { %v1004_v24 = vpop.xlane.xlu0 %219  ;;  %v380_v59 = vmul.f32 0.0625, %v280_v21  ;;  %v369_v21 = vmul.f32 0.0625, %v989_v2  ;;  %v370_v27 = vmul.f32 0.0625, %v1001_v22 }
  0xcb   :  { %v524_v0 = vperm.slane %v380_v59, %v888_v26  ;;  %v513_v33 = vperm.slane %v369_v21, %v888_v26  ;;  %v514_v5 = vperm.slane %v370_v27, %v888_v26 }
  0xcd   :  { %v589_v12 = vsel %vm551_vm5, %v524_v0, %v588_v10  ;;  %v579_v2 = vsel %vm545_vm2, %v513_v33, %v984_v62  ;;  %v359_v62 = vmul.f32 0.0625, %v997_v14  ;;  %v666_v10 = vmov 0  }
  0xce   :  { %663 = vset.pattern.permute.xlu1 %v666_v10  ;;  %664 = vset.pattern.permute.xlu2 %v666_v10 }
  0xcf   :  { %665 = vset.pattern.permute.xlu0 %v666_v10  ;;  %v399_v10 = vld [vmem:[%s1145_s1] sm:$0xff] }
  0xd0   :  { %v253_v36 = vpop.xlane.xlu2 %252  ;;  %v1013_v37 = vpop.xlane.xlu1 %222 }
  0xd1   :  { %v310_v40 = vpop.xlane.xlu0 %309  ;;  %v371_v29 = vmul.f32 0.0625, %v253_v36  ;;  %v580_v36 = vsel %vm547_vm3, %v514_v5, %v579_v2 }
  0xd2   :  { %v390_v42 = vmul.f32 0.0625, %v310_v40 }
  0xd3   :  { %v515_v6 = vperm.slane %v371_v29, %v888_v26 }
  0xd4   :  { %v534_v45 = vperm.slane %v390_v42, %v888_v26 }
  0xd5   :  { %v581_v41 = vsel %vm549_vm4, %v515_v6, %v580_v36 }
  0xd6   :  { %v598_v48 = vsel %vm555_vm7, %v534_v45, %v597_v47  ;;  %v360_v47 = vmul.f32 0.0625, %v1004_v24 }
  0xd7   :  { %630 = vmatpush.msra.mxu0 %v598_v48  ;;  %655 = vmatpush.msra.mxu1 %v598_v48  ;;  %v361_v48 = vmul.f32 0.0625, %v1013_v37 }
  0xd8   :  { %v1026_v52 = vpop.xlane.xlu2 %195  ;;  %v1028_v55 = vpop.xlane.xlu1 %192  ;;  %v504_v56 = vperm.slane %v360_v47, %v888_v26 }
  0xd9   :  { %v283_v54 = vpop.xlane.xlu0 %282  ;;  %v505_v58 = vperm.slane %v361_v48, %v888_v26  ;;  %v352_v39 = vmul.f32 0.0625, %v1026_v52  ;;  %v351_v63 = vmul.f32 0.0625, %v1028_v55 }
  0xda   :  { %v381_v31 = vmul.f32 0.0625, %v283_v54  ;;  %v503_v54 = vperm.slane %v359_v62, %v888_v26 }
  0xdc   :  { %v525_v1 = vperm.slane %v381_v31, %v888_v26  ;;  %v571_v24 = vsel %vm543_vm1, %v504_v56, %v503_v54 }
  0xdd   :  { %v572_v37 = vsel %vm545_vm2, %v505_v58, %v571_v24 }
  0xde   :  { %v590_v13 = vsel %vm553_vm6, %v525_v1, %v589_v12 }
  0xe0   :  { %v286_v3 = vpop.xlane.xlu2 %285  ;;  %v256_v4 = vpop.xlane.xlu1 %255 }
  0xe1   :  { %v382_v8 = vmul.f32 0.0625, %v286_v3  ;;  %v226_v9 = vpop.xlane.xlu0 %225  ;;  %v372_v32 = vmul.f32 0.0625, %v256_v4  ;;  %v401_v3 = vld [vmem:[%s1144_s2] sm:$0xff]  ;;  %v402_v4 = vld [vmem:[%s1144_s2 + $0x8] sm:$0x3] }
  0xe2   :  { %v362_v51 = vmul.f32 0.0625, %v226_v9  ;;  %405 = vperm.xlu1 %663, %v401_v3   ;;  %410 = vperm.xlu2 %664, %v402_v4  }
  0xe3   :  { %v526_v11 = vperm.slane %v382_v8, %v888_v26  ;;  %v516_v35 = vperm.slane %v372_v32, %v888_v26 }
  0xe4   :  { %v506_v14 = vperm.slane %v362_v51, %v888_v26 }
  0xe5   :  { %v591_v15 = vsel %vm555_vm7, %v526_v11, %v590_v13  ;;  %v582_v43 = vsel %vm551_vm5, %v516_v35, %v581_v41 }
  0xe6   :  { %631 = vmatpush.msra.mxu0 %v591_v15  ;;  %656 = vmatpush.msra.mxu1 %v591_v15  ;;  %v573_v7 = vsel %vm547_vm3, %v506_v14, %v572_v37  ;;  %v496_v15 = vperm.slane %v352_v39, %v888_v26 }
  0xe8   :  { %v259_v17 = vpop.xlane.xlu2 %258  ;;  %v229_v19 = vpop.xlane.xlu1 %228 }
  0xe9   :  { %v199_v20 = vpop.xlane.xlu0 %198  ;;  %v373_v34 = vmul.f32 0.0625, %v259_v17  ;;  %v363_v53 = vmul.f32 0.0625, %v229_v19  ;;  %v495_v17 = vperm.slane %v351_v63, %v888_v26 }
  0xea   :  { %v353_v55 = vmul.f32 0.0625, %v199_v20 }
  0xeb   :  { %v517_v18 = vperm.slane %v373_v34, %v888_v26  ;;  %v507_v31 = vperm.slane %v363_v53, %v888_v26  ;;  %v564_v32 = vsel %vm543_vm1, %v496_v15, %v495_v17 }
  0xec   :  { %v497_v20 = vperm.slane %v353_v55, %v888_v26 }
  0xed   :  { %v583_v45 = vsel %vm553_vm6, %v517_v18, %v582_v43  ;;  %v574_v52 = vsel %vm549_vm4, %v507_v31, %v573_v7 }
  0xee   :  { %v565_v36 = vsel %vm545_vm2, %v497_v20, %v564_v32 }
  0xf0   :  { %v202_v23 = vpop.xlane.xlu2 %201  ;;  %v1047_v25 = vpop.xlane.xlu1 %171 }
  0xf1   :  { %v1050_v28 = vpop.xlane.xlu0 %168  ;;  %v354_v11 = vmul.f32 0.0625, %v202_v23  ;;  %v344_v6 = vmul.f32 0.0625, %v1047_v25 }
  0xf2   :  { %v343_v35 = vmul.f32 0.0625, %v1050_v28 }
  0xf3   :  { %v498_v23 = vperm.slane %v354_v11, %v888_v26  ;;  %v488_v28 = vperm.slane %v344_v6, %v888_v26 }
  0xf4   :  { %v487_v62 = vperm.slane %v343_v35, %v888_v26 }
  0xf5   :  { %v566_v41 = vsel %vm547_vm3, %v498_v23, %v565_v36 }
  0xf6   :  { %v557_v56 = vsel %vm543_vm1, %v488_v28, %v487_v62 }
  0xf8   :  { %v1059_v30 = vpop.xlane.xlu2 %174  ;;  %v262_v22 = vpop.xlane.xlu1 %261 }
  0xf9   :  { %v374_v38 = vmul.f32 0.0625, %v262_v22  ;;  %v232_v40 = vpop.xlane.xlu0 %231 }
  0xfa   :  { %v364_v59 = vmul.f32 0.0625, %v232_v40 }
  0xfb   :  { %v518_v42 = vperm.slane %v374_v38, %v888_v26  ;;  %v345_v38 = vmul.f32 0.0625, %v1059_v30 }
  0xfc   :  { %v508_v61 = vperm.slane %v364_v59, %v888_v26 }
  0xfd   :  { %v584_v46 = vsel %vm555_vm7, %v518_v42, %v583_v45  ;;  %v489_v30 = vperm.slane %v345_v38, %v888_v26 }
  0xfe   :  { %632 = vmatpush.msra.mxu0 %v584_v46  ;;  %657 = vmatpush.msra.mxu1 %v584_v46  ;;  %v575_v13 = vsel %vm551_vm5, %v508_v61, %v574_v52  ;;  %v400_v52 = vld [vmem:[%s1145_s1 + $0x8] sm:$0x3] }
 0x100   :  { %v178_v49 = vpop.xlane.xlu2 %177  ;;  %v235_v50 = vpop.xlane.xlu1 %234 }
 0x101   :  { %v205_v57 = vpop.xlane.xlu0 %204  ;;  %v365_v16 = vmul.f32 0.0625, %v235_v50  ;;  %v346_v42 = vmul.f32 0.0625, %v178_v49 }
 0x102   :  { %v355_v19 = vmul.f32 0.0625, %v205_v57 }
 0x103   :  { %v509_v0 = vperm.slane %v365_v16, %v888_v26  ;;  %v490_v49 = vperm.slane %v346_v42, %v888_v26  ;;  %v558_v16 = vsel %vm545_vm2, %v489_v30, %v557_v56 }
 0x104   :  { %v499_v33 = vperm.slane %v355_v19, %v888_v26 }
 0x105   :  { %v576_v21 = vsel %vm553_vm6, %v509_v0, %v575_v13  ;;  %v559_v31 = vsel %vm547_vm3, %v490_v49, %v558_v16 }
 0x106   :  { %v567_v45 = vsel %vm549_vm4, %v499_v33, %v566_v41 }
 0x108   :  { %v181_v44 = vpop.xlane.xlu2 %180  ;;  %v238_v1 = vpop.xlane.xlu1 %237 }
 0x109   :  { %v366_v8 = vmul.f32 0.0625, %v238_v1  ;;  %v208_v9 = vpop.xlane.xlu0 %207  ;;  %v347_v46 = vmul.f32 0.0625, %v181_v44 }
 0x10a   :  { %v356_v27 = vmul.f32 0.0625, %v208_v9 }
 0x10b   :  { %v510_v12 = vperm.slane %v366_v8, %v888_v26  ;;  %v491_v57 = vperm.slane %v347_v46, %v888_v26 }
 0x10c   :  { %v500_v2 = vperm.slane %v356_v27, %v888_v26 }
 0x10d   :  { %v577_v29 = vsel %vm555_vm7, %v510_v12, %v576_v21  ;;  %v560_v61 = vsel %vm549_vm4, %v491_v57, %v559_v31 }
 0x10e   :  { %633 = vmatpush.msra.mxu0 %v577_v29  ;;  %658 = vmatpush.msra.mxu1 %v577_v29  ;;  %v568_v48 = vsel %vm551_vm5, %v500_v2, %v567_v45 }
 0x110   :  { %v214_v34 = vpop.xlane.xlu2 %213  ;;  %v184_v5 = vpop.xlane.xlu1 %183 }
 0x111   :  { %v358_v18 = vmul.f32 0.0625, %v214_v34  ;;  %v211_v22 = vpop.xlane.xlu0 %210  ;;  %v348_v47 = vmul.f32 0.0625, %v184_v5 }
 0x112   :  { %v357_v40 = vmul.f32 0.0625, %v211_v22 }
 0x113   :  { %v502_v43 = vperm.slane %v358_v18, %v888_v26  ;;  %v492_v53 = vperm.slane %v348_v47, %v888_v26 }
 0x114   :  { %v501_v25 = vperm.slane %v357_v40, %v888_v26 }
 0x115   :  { %v561_v0 = vsel %vm551_vm5, %v492_v53, %v560_v61 }
 0x116   :  { %v569_v50 = vsel %vm553_vm6, %v501_v25, %v568_v48 }
 0x117   :  { %v570_v51 = vsel %vm555_vm7, %v502_v43, %v569_v50 }
 0x118   :  { %634 = vmatpush.msra.mxu0 %v570_v51  ;;  %659 = vmatpush.msra.mxu1 %v570_v51  ;;  %v190_v54 = vpop.xlane.xlu1 %189  ;;  %v163_v14 = vpop.xlane.xlu2 %162 }
 0x119   :  { %v187_v58 = vpop.xlane.xlu0 %186  ;;  %v350_v59 = vmul.f32 0.0625, %v190_v54  ;;  %v341_v63 = vmul.f32 0.0625, %v163_v14 }
 0x11a   :  { %v349_v24 = vmul.f32 0.0625, %v187_v58 }
 0x11b   :  { %v494_v37 = vperm.slane %v350_v59, %v888_v26  ;;  %v485_v3 = vperm.slane %v341_v63, %v888_v26 }
 0x11c   :  { %v493_v39 = vperm.slane %v349_v24, %v888_v26 }
 0x11d   :  { %v554_v9 = vsel %vm553_vm6, %v485_v3, %v917_v60 }
 0x11e   :  { %v562_v44 = vsel %vm553_vm6, %v493_v39, %v561_v0 }
 0x11f   :  { %v563_v1 = vsel %vm555_vm7, %v494_v37, %v562_v44 }
 0x120   :  { %635 = vmatpush.msra.mxu0 %v563_v1  ;;  %660 = vmatpush.msra.mxu1 %v563_v1 }
 0x121   :  { %v166_v4 = vpop.xlane.xlu0 %165 }
 0x122   :  { %v342_v7 = vmul.f32 0.0625, %v166_v4 }
 0x124   :  { %v486_v8 = vperm.slane %v342_v7, %v888_v26 }
 0x126   :  { %v556_v55 = vsel %vm555_vm7, %v486_v8, %v554_v9 }
 0x127   :  { %636 = vmatpush.msra.mxu0 %v556_v55  ;;  %661 = vmatpush.msra.mxu1 %v556_v55 }
 0x128   :  { %652 = vmatmul.msk.f32.vlgmr.msra.gmra.mxu0 %vm614_vm8, %v399_v10  ;;  %653 = vmatmul.msk.f32.vlgmr.msra.gmra.mxu1 %vm614_vm8, %v400_v52 }
 0x13c   :  { %v411_v11 = vpop.permute.xlu2 %410 }
 0x154   :  { %v406_v26 = vpop.permute.xlu1 %405 }
 0x1a5   :  { %v638_v12 = vpop.f32.mrf.mxu0  ;;  %v641_v60 = vpop.f32.mrf.mxu1 }
 0x1a6   :  { %v639_v13 = vadd.f32 %v638_v12, %v406_v26  ;;  %v642_v15 = vadd.f32 %v641_v60, %v411_v11 }
 0x1a8   :  { %645 = vst.msk [vmem:[%s1146_s3] sm:$0xff] %vm644_vm9, %v639_v13 }
 0x1a9   :  { %647 = vst.msk [vmem:[%s1146_s3 + $0x8] sm:$0x3] %vm646_vm10, %v642_v15 }

</bundles_post_ra>
